<compile_context>
chip_gen: v6e
topology: v6e:2x2x1
jax: 0.10.0
libtpu: 0.0.40
codegen_flags: <defaults>
</compile_context>

<pallas_src>
import functools

import jax
import jax.numpy as jnp
from jax.experimental import pallas as pl
from jax.experimental.pallas import tpu as pltpu


_F32 = jnp.float32
_BF16 = jnp.bfloat16
_VMEM = pl.BlockSpec(memory_space=pltpu.MemorySpace.VMEM)


def _vmem_limit(per_step_bytes, scratch_bytes=0):
    # double-buffered per-step blocks + scratch + headroom; clamp to v7x 64 MiB.
    need = 2 * per_step_bytes + scratch_bytes + (2 << 20)
    return int(min(max(need, 8 << 20), 64 << 20))


# ----------------------------------------------------------------------------
# In-kernel helpers (traced inside the fused kernels)
# ----------------------------------------------------------------------------

def _ln(x, g, b, eps):
    x = x.astype(_F32)
    mu = jnp.mean(x, axis=-1, keepdims=True)
    xc = x - mu
    var = jnp.mean(xc * xc, axis=-1, keepdims=True)
    return xc * jax.lax.rsqrt(var + eps) * g + b


def _mm(a, w, b=None):
    # Activations -> bf16 at the MXU; weights are already bf16 in HBM; f32 acc.
    out = jnp.dot(a.astype(_BF16), w, preferred_element_type=_F32)
    if b is not None:
        out = out + b
    return out


def _mha_into(attn_ref, q, k, v, num_heads):
    # Heads are contiguous lane slices of D (no transposes).  Head outputs are
    # slice-stored into the f32 VMEM scratch `attn_ref` (no concatenate).
    D = q.shape[-1]
    hd = D // num_heads
    scale = 1.0 / (hd ** 0.5)
    for h in range(num_heads):
        sl = slice(h * hd, (h + 1) * hd)
        qh = q[:, sl].astype(_BF16)
        kh = k[:, sl].astype(_BF16)
        vh = v[:, sl].astype(_BF16)
        s = jax.lax.dot_general(qh, kh, (((1,), (1,)), ((), ())),
                                preferred_element_type=_F32) * scale
        s = s - jnp.max(s, axis=-1, keepdims=True)
        p = jnp.exp(s)
        p = p * pl.reciprocal(jnp.sum(p, axis=-1, keepdims=True), approx=True)
        attn_ref[:, sl] = jnp.dot(p.astype(_BF16), vh,
                                  preferred_element_type=_F32)


def _ffn_block(x, w1, b1, w2, b2):
    m = _mm(x, w1, b1)
    # TODO(synk): PyTorch nn.GELU default is exact erf; tanh-approx GELU used
    # here for robust Mosaic lowering (sub-module internals are not in spec).
    m = jax.nn.gelu(m, approximate=True)
    return _mm(m, w2, b2)


# ----------------------------------------------------------------------------
# Fused Pallas kernels (all layers of a module in one call)
# ----------------------------------------------------------------------------

def _svt_fused_kernel(x_ref, ln1g_ref, ln1b_ref, wqkv_ref, bqkv_ref,
                      wo_ref, bo_ref, ln2g_ref, ln2b_ref,
                      w1_ref, b1_ref, w2_ref, b2_ref, o_ref,
                      x_state, attn_s, *, num_heads, eps):
    # grid = (B, L); layer weights indexed by l, activation carried in VMEM.
    l = pl.program_id(1)

    @pl.when(l == 0)
    def _():
        x_state[...] = x_ref[...].astype(_F32)

    D = x_ref.shape[-1]
    x = x_state[...]
    h = _ln(x, ln1g_ref[...], ln1b_ref[...], eps)
    qkv = _mm(h, wqkv_ref[...], bqkv_ref[...])               # (S, 3D)
    q = qkv[:, 0:D]
    k = qkv[:, D:2 * D]
    v = qkv[:, 2 * D:3 * D]
    _mha_into(attn_s, q, k, v, num_heads)
    x = x + _mm(attn_s[...], wo_ref[...], bo_ref[...])       # fused residual
    h2 = _ln(x, ln2g_ref[...], ln2b_ref[...], eps)
    x = x + _ffn_block(h2, w1_ref[...], b1_ref[...], w2_ref[...], b2_ref[...])
    x_state[...] = x

    @pl.when(l == pl.num_programs(1) - 1)
    def _():
        o_ref[...] = x.astype(o_ref.dtype)


def _tta_fused_kernel(x_ref, v_ref, t_ref,
                      lnqg_ref, lnqb_ref, lnkvg_ref, lnkvb_ref,
                      wq_ref, bq_ref, wkv_ref, bkv_ref, wo_ref, bo_ref,
                      ln2g_ref, ln2b_ref, w1_ref, b1_ref, w2_ref, b2_ref,
                      lnfg_ref, lnfb_ref, o_ref,
                      x_state, kv_state, attn_s, *, num_heads, eps):
    # grid = (B, L); KV sources concatenated once per batch element in VMEM;
    # final layernorm fused as epilogue on the last layer.
    l = pl.program_id(1)
    Sv = v_ref.shape[0]

    @pl.when(l == 0)
    def _():
        x_state[...] = x_ref[...].astype(_F32)
        kv_state[0:Sv, :] = v_ref[...].astype(_F32)
        kv_state[Sv:, :] = t_ref[...].astype(_F32)

    D = x_ref.shape[-1]
    x = x_state[...]
    qn = _ln(x, lnqg_ref[...], lnqb_ref[...], eps)
    kvn = _ln(kv_state[...], lnkvg_ref[...], lnkvb_ref[...], eps)
    q = _mm(qn, wq_ref[...], bq_ref[...])                    # (Sq, D)
    kv = _mm(kvn, wkv_ref[...], bkv_ref[...])                # (Skv, 2D)
    k = kv[:, 0:D]
    v = kv[:, D:2 * D]
    _mha_into(attn_s, q, k, v, num_heads)
    x = x + _mm(attn_s[...], wo_ref[...], bo_ref[...])
    h2 = _ln(x, ln2g_ref[...], ln2b_ref[...], eps)
    x = x + _ffn_block(h2, w1_ref[...], b1_ref[...], w2_ref[...], b2_ref[...])
    x_state[...] = x

    @pl.when(l == pl.num_programs(1) - 1)
    def _():
        o_ref[...] = _ln(x, lnfg_ref[...], lnfb_ref[...], eps).astype(o_ref.dtype)


def _score_kernel(x_ref, w_ref, b_ref, o_ref):
    # Batched per-frame token saliency: one call, softmax over the lane axis.
    # TODO(synk): (BT, N)=(8,16) output is not lane-dense (masked stores);
    # reshape to a 128-multiple last dim if N grows.
    x = x_ref[...].astype(_F32)                              # (BT, N, D)
    w = w_ref[...]                                           # (1, 1, D)
    logit = jnp.sum(x * w, axis=-1) + b_ref[...]             # (BT, N)
    logit = logit - jnp.max(logit, axis=-1, keepdims=True)
    p = jnp.exp(logit)
    p = p * pl.reciprocal(jnp.sum(p, axis=-1, keepdims=True), approx=True)
    o_ref[...] = p.astype(o_ref.dtype)


# ----------------------------------------------------------------------------
# Pallas wrappers
# ----------------------------------------------------------------------------

def _xmap(b, l):
    return (b, 0, 0)


def _wmap(b, l):
    return (l, 0, 0)


def svt_encoder(x, p, num_heads, eps=1e-5):
    # x: (B, S, D); p: dict of per-layer params stacked along a leading L axis.
    B, S, D = x.shape
    L = p["wqkv"].shape[0]
    hidden = p["w1"].shape[-1]

    layer_bytes = sum(int(v.nbytes) // L for v in p.values())
    step_bytes = layer_bytes + 2 * S * D * x.dtype.itemsize
    scratch_bytes = 2 * S * D * 4

    in_specs = [
        pl.BlockSpec((None, S, D), _xmap),                    # x
        pl.BlockSpec((None, 1, D), _wmap),                    # ln1_g
        pl.BlockSpec((None, 1, D), _wmap),                    # ln1_b
        pl.BlockSpec((None, D, 3 * D), _wmap),                # wqkv
        pl.BlockSpec((None, 1, 3 * D), _wmap),                # bqkv
        pl.BlockSpec((None, D, D), _wmap),                    # wo
        pl.BlockSpec((None, 1, D), _wmap),                    # bo
        pl.BlockSpec((None, 1, D), _wmap),                    # ln2_g
        pl.BlockSpec((None, 1, D), _wmap),                    # ln2_b
        pl.BlockSpec((None, D, hidden), _wmap),               # w1
        pl.BlockSpec((None, 1, hidden), _wmap),               # b1
        pl.BlockSpec((None, hidden, D), _wmap),               # w2
        pl.BlockSpec((None, 1, D), _wmap),                    # b2
    ]
    return pl.pallas_call(
        functools.partial(_svt_fused_kernel, num_heads=num_heads, eps=eps),
        out_shape=jax.ShapeDtypeStruct((B, S, D), x.dtype),
        grid=(B, L),
        in_specs=in_specs,
        out_specs=pl.BlockSpec((None, S, D), _xmap),
        scratch_shapes=[pltpu.VMEM((S, D), _F32),             # x_state carry
                        pltpu.VMEM((S, D), _F32)],            # attn heads
        compiler_params=pltpu.CompilerParams(
            dimension_semantics=("parallel", "arbitrary"),
            vmem_limit_bytes=_vmem_limit(step_bytes, scratch_bytes)),
    )(x, p["ln1_g"], p["ln1_b"], p["wqkv"], p["bqkv"], p["wo"], p["bo"],
      p["ln2_g"], p["ln2_b"], p["w1"], p["b1"], p["w2"], p["b2"])


def tta_decoder(x, v_tok, t_tok, p, lnf_g, lnf_b, num_heads, eps=1e-5):
    # x: (B, Q, D) video queries; v_tok: (B, Sv, D) refined video tokens;
    # t_tok: (B, Lt, D) text tokens.
    B, Q, D = x.shape
    Sv = v_tok.shape[1]
    Lt = t_tok.shape[1]
    L = p["wq"].shape[0]
    hidden = p["w1"].shape[-1]

    layer_bytes = sum(int(v.nbytes) // L for v in p.values())
    act_bytes = (2 * Q + Sv + Lt) * D * x.dtype.itemsize
    step_bytes = layer_bytes + act_bytes + int(lnf_g.nbytes) + int(lnf_b.nbytes)
    scratch_bytes = (2 * Q + Sv + Lt) * D * 4

    in_specs = [
        pl.BlockSpec((None, Q, D), _xmap),                    # v_query
        pl.BlockSpec((None, Sv, D), _xmap),                   # refined video tok
        pl.BlockSpec((None, Lt, D), _xmap),                   # text tok
        pl.BlockSpec((None, 1, D), _wmap),                    # lnq_g
        pl.BlockSpec((None, 1, D), _wmap),                    # lnq_b
        pl.BlockSpec((None, 1, D), _wmap),                    # lnkv_g
        pl.BlockSpec((None, 1, D), _wmap),                    # lnkv_b
        pl.BlockSpec((None, D, D), _wmap),                    # wq
        pl.BlockSpec((None, 1, D), _wmap),                    # bq
        pl.BlockSpec((None, D, 2 * D), _wmap),                # wkv
        pl.BlockSpec((None, 1, 2 * D), _wmap),                # bkv
        pl.BlockSpec((None, D, D), _wmap),                    # wo
        pl.BlockSpec((None, 1, D), _wmap),                    # bo
        pl.BlockSpec((None, 1, D), _wmap),                    # ln2_g
        pl.BlockSpec((None, 1, D), _wmap),                    # ln2_b
        pl.BlockSpec((None, D, hidden), _wmap),               # w1
        pl.BlockSpec((None, 1, hidden), _wmap),               # b1
        pl.BlockSpec((None, hidden, D), _wmap),               # w2
        pl.BlockSpec((None, 1, D), _wmap),                    # b2
        _VMEM,                                                # lnf_g (1, D)
        _VMEM,                                                # lnf_b (1, D)
    ]
    return pl.pallas_call(
        functools.partial(_tta_fused_kernel, num_heads=num_heads, eps=eps),
        out_shape=jax.ShapeDtypeStruct((B, Q, D), x.dtype),
        grid=(B, L),
        in_specs=in_specs,
        out_specs=pl.BlockSpec((None, Q, D), _xmap),
        scratch_shapes=[pltpu.VMEM((Q, D), _F32),             # x_state carry
                        pltpu.VMEM((Sv + Lt, D), _F32),       # kv concat
                        pltpu.VMEM((Q, D), _F32)],            # attn heads
        compiler_params=pltpu.CompilerParams(
            dimension_semantics=("parallel", "arbitrary"),
            vmem_limit_bytes=_vmem_limit(step_bytes, scratch_bytes)),
    )(x, v_tok, t_tok,
      p["lnq_g"], p["lnq_b"], p["lnkv_g"], p["lnkv_b"],
      p["wq"], p["bq"], p["wkv"], p["bkv"], p["wo"], p["bo"],
      p["ln2_g"], p["ln2_b"], p["w1"], p["b1"], p["w2"], p["b2"],
      lnf_g, lnf_b)


def token_scores(v_tokens, w, b):
    # v_tokens: (BT, N, D) -> per-frame softmax scores (BT, N), one call.
    BT, N, D = v_tokens.shape
    return pl.pallas_call(
        _score_kernel,
        out_shape=jax.ShapeDtypeStruct((BT, N), v_tokens.dtype),
        in_specs=[_VMEM, _VMEM, _VMEM],
        out_specs=_VMEM,
        compiler_params=pltpu.CompilerParams(
            vmem_limit_bytes=_vmem_limit(int(v_tokens.nbytes))),
    )(v_tokens, w, b)


# ----------------------------------------------------------------------------
# Model pieces
# ----------------------------------------------------------------------------

def svt_forward(v_token, p, num_heads, top_k, use_multi_scale):
    # v_token: (B, T, N, D) -> refined tokens (B, T*top_k, D)
    B, T, N, D = v_token.shape
    scores = token_scores(v_token.reshape(B * T, N, D), p["score_w"], p["score_b"])
    scores = scores.reshape(B, T, N)
    # TODO(synk): data-dependent top-k selection + gather stays in plain JAX;
    # a PrefetchScalarGridSpec/Element-gather fusion into the first encoder
    # layer is the next optimization step.
    top_s, top_i = jax.lax.top_k(scores, top_k)                   # (B, T, k)
    sel = jnp.take_along_axis(v_token, top_i[..., None], axis=2)  # (B, T, k, D)
    sel = sel * top_s[..., None]                                  # score-weighted
    x = sel.reshape(B, T * top_k, D)
    # TODO(synk): use_multi_scale spatio-temporal pooling branch not implemented
    # (example runs with use_multi_scale=False).
    return svt_encoder(x, p["layers"], num_heads)


def tta_forward(v_query, v_tok, t_token, p, num_heads):
    return tta_decoder(v_query, v_tok, t_token, p["layers"],
                       p["lnf_g"], p["lnf_b"], num_heads)


def linear_video_tokenizer_forward(v_quey, v_token, t_token, params, num_heads,
                                   top_k, use_multi_scale):
    v_ref = svt_forward(v_token, params["svt"], num_heads, top_k, use_multi_scale)
    align_token = tta_forward(v_quey, v_ref, t_token, params["tta"], num_heads)
    return align_token


# ----------------------------------------------------------------------------
# Deterministic parameter init (per-layer weights stacked along L, bf16 weights)
# ----------------------------------------------------------------------------

def _stacked_dense(key, L, fan_in, fan_out, scale=0.02):
    w = jax.random.normal(key, (L, fan_in, fan_out), _F32) * scale
    return w.astype(_BF16)                                   # bf16 in HBM


def _svt_params(key, L, D, hidden):
    ks = jax.random.split(key, 4)
    return {
        "ln1_g": jnp.ones((L, 1, D), _F32), "ln1_b": jnp.zeros((L, 1, D), _F32),
        "wqkv": _stacked_dense(ks[0], L, D, 3 * D),
        "bqkv": jnp.zeros((L, 1, 3 * D), _F32),
        "wo": _stacked_dense(ks[1], L, D, D), "bo": jnp.zeros((L, 1, D), _F32),
        "ln2_g": jnp.ones((L, 1, D), _F32), "ln2_b": jnp.zeros((L, 1, D), _F32),
        "w1": _stacked_dense(ks[2], L, D, hidden),
        "b1": jnp.zeros((L, 1, hidden), _F32),
        "w2": _stacked_dense(ks[3], L, hidden, D),
        "b2": jnp.zeros((L, 1, D), _F32),
    }


def _tta_params(key, L, D, hidden):
    ks = jax.random.split(key, 5)
    return {
        "lnq_g": jnp.ones((L, 1, D), _F32), "lnq_b": jnp.zeros((L, 1, D), _F32),
        "lnkv_g": jnp.ones((L, 1, D), _F32), "lnkv_b": jnp.zeros((L, 1, D), _F32),
        "wq": _stacked_dense(ks[0], L, D, D), "bq": jnp.zeros((L, 1, D), _F32),
        "wkv": _stacked_dense(ks[1], L, D, 2 * D),
        "bkv": jnp.zeros((L, 1, 2 * D), _F32),
        "wo": _stacked_dense(ks[2], L, D, D), "bo": jnp.zeros((L, 1, D), _F32),
        "ln2_g": jnp.ones((L, 1, D), _F32), "ln2_b": jnp.zeros((L, 1, D), _F32),
        "w1": _stacked_dense(ks[3], L, D, hidden),
        "b1": jnp.zeros((L, 1, hidden), _F32),
        "w2": _stacked_dense(ks[4], L, hidden, D),
        "b2": jnp.zeros((L, 1, D), _F32),
    }


def init_params(key, embed_size, num_heads, num_layers):
    D = embed_size
    hidden = 4 * D
    k_svt, k_tta, k_score = jax.random.split(key, 3)
    return {
        "svt": {
            "score_w": (jax.random.normal(k_score, (1, 1, D), _F32) * 0.02),
            "score_b": jnp.zeros((1, 1), _F32),
            "layers": _svt_params(k_svt, num_layers, D, hidden),
        },
        "tta": {
            "layers": _tta_params(k_tta, num_layers, D, hidden),
            "lnf_g": jnp.ones((1, D), _F32),
            "lnf_b": jnp.zeros((1, D), _F32),
        },
    }


# ----------------------------------------------------------------------------
# Main
# ----------------------------------------------------------------------------

if __name__ == "__main__":
    embed_size = 128     # D (lane-dense)
    num_heads = 4        # head_dim = 32
    num_layers = 2
    top_k = 8
    use_multi_scale = False

    B, T, N = 2, 4, 16   # batch, frames, tokens per frame
    Q, Lt = 8, 8         # num video queries, num text tokens

    key = jax.random.PRNGKey(0)
    kp, kq, kv, kt = jax.random.split(key, 4)

    params = init_params(kp, embed_size, num_heads, num_layers)

    v_quey = jax.random.normal(kq, (B, Q, embed_size), jnp.float32)
    v_token = jax.random.normal(kv, (B, T, N, embed_size), jnp.float32)
    t_token = jax.random.normal(kt, (B, Lt, embed_size), jnp.float32)

    fwd = jax.jit(
        functools.partial(
            linear_video_tokenizer_forward,
            num_heads=num_heads, top_k=top_k, use_multi_scale=use_multi_scale,
        )
    )
    align_token = fwd(v_quey, v_token, t_token, params)
    jax.block_until_ready(align_token)

    assert align_token.shape == (B, Q, embed_size)
    assert bool(jnp.all(jnp.isfinite(align_token)))
    print("KERNEL_OK")
</pallas_src>

<mosaic_0001>
module attributes {stable_mosaic.version = 11 : i64} {
  func.func @_score_kernel(%arg0: memref<8x16x128xf32, #tpu.memory_space<vmem>>, %arg1: memref<1x1x128xf32, #tpu.memory_space<vmem>>, %arg2: memref<1x1xf32, #tpu.memory_space<vmem>>, %arg3: memref<8x16xf32, #tpu.memory_space<vmem>>) attributes {dimension_semantics = [], scalar_prefetch = 0 : i64, scratch_operands = 0 : i64, tpu.core_type = #tpu.core_type<tc>} {
    %c0 = arith.constant 0 : index
    %c0_0 = arith.constant 0 : index
    %c0_1 = arith.constant 0 : index
    %0 = vector.load %arg0[%c0, %c0_0, %c0_1] : memref<8x16x128xf32, #tpu.memory_space<vmem>>, vector<8x16x128xf32>
    %c0_2 = arith.constant 0 : index
    %c0_3 = arith.constant 0 : index
    %c0_4 = arith.constant 0 : index
    %1 = vector.load %arg1[%c0_2, %c0_3, %c0_4] : memref<1x1x128xf32, #tpu.memory_space<vmem>>, vector<1x1x128xf32>
    %2 = vector.broadcast %1 : vector<1x1x128xf32> to vector<8x16x128xf32>
    %3 = arith.mulf %0, %2 : vector<8x16x128xf32>
    %cst = arith.constant dense<0.000000e+00> : vector<8x16xf32>
    %4 = vector.multi_reduction <add>, %3, %cst [2] : vector<8x16x128xf32> to vector<8x16xf32>
    %c0_5 = arith.constant 0 : index
    %c0_6 = arith.constant 0 : index
    %5 = vector.load %arg2[%c0_5, %c0_6] : memref<1x1xf32, #tpu.memory_space<vmem>>, vector<1x1xf32>
    %6 = vector.broadcast %5 : vector<1x1xf32> to vector<8x16xf32>
    %7 = arith.addf %4, %6 : vector<8x16xf32>
    %cst_7 = arith.constant dense<0xFF800000> : vector<8xf32>
    %8 = vector.multi_reduction <maximumf>, %7, %cst_7 [1] : vector<8x16xf32> to vector<8xf32>
    %9 = vector.shape_cast %8 : vector<8xf32> to vector<8x1xf32>
    %10 = vector.broadcast %9 : vector<8x1xf32> to vector<8x16xf32>
    %11 = arith.subf %7, %10 : vector<8x16xf32>
    %12 = math.exp %11 : vector<8x16xf32>
    %cst_8 = arith.constant dense<0.000000e+00> : vector<8xf32>
    %13 = vector.multi_reduction <add>, %12, %cst_8 [1] : vector<8x16xf32> to vector<8xf32>
    %14 = vector.shape_cast %13 : vector<8xf32> to vector<8x1xf32>
    %15 = tpu.reciprocal %14 {approx = true} : vector<8x1xf32> -> vector<8x1xf32>
    %16 = vector.broadcast %15 : vector<8x1xf32> to vector<8x16xf32>
    %17 = arith.mulf %12, %16 : vector<8x16xf32>
    %c0_9 = arith.constant 0 : index
    %c0_10 = arith.constant 0 : index
    %18 = vector.load %arg3[%c0_9, %c0_10] : memref<8x16xf32, #tpu.memory_space<vmem>>, vector<8x16xf32>
    tpu.vector_store %arg3[%c0_9, %c0_10], %17 {strides = array<i32>} : memref<8x16xf32, #tpu.memory_space<vmem>>, vector<8x16xf32>,
    return
  }
}

module attributes {stable_mosaic.version = 11 : i64} {
  func.func @_svt_fused_kernel(%arg0: i32, %arg1: i32, %arg2: memref<1x32x128xf32, #tpu.memory_space<vmem>>, %arg3: memref<1x1x128xf32, #tpu.memory_space<vmem>>, %arg4: memref<1x1x128xf32, #tpu.memory_space<vmem>>, %arg5: memref<1x128x384xbf16, #tpu.memory_space<vmem>>, %arg6: memref<1x1x384xf32, #tpu.memory_space<vmem>>, %arg7: memref<1x128x128xbf16, #tpu.memory_space<vmem>>, %arg8: memref<1x1x128xf32, #tpu.memory_space<vmem>>, %arg9: memref<1x1x128xf32, #tpu.memory_space<vmem>>, %arg10: memref<1x1x128xf32, #tpu.memory_space<vmem>>, %arg11: memref<1x128x512xbf16, #tpu.memory_space<vmem>>, %arg12: memref<1x1x512xf32, #tpu.memory_space<vmem>>, %arg13: memref<1x512x128xbf16, #tpu.memory_space<vmem>>, %arg14: memref<1x1x128xf32, #tpu.memory_space<vmem>>, %arg15: memref<1x32x128xf32, #tpu.memory_space<vmem>>, %arg16: memref<32x128xf32, #tpu.memory_space<vmem>>, %arg17: memref<32x128xf32, #tpu.memory_space<vmem>>) attributes {dimension_semantics = [#tpu.dimension_semantics<parallel>, #tpu.dimension_semantics<arbitrary>], iteration_bounds = array<i64: 2, 2>, scalar_prefetch = 0 : i64, scratch_operands = 2 : i64, tpu.core_type = #tpu.core_type<tc>, window_params = [{transform_indices = @transform_0, window_bounds = array<i64: 1, 32, 128>}, {transform_indices = @transform_1, window_bounds = array<i64: 1, 1, 128>}, {transform_indices = @transform_2, window_bounds = array<i64: 1, 1, 128>}, {transform_indices = @transform_3, window_bounds = array<i64: 1, 128, 384>}, {transform_indices = @transform_4, window_bounds = array<i64: 1, 1, 384>}, {transform_indices = @transform_5, window_bounds = array<i64: 1, 128, 128>}, {transform_indices = @transform_6, window_bounds = array<i64: 1, 1, 128>}, {transform_indices = @transform_7, window_bounds = array<i64: 1, 1, 128>}, {transform_indices = @transform_8, window_bounds = array<i64: 1, 1, 128>}, {transform_indices = @transform_9, window_bounds = array<i64: 1, 128, 512>}, {transform_indices = @transform_10, window_bounds = array<i64: 1, 1, 512>}, {transform_indices = @transform_11, window_bounds = array<i64: 1, 512, 128>}, {transform_indices = @transform_12, window_bounds = array<i64: 1, 1, 128>}, {transform_indices = @transform_13, window_bounds = array<i64: 1, 32, 128>}]} {
    %c0_i32 = arith.constant 0 : i32
    %0 = arith.cmpi eq, %arg1, %c0_i32 : i32
    %1 = arith.extui %0 : i1 to i32
    %c0_i32_0 = arith.constant 0 : i32
    %2 = arith.cmpi ne, %1, %c0_i32_0 : i32
    scf.if %2 {
      %c0_85 = arith.constant 0 : index
      %c0_86 = arith.constant 0 : index
      %c0_87 = arith.constant 0 : index
      %195 = vector.load %arg2[%c0_85, %c0_86, %c0_87] : memref<1x32x128xf32, #tpu.memory_space<vmem>>, vector<1x32x128xf32>
      %196 = vector.shape_cast %195 : vector<1x32x128xf32> to vector<32x128xf32>
      %c0_88 = arith.constant 0 : index
      %c0_89 = arith.constant 0 : index
      %197 = vector.load %arg16[%c0_88, %c0_89] : memref<32x128xf32, #tpu.memory_space<vmem>>, vector<32x128xf32>
      tpu.vector_store %arg16[%c0_88, %c0_89], %196 {strides = array<i32>} : memref<32x128xf32, #tpu.memory_space<vmem>>, vector<32x128xf32>,
    } else {
    }
    %c0 = arith.constant 0 : index
    %c0_1 = arith.constant 0 : index
    %3 = vector.load %arg16[%c0, %c0_1] : memref<32x128xf32, #tpu.memory_space<vmem>>, vector<32x128xf32>
    %c0_2 = arith.constant 0 : index
    %c0_3 = arith.constant 0 : index
    %c0_4 = arith.constant 0 : index
    %4 = vector.load %arg3[%c0_2, %c0_3, %c0_4] : memref<1x1x128xf32, #tpu.memory_space<vmem>>, vector<1x1x128xf32>
    %5 = vector.shape_cast %4 : vector<1x1x128xf32> to vector<1x128xf32>
    %c0_5 = arith.constant 0 : index
    %c0_6 = arith.constant 0 : index
    %c0_7 = arith.constant 0 : index
    %6 = vector.load %arg4[%c0_5, %c0_6, %c0_7] : memref<1x1x128xf32, #tpu.memory_space<vmem>>, vector<1x1x128xf32>
    %7 = vector.shape_cast %6 : vector<1x1x128xf32> to vector<1x128xf32>
    %cst = arith.constant dense<0.000000e+00> : vector<32xf32>
    %8 = vector.multi_reduction <add>, %3, %cst [1] : vector<32x128xf32> to vector<32xf32>
    %9 = vector.shape_cast %8 : vector<32xf32> to vector<32x1xf32>
    %cst_8 = arith.constant 1.280000e+02 : f32
    %10 = vector.broadcast %cst_8 : f32 to vector<32x1xf32>
    %11 = arith.divf %9, %10 : vector<32x1xf32>
    %12 = vector.broadcast %11 : vector<32x1xf32> to vector<32x128xf32>
    %13 = arith.subf %3, %12 : vector<32x128xf32>
    %14 = arith.mulf %13, %13 : vector<32x128xf32>
    %cst_9 = arith.constant dense<0.000000e+00> : vector<32xf32>
    %15 = vector.multi_reduction <add>, %14, %cst_9 [1] : vector<32x128xf32> to vector<32xf32>
    %16 = vector.shape_cast %15 : vector<32xf32> to vector<32x1xf32>
    %cst_10 = arith.constant 1.280000e+02 : f32
    %17 = vector.broadcast %cst_10 : f32 to vector<32x1xf32>
    %18 = arith.divf %16, %17 : vector<32x1xf32>
    %cst_11 = arith.constant 9.99999974E-6 : f32
    %19 = vector.broadcast %cst_11 : f32 to vector<32x1xf32>
    %20 = arith.addf %18, %19 : vector<32x1xf32>
    %21 = math.rsqrt %20 : vector<32x1xf32>
    %22 = vector.broadcast %21 : vector<32x1xf32> to vector<32x128xf32>
    %23 = arith.mulf %13, %22 : vector<32x128xf32>
    %24 = vector.broadcast %5 : vector<1x128xf32> to vector<32x128xf32>
    %25 = arith.mulf %23, %24 : vector<32x128xf32>
    %26 = vector.broadcast %7 : vector<1x128xf32> to vector<32x128xf32>
    %27 = arith.addf %25, %26 : vector<32x128xf32>
    %c0_12 = arith.constant 0 : index
    %c0_13 = arith.constant 0 : index
    %c0_14 = arith.constant 0 : index
    %28 = vector.load %arg5[%c0_12, %c0_13, %c0_14] : memref<1x128x384xbf16, #tpu.memory_space<vmem>>, vector<1x128x384xbf16>
    %29 = vector.shape_cast %28 : vector<1x128x384xbf16> to vector<128x384xbf16>
    %c0_15 = arith.constant 0 : index
    %c0_16 = arith.constant 0 : index
    %c0_17 = arith.constant 0 : index
    %30 = vector.load %arg6[%c0_15, %c0_16, %c0_17] : memref<1x1x384xf32, #tpu.memory_space<vmem>>, vector<1x1x384xf32>
    %31 = vector.shape_cast %30 : vector<1x1x384xf32> to vector<1x384xf32>
    %32 = arith.truncf %27 : vector<32x128xf32> to vector<32x128xbf16>
    %cst_18 = arith.constant dense<0.000000e+00> : vector<32x384xf32>
    %33 = tpu.matmul %32, %29, %cst_18 {dimension_numbers = #tpu.dot_dimension_numbers<[1], [0], [0], [1], [0, 0, 1, 1], [], []>} : vector<32x128xbf16>, vector<128x384xbf16>, vector<32x384xf32> -> vector<32x384xf32>
    %34 = vector.broadcast %31 : vector<1x384xf32> to vector<32x384xf32>
    %35 = arith.addf %33, %34 : vector<32x384xf32>
    %36 = vector.extract_strided_slice %35 {offsets = [0, 0], sizes = [32, 128], strides = [1, 1]} : vector<32x384xf32> to vector<32x128xf32>
    %37 = vector.extract_strided_slice %35 {offsets = [0, 128], sizes = [32, 128], strides = [1, 1]} : vector<32x384xf32> to vector<32x128xf32>
    %38 = vector.extract_strided_slice %35 {offsets = [0, 256], sizes = [32, 128], strides = [1, 1]} : vector<32x384xf32> to vector<32x128xf32>
    %39 = vector.extract_strided_slice %36 {offsets = [0, 0], sizes = [32, 32], strides = [1, 1]} : vector<32x128xf32> to vector<32x32xf32>
    %40 = arith.truncf %39 : vector<32x32xf32> to vector<32x32xbf16>
    %41 = vector.extract_strided_slice %37 {offsets = [0, 0], sizes = [32, 32], strides = [1, 1]} : vector<32x128xf32> to vector<32x32xf32>
    %42 = arith.truncf %41 : vector<32x32xf32> to vector<32x32xbf16>
    %43 = vector.extract_strided_slice %38 {offsets = [0, 0], sizes = [32, 32], strides = [1, 1]} : vector<32x128xf32> to vector<32x32xf32>
    %44 = arith.truncf %43 : vector<32x32xf32> to vector<32x32xbf16>
    %cst_19 = arith.constant dense<0.000000e+00> : vector<32x32xf32>
    %45 = tpu.matmul %40, %42, %cst_19 {dimension_numbers = #tpu.dot_dimension_numbers<[1], [1], [0], [0], [0, 0, 1, 0], [], []>} : vector<32x32xbf16>, vector<32x32xbf16>, vector<32x32xf32> -> vector<32x32xf32>
    %cst_20 = arith.constant 0.176776692 : f32
    %46 = vector.broadcast %cst_20 : f32 to vector<32x32xf32>
    %47 = arith.mulf %45, %46 : vector<32x32xf32>
    %cst_21 = arith.constant dense<0xFF800000> : vector<32xf32>
    %48 = vector.multi_reduction <maximumf>, %47, %cst_21 [1] : vector<32x32xf32> to vector<32xf32>
    %49 = vector.shape_cast %48 : vector<32xf32> to vector<32x1xf32>
    %50 = vector.broadcast %49 : vector<32x1xf32> to vector<32x32xf32>
    %51 = arith.subf %47, %50 : vector<32x32xf32>
    %52 = math.exp %51 : vector<32x32xf32>
    %cst_22 = arith.constant dense<0.000000e+00> : vector<32xf32>
    %53 = vector.multi_reduction <add>, %52, %cst_22 [1] : vector<32x32xf32> to vector<32xf32>
    %54 = vector.shape_cast %53 : vector<32xf32> to vector<32x1xf32>
    %55 = tpu.reciprocal %54 {approx = true} : vector<32x1xf32> -> vector<32x1xf32>
    %56 = vector.broadcast %55 : vector<32x1xf32> to vector<32x32xf32>
    %57 = arith.mulf %52, %56 : vector<32x32xf32>
    %58 = arith.truncf %57 : vector<32x32xf32> to vector<32x32xbf16>
    %cst_23 = arith.constant dense<0.000000e+00> : vector<32x32xf32>
    %59 = tpu.matmul %58, %44, %cst_23 {dimension_numbers = #tpu.dot_dimension_numbers<[1], [0], [0], [1], [0, 0, 1, 1], [], []>} : vector<32x32xbf16>, vector<32x32xbf16>, vector<32x32xf32> -> vector<32x32xf32>
    %c0_24 = arith.constant 0 : index
    %c0_25 = arith.constant 0 : index
    %60 = vector.load %arg17[%c0_24, %c0_25] : memref<32x128xf32, #tpu.memory_space<vmem>>, vector<32x32xf32>
    tpu.vector_store %arg17[%c0_24, %c0_25], %59 {strides = array<i32>} : memref<32x128xf32, #tpu.memory_space<vmem>>, vector<32x32xf32>,
    %61 = vector.extract_strided_slice %36 {offsets = [0, 32], sizes = [32, 32], strides = [1, 1]} : vector<32x128xf32> to vector<32x32xf32>
    %62 = arith.truncf %61 : vector<32x32xf32> to vector<32x32xbf16>
    %63 = vector.extract_strided_slice %37 {offsets = [0, 32], sizes = [32, 32], strides = [1, 1]} : vector<32x128xf32> to vector<32x32xf32>
    %64 = arith.truncf %63 : vector<32x32xf32> to vector<32x32xbf16>
    %65 = vector.extract_strided_slice %38 {offsets = [0, 32], sizes = [32, 32], strides = [1, 1]} : vector<32x128xf32> to vector<32x32xf32>
    %66 = arith.truncf %65 : vector<32x32xf32> to vector<32x32xbf16>
    %cst_26 = arith.constant dense<0.000000e+00> : vector<32x32xf32>
    %67 = tpu.matmul %62, %64, %cst_26 {dimension_numbers = #tpu.dot_dimension_numbers<[1], [1], [0], [0], [0, 0, 1, 0], [], []>} : vector<32x32xbf16>, vector<32x32xbf16>, vector<32x32xf32> -> vector<32x32xf32>
    %cst_27 = arith.constant 0.176776692 : f32
    %68 = vector.broadcast %cst_27 : f32 to vector<32x32xf32>
    %69 = arith.mulf %67, %68 : vector<32x32xf32>
    %cst_28 = arith.constant dense<0xFF800000> : vector<32xf32>
    %70 = vector.multi_reduction <maximumf>, %69, %cst_28 [1] : vector<32x32xf32> to vector<32xf32>
    %71 = vector.shape_cast %70 : vector<32xf32> to vector<32x1xf32>
    %72 = vector.broadcast %71 : vector<32x1xf32> to vector<32x32xf32>
    %73 = arith.subf %69, %72 : vector<32x32xf32>
    %74 = math.exp %73 : vector<32x32xf32>
    %cst_29 = arith.constant dense<0.000000e+00> : vector<32xf32>
    %75 = vector.multi_reduction <add>, %74, %cst_29 [1] : vector<32x32xf32> to vector<32xf32>
    %76 = vector.shape_cast %75 : vector<32xf32> to vector<32x1xf32>
    %77 = tpu.reciprocal %76 {approx = true} : vector<32x1xf32> -> vector<32x1xf32>
    %78 = vector.broadcast %77 : vector<32x1xf32> to vector<32x32xf32>
    %79 = arith.mulf %74, %78 : vector<32x32xf32>
    %80 = arith.truncf %79 : vector<32x32xf32> to vector<32x32xbf16>
    %cst_30 = arith.constant dense<0.000000e+00> : vector<32x32xf32>
    %81 = tpu.matmul %80, %66, %cst_30 {dimension_numbers = #tpu.dot_dimension_numbers<[1], [0], [0], [1], [0, 0, 1, 1], [], []>} : vector<32x32xbf16>, vector<32x32xbf16>, vector<32x32xf32> -> vector<32x32xf32>
    %c0_31 = arith.constant 0 : index
    %c32 = arith.constant 32 : index
    %82 = vector.load %arg17[%c0_31, %c32] : memref<32x128xf32, #tpu.memory_space<vmem>>, vector<32x32xf32>
    tpu.vector_store %arg17[%c0_31, %c32], %81 {strides = array<i32>} : memref<32x128xf32, #tpu.memory_space<vmem>>, vector<32x32xf32>,
    %83 = vector.extract_strided_slice %36 {offsets = [0, 64], sizes = [32, 32], strides = [1, 1]} : vector<32x128xf32> to vector<32x32xf32>
    %84 = arith.truncf %83 : vector<32x32xf32> to vector<32x32xbf16>
    %85 = vector.extract_strided_slice %37 {offsets = [0, 64], sizes = [32, 32], strides = [1, 1]} : vector<32x128xf32> to vector<32x32xf32>
    %86 = arith.truncf %85 : vector<32x32xf32> to vector<32x32xbf16>
    %87 = vector.extract_strided_slice %38 {offsets = [0, 64], sizes = [32, 32], strides = [1, 1]} : vector<32x128xf32> to vector<32x32xf32>
    %88 = arith.truncf %87 : vector<32x32xf32> to vector<32x32xbf16>
    %cst_32 = arith.constant dense<0.000000e+00> : vector<32x32xf32>
    %89 = tpu.matmul %84, %86, %cst_32 {dimension_numbers = #tpu.dot_dimension_numbers<[1], [1], [0], [0], [0, 0, 1, 0], [], []>} : vector<32x32xbf16>, vector<32x32xbf16>, vector<32x32xf32> -> vector<32x32xf32>
    %cst_33 = arith.constant 0.176776692 : f32
    %90 = vector.broadcast %cst_33 : f32 to vector<32x32xf32>
    %91 = arith.mulf %89, %90 : vector<32x32xf32>
    %cst_34 = arith.constant dense<0xFF800000> : vector<32xf32>
    %92 = vector.multi_reduction <maximumf>, %91, %cst_34 [1] : vector<32x32xf32> to vector<32xf32>
    %93 = vector.shape_cast %92 : vector<32xf32> to vector<32x1xf32>
    %94 = vector.broadcast %93 : vector<32x1xf32> to vector<32x32xf32>
    %95 = arith.subf %91, %94 : vector<32x32xf32>
    %96 = math.exp %95 : vector<32x32xf32>
    %cst_35 = arith.constant dense<0.000000e+00> : vector<32xf32>
    %97 = vector.multi_reduction <add>, %96, %cst_35 [1] : vector<32x32xf32> to vector<32xf32>
    %98 = vector.shape_cast %97 : vector<32xf32> to vector<32x1xf32>
    %99 = tpu.reciprocal %98 {approx = true} : vector<32x1xf32> -> vector<32x1xf32>
    %100 = vector.broadcast %99 : vector<32x1xf32> to vector<32x32xf32>
    %101 = arith.mulf %96, %100 : vector<32x32xf32>
    %102 = arith.truncf %101 : vector<32x32xf32> to vector<32x32xbf16>
    %cst_36 = arith.constant dense<0.000000e+00> : vector<32x32xf32>
    %103 = tpu.matmul %102, %88, %cst_36 {dimension_numbers = #tpu.dot_dimension_numbers<[1], [0], [0], [1], [0, 0, 1, 1], [], []>} : vector<32x32xbf16>, vector<32x32xbf16>, vector<32x32xf32> -> vector<32x32xf32>
    %c0_37 = arith.constant 0 : index
    %c64 = arith.constant 64 : index
    %104 = vector.load %arg17[%c0_37, %c64] : memref<32x128xf32, #tpu.memory_space<vmem>>, vector<32x32xf32>
    tpu.vector_store %arg17[%c0_37, %c64], %103 {strides = array<i32>} : memref<32x128xf32, #tpu.memory_space<vmem>>, vector<32x32xf32>,
    %105 = vector.extract_strided_slice %36 {offsets = [0, 96], sizes = [32, 32], strides = [1, 1]} : vector<32x128xf32> to vector<32x32xf32>
    %106 = arith.truncf %105 : vector<32x32xf32> to vector<32x32xbf16>
    %107 = vector.extract_strided_slice %37 {offsets = [0, 96], sizes = [32, 32], strides = [1, 1]} : vector<32x128xf32> to vector<32x32xf32>
    %108 = arith.truncf %107 : vector<32x32xf32> to vector<32x32xbf16>
    %109 = vector.extract_strided_slice %38 {offsets = [0, 96], sizes = [32, 32], strides = [1, 1]} : vector<32x128xf32> to vector<32x32xf32>
    %110 = arith.truncf %109 : vector<32x32xf32> to vector<32x32xbf16>
    %cst_38 = arith.constant dense<0.000000e+00> : vector<32x32xf32>
    %111 = tpu.matmul %106, %108, %cst_38 {dimension_numbers = #tpu.dot_dimension_numbers<[1], [1], [0], [0], [0, 0, 1, 0], [], []>} : vector<32x32xbf16>, vector<32x32xbf16>, vector<32x32xf32> -> vector<32x32xf32>
    %cst_39 = arith.constant 0.176776692 : f32
    %112 = vector.broadcast %cst_39 : f32 to vector<32x32xf32>
    %113 = arith.mulf %111, %112 : vector<32x32xf32>
    %cst_40 = arith.constant dense<0xFF800000> : vector<32xf32>
    %114 = vector.multi_reduction <maximumf>, %113, %cst_40 [1] : vector<32x32xf32> to vector<32xf32>
    %115 = vector.shape_cast %114 : vector<32xf32> to vector<32x1xf32>
    %116 = vector.broadcast %115 : vector<32x1xf32> to vector<32x32xf32>
    %117 = arith.subf %113, %116 : vector<32x32xf32>
    %118 = math.exp %117 : vector<32x32xf32>
    %cst_41 = arith.constant dense<0.000000e+00> : vector<32xf32>
    %119 = vector.multi_reduction <add>, %118, %cst_41 [1] : vector<32x32xf32> to vector<32xf32>
    %120 = vector.shape_cast %119 : vector<32xf32> to vector<32x1xf32>
    %121 = tpu.reciprocal %120 {approx = true} : vector<32x1xf32> -> vector<32x1xf32>
    %122 = vector.broadcast %121 : vector<32x1xf32> to vector<32x32xf32>
    %123 = arith.mulf %118, %122 : vector<32x32xf32>
    %124 = arith.truncf %123 : vector<32x32xf32> to vector<32x32xbf16>
    %cst_42 = arith.constant dense<0.000000e+00> : vector<32x32xf32>
    %125 = tpu.matmul %124, %110, %cst_42 {dimension_numbers = #tpu.dot_dimension_numbers<[1], [0], [0], [1], [0, 0, 1, 1], [], []>} : vector<32x32xbf16>, vector<32x32xbf16>, vector<32x32xf32> -> vector<32x32xf32>
    %c0_43 = arith.constant 0 : index
    %c96 = arith.constant 96 : index
    %126 = vector.load %arg17[%c0_43, %c96] : memref<32x128xf32, #tpu.memory_space<vmem>>, vector<32x32xf32>
    tpu.vector_store %arg17[%c0_43, %c96], %125 {strides = array<i32>} : memref<32x128xf32, #tpu.memory_space<vmem>>, vector<32x32xf32>,
    %c0_44 = arith.constant 0 : index
    %c0_45 = arith.constant 0 : index
    %127 = vector.load %arg17[%c0_44, %c0_45] : memref<32x128xf32, #tpu.memory_space<vmem>>, vector<32x128xf32>
    %c0_46 = arith.constant 0 : index
    %c0_47 = arith.constant 0 : index
    %c0_48 = arith.constant 0 : index
    %128 = vector.load %arg7[%c0_46, %c0_47, %c0_48] : memref<1x128x128xbf16, #tpu.memory_space<vmem>>, vector<1x128x128xbf16>
    %129 = vector.shape_cast %128 : vector<1x128x128xbf16> to vector<128x128xbf16>
    %c0_49 = arith.constant 0 : index
    %c0_50 = arith.constant 0 : index
    %c0_51 = arith.constant 0 : index
    %130 = vector.load %arg8[%c0_49, %c0_50, %c0_51] : memref<1x1x128xf32, #tpu.memory_space<vmem>>, vector<1x1x128xf32>
    %131 = vector.shape_cast %130 : vector<1x1x128xf32> to vector<1x128xf32>
    %132 = arith.truncf %127 : vector<32x128xf32> to vector<32x128xbf16>
    %cst_52 = arith.constant dense<0.000000e+00> : vector<32x128xf32>
    %133 = tpu.matmul %132, %129, %cst_52 {dimension_numbers = #tpu.dot_dimension_numbers<[1], [0], [0], [1], [0, 0, 1, 1], [], []>} : vector<32x128xbf16>, vector<128x128xbf16>, vector<32x128xf32> -> vector<32x128xf32>
    %134 = vector.broadcast %131 : vector<1x128xf32> to vector<32x128xf32>
    %135 = arith.addf %133, %134 : vector<32x128xf32>
    %136 = arith.addf %3, %135 : vector<32x128xf32>
    %c0_53 = arith.constant 0 : index
    %c0_54 = arith.constant 0 : index
    %c0_55 = arith.constant 0 : index
    %137 = vector.load %arg9[%c0_53, %c0_54, %c0_55] : memref<1x1x128xf32, #tpu.memory_space<vmem>>, vector<1x1x128xf32>
    %138 = vector.shape_cast %137 : vector<1x1x128xf32> to vector<1x128xf32>
    %c0_56 = arith.constant 0 : index
    %c0_57 = arith.constant 0 : index
    %c0_58 = arith.constant 0 : index
    %139 = vector.load %arg10[%c0_56, %c0_57, %c0_58] : memref<1x1x128xf32, #tpu.memory_space<vmem>>, vector<1x1x128xf32>
    %140 = vector.shape_cast %139 : vector<1x1x128xf32> to vector<1x128xf32>
    %cst_59 = arith.constant dense<0.000000e+00> : vector<32xf32>
    %141 = vector.multi_reduction <add>, %136, %cst_59 [1] : vector<32x128xf32> to vector<32xf32>
    %142 = vector.shape_cast %141 : vector<32xf32> to vector<32x1xf32>
    %cst_60 = arith.constant 1.280000e+02 : f32
    %143 = vector.broadcast %cst_60 : f32 to vector<32x1xf32>
    %144 = arith.divf %142, %143 : vector<32x1xf32>
    %145 = vector.broadcast %144 : vector<32x1xf32> to vector<32x128xf32>
    %146 = arith.subf %136, %145 : vector<32x128xf32>
    %147 = arith.mulf %146, %146 : vector<32x128xf32>
    %cst_61 = arith.constant dense<0.000000e+00> : vector<32xf32>
    %148 = vector.multi_reduction <add>, %147, %cst_61 [1] : vector<32x128xf32> to vector<32xf32>
    %149 = vector.shape_cast %148 : vector<32xf32> to vector<32x1xf32>
    %cst_62 = arith.constant 1.280000e+02 : f32
    %150 = vector.broadcast %cst_62 : f32 to vector<32x1xf32>
    %151 = arith.divf %149, %150 : vector<32x1xf32>
    %cst_63 = arith.constant 9.99999974E-6 : f32
    %152 = vector.broadcast %cst_63 : f32 to vector<32x1xf32>
    %153 = arith.addf %151, %152 : vector<32x1xf32>
    %154 = math.rsqrt %153 : vector<32x1xf32>
    %155 = vector.broadcast %154 : vector<32x1xf32> to vector<32x128xf32>
    %156 = arith.mulf %146, %155 : vector<32x128xf32>
    %157 = vector.broadcast %138 : vector<1x128xf32> to vector<32x128xf32>
    %158 = arith.mulf %156, %157 : vector<32x128xf32>
    %159 = vector.broadcast %140 : vector<1x128xf32> to vector<32x128xf32>
    %160 = arith.addf %158, %159 : vector<32x128xf32>
    %c0_64 = arith.constant 0 : index
    %c0_65 = arith.constant 0 : index
    %c0_66 = arith.constant 0 : index
    %161 = vector.load %arg11[%c0_64, %c0_65, %c0_66] : memref<1x128x512xbf16, #tpu.memory_space<vmem>>, vector<1x128x512xbf16>
    %162 = vector.shape_cast %161 : vector<1x128x512xbf16> to vector<128x512xbf16>
    %c0_67 = arith.constant 0 : index
    %c0_68 = arith.constant 0 : index
    %c0_69 = arith.constant 0 : index
    %163 = vector.load %arg12[%c0_67, %c0_68, %c0_69] : memref<1x1x512xf32, #tpu.memory_space<vmem>>, vector<1x1x512xf32>
    %164 = vector.shape_cast %163 : vector<1x1x512xf32> to vector<1x512xf32>
    %c0_70 = arith.constant 0 : index
    %c0_71 = arith.constant 0 : index
    %c0_72 = arith.constant 0 : index
    %165 = vector.load %arg13[%c0_70, %c0_71, %c0_72] : memref<1x512x128xbf16, #tpu.memory_space<vmem>>, vector<1x512x128xbf16>
    %166 = vector.shape_cast %165 : vector<1x512x128xbf16> to vector<512x128xbf16>
    %c0_73 = arith.constant 0 : index
    %c0_74 = arith.constant 0 : index
    %c0_75 = arith.constant 0 : index
    %167 = vector.load %arg14[%c0_73, %c0_74, %c0_75] : memref<1x1x128xf32, #tpu.memory_space<vmem>>, vector<1x1x128xf32>
    %168 = vector.shape_cast %167 : vector<1x1x128xf32> to vector<1x128xf32>
    %169 = arith.truncf %160 : vector<32x128xf32> to vector<32x128xbf16>
    %cst_76 = arith.constant dense<0.000000e+00> : vector<32x512xf32>
    %170 = tpu.matmul %169, %162, %cst_76 {dimension_numbers = #tpu.dot_dimension_numbers<[1], [0], [0], [1], [0, 0, 1, 1], [], []>} : vector<32x128xbf16>, vector<128x512xbf16>, vector<32x512xf32> -> vector<32x512xf32>
    %171 = vector.broadcast %164 : vector<1x512xf32> to vector<32x512xf32>
    %172 = arith.addf %170, %171 : vector<32x512xf32>
    %173 = arith.mulf %172, %172 : vector<32x512xf32>
    %174 = arith.mulf %172, %173 : vector<32x512xf32>
    %cst_77 = arith.constant 4.471500e-02 : f32
    %175 = vector.broadcast %cst_77 : f32 to vector<32x512xf32>
    %176 = arith.mulf %175, %174 : vector<32x512xf32>
    %177 = arith.addf %172, %176 : vector<32x512xf32>
    %cst_78 = arith.constant 0.797884583 : f32
    %178 = vector.broadcast %cst_78 : f32 to vector<32x512xf32>
    %179 = arith.mulf %178, %177 : vector<32x512xf32>
    %180 = math.tanh %179 : vector<32x512xf32>
    %cst_79 = arith.constant 1.000000e+00 : f32
    %181 = vector.broadcast %cst_79 : f32 to vector<32x512xf32>
    %182 = arith.addf %181, %180 : vector<32x512xf32>
    %cst_80 = arith.constant 5.000000e-01 : f32
    %183 = vector.broadcast %cst_80 : f32 to vector<32x512xf32>
    %184 = arith.mulf %183, %182 : vector<32x512xf32>
    %185 = arith.mulf %172, %184 : vector<32x512xf32>
    %186 = arith.truncf %185 : vector<32x512xf32> to vector<32x512xbf16>
    %cst_81 = arith.constant dense<0.000000e+00> : vector<32x128xf32>
    %187 = tpu.matmul %186, %166, %cst_81 {dimension_numbers = #tpu.dot_dimension_numbers<[1], [0], [0], [1], [0, 0, 1, 1], [], []>} : vector<32x512xbf16>, vector<512x128xbf16>, vector<32x128xf32> -> vector<32x128xf32>
    %188 = vector.broadcast %168 : vector<1x128xf32> to vector<32x128xf32>
    %189 = arith.addf %187, %188 : vector<32x128xf32>
    %190 = arith.addf %136, %189 : vector<32x128xf32>
    %c0_82 = arith.constant 0 : index
    %c0_83 = arith.constant 0 : index
    %191 = vector.load %arg16[%c0_82, %c0_83] : memref<32x128xf32, #tpu.memory_space<vmem>>, vector<32x128xf32>
    tpu.vector_store %arg16[%c0_82, %c0_83], %190 {strides = array<i32>} : memref<32x128xf32, #tpu.memory_space<vmem>>, vector<32x128xf32>,
    %c1_i32 = arith.constant 1 : i32
    %192 = arith.cmpi eq, %arg1, %c1_i32 : i32
    %193 = arith.extui %192 : i1 to i32
    %c0_i32_84 = arith.constant 0 : i32
    %194 = arith.cmpi ne, %193, %c0_i32_84 : i32
    scf.if %194 {
      %c0_85 = arith.constant 0 : index
      %c0_86 = arith.constant 0 : index
      %c0_87 = arith.constant 0 : index
      %195 = vector.load %arg15[%c0_85, %c0_86, %c0_87] : memref<1x32x128xf32, #tpu.memory_space<vmem>>, vector<1x32x128xf32>
      %196 = vector.shape_cast %195 : vector<1x32x128xf32> to vector<32x128xf32>
      %197 = vector.shape_cast %190 : vector<32x128xf32> to vector<1x32x128xf32>
      tpu.vector_store %arg15[%c0_85, %c0_86, %c0_87], %197 {strides = array<i32>} : memref<1x32x128xf32, #tpu.memory_space<vmem>>, vector<1x32x128xf32>,
    } else {
    }
    return
  }
  func.func @transform_0(%arg0: i32, %arg1: i32) -> (i32, i32, i32) {
    %c0_i32 = arith.constant 0 : i32
    %c0_i32_0 = arith.constant 0 : i32
    %c0_i32_1 = arith.constant 0 : i32
    return %arg0, %c0_i32, %c0_i32_0 : i32, i32, i32
  }
  func.func @transform_1(%arg0: i32, %arg1: i32) -> (i32, i32, i32) {
    %c0_i32 = arith.constant 0 : i32
    %c0_i32_0 = arith.constant 0 : i32
    %c0_i32_1 = arith.constant 0 : i32
    return %arg1, %c0_i32, %c0_i32_0 : i32, i32, i32
  }
  func.func @transform_2(%arg0: i32, %arg1: i32) -> (i32, i32, i32) {
    %c0_i32 = arith.constant 0 : i32
    %c0_i32_0 = arith.constant 0 : i32
    %c0_i32_1 = arith.constant 0 : i32
    return %arg1, %c0_i32, %c0_i32_0 : i32, i32, i32
  }
  func.func @transform_3(%arg0: i32, %arg1: i32) -> (i32, i32, i32) {
    %c0_i32 = arith.constant 0 : i32
    %c0_i32_0 = arith.constant 0 : i32
    %c0_i32_1 = arith.constant 0 : i32
    return %arg1, %c0_i32, %c0_i32_0 : i32, i32, i32
  }
  func.func @transform_4(%arg0: i32, %arg1: i32) -> (i32, i32, i32) {
    %c0_i32 = arith.constant 0 : i32
    %c0_i32_0 = arith.constant 0 : i32
    %c0_i32_1 = arith.constant 0 : i32
    return %arg1, %c0_i32, %c0_i32_0 : i32, i32, i32
  }
  func.func @transform_5(%arg0: i32, %arg1: i32) -> (i32, i32, i32) {
    %c0_i32 = arith.constant 0 : i32
    %c0_i32_0 = arith.constant 0 : i32
    %c0_i32_1 = arith.constant 0 : i32
    return %arg1, %c0_i32, %c0_i32_0 : i32, i32, i32
  }
  func.func @transform_6(%arg0: i32, %arg1: i32) -> (i32, i32, i32) {
    %c0_i32 = arith.constant 0 : i32
    %c0_i32_0 = arith.constant 0 : i32
    %c0_i32_1 = arith.constant 0 : i32
    return %arg1, %c0_i32, %c0_i32_0 : i32, i32, i32
  }
  func.func @transform_7(%arg0: i32, %arg1: i32) -> (i32, i32, i32) {
    %c0_i32 = arith.constant 0 : i32
    %c0_i32_0 = arith.constant 0 : i32
    %c0_i32_1 = arith.constant 0 : i32
    return %arg1, %c0_i32, %c0_i32_0 : i32, i32, i32
  }
  func.func @transform_8(%arg0: i32, %arg1: i32) -> (i32, i32, i32) {
    %c0_i32 = arith.constant 0 : i32
    %c0_i32_0 = arith.constant 0 : i32
    %c0_i32_1 = arith.constant 0 : i32
    return %arg1, %c0_i32, %c0_i32_0 : i32, i32, i32
  }
  func.func @transform_9(%arg0: i32, %arg1: i32) -> (i32, i32, i32) {
    %c0_i32 = arith.constant 0 : i32
    %c0_i32_0 = arith.constant 0 : i32
    %c0_i32_1 = arith.constant 0 : i32
    return %arg1, %c0_i32, %c0_i32_0 : i32, i32, i32
  }
  func.func @transform_10(%arg0: i32, %arg1: i32) -> (i32, i32, i32) {
    %c0_i32 = arith.constant 0 : i32
    %c0_i32_0 = arith.constant 0 : i32
    %c0_i32_1 = arith.constant 0 : i32
    return %arg1, %c0_i32, %c0_i32_0 : i32, i32, i32
  }
  func.func @transform_11(%arg0: i32, %arg1: i32) -> (i32, i32, i32) {
    %c0_i32 = arith.constant 0 : i32
    %c0_i32_0 = arith.constant 0 : i32
    %c0_i32_1 = arith.constant 0 : i32
    return %arg1, %c0_i32, %c0_i32_0 : i32, i32, i32
  }
  func.func @transform_12(%arg0: i32, %arg1: i32) -> (i32, i32, i32) {
    %c0_i32 = arith.constant 0 : i32
    %c0_i32_0 = arith.constant 0 : i32
    %c0_i32_1 = arith.constant 0 : i32
    return %arg1, %c0_i32, %c0_i32_0 : i32, i32, i32
  }
  func.func @transform_13(%arg0: i32, %arg1: i32) -> (i32, i32, i32) {
    %c0_i32 = arith.constant 0 : i32
    %c0_i32_0 = arith.constant 0 : i32
    %c0_i32_1 = arith.constant 0 : i32
    return %arg0, %c0_i32, %c0_i32_0 : i32, i32, i32
  }
}

module attributes {stable_mosaic.version = 11 : i64} {
  func.func @_tta_fused_kernel(%arg0: i32, %arg1: i32, %arg2: memref<1x8x128xf32, #tpu.memory_space<vmem>>, %arg3: memref<1x32x128xf32, #tpu.memory_space<vmem>>, %arg4: memref<1x8x128xf32, #tpu.memory_space<vmem>>, %arg5: memref<1x1x128xf32, #tpu.memory_space<vmem>>, %arg6: memref<1x1x128xf32, #tpu.memory_space<vmem>>, %arg7: memref<1x1x128xf32, #tpu.memory_space<vmem>>, %arg8: memref<1x1x128xf32, #tpu.memory_space<vmem>>, %arg9: memref<1x128x128xbf16, #tpu.memory_space<vmem>>, %arg10: memref<1x1x128xf32, #tpu.memory_space<vmem>>, %arg11: memref<1x128x256xbf16, #tpu.memory_space<vmem>>, %arg12: memref<1x1x256xf32, #tpu.memory_space<vmem>>, %arg13: memref<1x128x128xbf16, #tpu.memory_space<vmem>>, %arg14: memref<1x1x128xf32, #tpu.memory_space<vmem>>, %arg15: memref<1x1x128xf32, #tpu.memory_space<vmem>>, %arg16: memref<1x1x128xf32, #tpu.memory_space<vmem>>, %arg17: memref<1x128x512xbf16, #tpu.memory_space<vmem>>, %arg18: memref<1x1x512xf32, #tpu.memory_space<vmem>>, %arg19: memref<1x512x128xbf16, #tpu.memory_space<vmem>>, %arg20: memref<1x1x128xf32, #tpu.memory_space<vmem>>, %arg21: memref<1x128xf32, #tpu.memory_space<vmem>>, %arg22: memref<1x128xf32, #tpu.memory_space<vmem>>, %arg23: memref<1x8x128xf32, #tpu.memory_space<vmem>>, %arg24: memref<8x128xf32, #tpu.memory_space<vmem>>, %arg25: memref<40x128xf32, #tpu.memory_space<vmem>>, %arg26: memref<8x128xf32, #tpu.memory_space<vmem>>) attributes {dimension_semantics = [#tpu.dimension_semantics<parallel>, #tpu.dimension_semantics<arbitrary>], iteration_bounds = array<i64: 2, 2>, scalar_prefetch = 0 : i64, scratch_operands = 3 : i64, tpu.core_type = #tpu.core_type<tc>, window_params = [{transform_indices = @transform_0, window_bounds = array<i64: 1, 8, 128>}, {transform_indices = @transform_1, window_bounds = array<i64: 1, 32, 128>}, {transform_indices = @transform_2, window_bounds = array<i64: 1, 8, 128>}, {transform_indices = @transform_3, window_bounds = array<i64: 1, 1, 128>}, {transform_indices = @transform_4, window_bounds = array<i64: 1, 1, 128>}, {transform_indices = @transform_5, window_bounds = array<i64: 1, 1, 128>}, {transform_indices = @transform_6, window_bounds = array<i64: 1, 1, 128>}, {transform_indices = @transform_7, window_bounds = array<i64: 1, 128, 128>}, {transform_indices = @transform_8, window_bounds = array<i64: 1, 1, 128>}, {transform_indices = @transform_9, window_bounds = array<i64: 1, 128, 256>}, {transform_indices = @transform_10, window_bounds = array<i64: 1, 1, 256>}, {transform_indices = @transform_11, window_bounds = array<i64: 1, 128, 128>}, {transform_indices = @transform_12, window_bounds = array<i64: 1, 1, 128>}, {transform_indices = @transform_13, window_bounds = array<i64: 1, 1, 128>}, {transform_indices = @transform_14, window_bounds = array<i64: 1, 1, 128>}, {transform_indices = @transform_15, window_bounds = array<i64: 1, 128, 512>}, {transform_indices = @transform_16, window_bounds = array<i64: 1, 1, 512>}, {transform_indices = @transform_17, window_bounds = array<i64: 1, 512, 128>}, {transform_indices = @transform_18, window_bounds = array<i64: 1, 1, 128>}, {pipeline_mode = #tpu.pipeline_mode<synchronous>, transform_indices = @transform_19, window_bounds = array<i64: 1, 128>}, {pipeline_mode = #tpu.pipeline_mode<synchronous>, transform_indices = @transform_20, window_bounds = array<i64: 1, 128>}, {transform_indices = @transform_21, window_bounds = array<i64: 1, 8, 128>}]} {
    %c0_i32 = arith.constant 0 : i32
    %0 = arith.cmpi eq, %arg1, %c0_i32 : i32
    %1 = arith.extui %0 : i1 to i32
    %c0_i32_0 = arith.constant 0 : i32
    %2 = arith.cmpi ne, %1, %c0_i32_0 : i32
    scf.if %2 {
      %c0_105 = arith.constant 0 : index
      %c0_106 = arith.constant 0 : index
      %c0_107 = arith.constant 0 : index
      %227 = vector.load %arg2[%c0_105, %c0_106, %c0_107] : memref<1x8x128xf32, #tpu.memory_space<vmem>>, vector<1x8x128xf32>
      %228 = vector.shape_cast %227 : vector<1x8x128xf32> to vector<8x128xf32>
      %c0_108 = arith.constant 0 : index
      %c0_109 = arith.constant 0 : index
      %229 = vector.load %arg24[%c0_108, %c0_109] : memref<8x128xf32, #tpu.memory_space<vmem>>, vector<8x128xf32>
      tpu.vector_store %arg24[%c0_108, %c0_109], %228 {strides = array<i32>} : memref<8x128xf32, #tpu.memory_space<vmem>>, vector<8x128xf32>,
      %c0_110 = arith.constant 0 : index
      %c0_111 = arith.constant 0 : index
      %c0_112 = arith.constant 0 : index
      %230 = vector.load %arg3[%c0_110, %c0_111, %c0_112] : memref<1x32x128xf32, #tpu.memory_space<vmem>>, vector<1x32x128xf32>
      %231 = vector.shape_cast %230 : vector<1x32x128xf32> to vector<32x128xf32>
      %c0_113 = arith.constant 0 : index
      %c0_114 = arith.constant 0 : index
      %232 = vector.load %arg25[%c0_113, %c0_114] : memref<40x128xf32, #tpu.memory_space<vmem>>, vector<32x128xf32>
      tpu.vector_store %arg25[%c0_113, %c0_114], %231 {strides = array<i32>} : memref<40x128xf32, #tpu.memory_space<vmem>>, vector<32x128xf32>,
      %c0_115 = arith.constant 0 : index
      %c0_116 = arith.constant 0 : index
      %c0_117 = arith.constant 0 : index
      %233 = vector.load %arg4[%c0_115, %c0_116, %c0_117] : memref<1x8x128xf32, #tpu.memory_space<vmem>>, vector<1x8x128xf32>
      %234 = vector.shape_cast %233 : vector<1x8x128xf32> to vector<8x128xf32>
      %c32_118 = arith.constant 32 : index
      %c0_119 = arith.constant 0 : index
      %235 = vector.load %arg25[%c32_118, %c0_119] : memref<40x128xf32, #tpu.memory_space<vmem>>, vector<8x128xf32>
      tpu.vector_store %arg25[%c32_118, %c0_119], %234 {strides = array<i32>} : memref<40x128xf32, #tpu.memory_space<vmem>>, vector<8x128xf32>,
    } else {
    }
    %c0 = arith.constant 0 : index
    %c0_1 = arith.constant 0 : index
    %3 = vector.load %arg24[%c0, %c0_1] : memref<8x128xf32, #tpu.memory_space<vmem>>, vector<8x128xf32>
    %c0_2 = arith.constant 0 : index
    %c0_3 = arith.constant 0 : index
    %c0_4 = arith.constant 0 : index
    %4 = vector.load %arg5[%c0_2, %c0_3, %c0_4] : memref<1x1x128xf32, #tpu.memory_space<vmem>>, vector<1x1x128xf32>
    %5 = vector.shape_cast %4 : vector<1x1x128xf32> to vector<1x128xf32>
    %c0_5 = arith.constant 0 : index
    %c0_6 = arith.constant 0 : index
    %c0_7 = arith.constant 0 : index
    %6 = vector.load %arg6[%c0_5, %c0_6, %c0_7] : memref<1x1x128xf32, #tpu.memory_space<vmem>>, vector<1x1x128xf32>
    %7 = vector.shape_cast %6 : vector<1x1x128xf32> to vector<1x128xf32>
    %cst = arith.constant dense<0.000000e+00> : vector<8xf32>
    %8 = vector.multi_reduction <add>, %3, %cst [1] : vector<8x128xf32> to vector<8xf32>
    %9 = vector.shape_cast %8 : vector<8xf32> to vector<8x1xf32>
    %cst_8 = arith.constant 1.280000e+02 : f32
    %10 = vector.broadcast %cst_8 : f32 to vector<8x1xf32>
    %11 = arith.divf %9, %10 : vector<8x1xf32>
    %12 = vector.broadcast %11 : vector<8x1xf32> to vector<8x128xf32>
    %13 = arith.subf %3, %12 : vector<8x128xf32>
    %14 = arith.mulf %13, %13 : vector<8x128xf32>
    %cst_9 = arith.constant dense<0.000000e+00> : vector<8xf32>
    %15 = vector.multi_reduction <add>, %14, %cst_9 [1] : vector<8x128xf32> to vector<8xf32>
    %16 = vector.shape_cast %15 : vector<8xf32> to vector<8x1xf32>
    %cst_10 = arith.constant 1.280000e+02 : f32
    %17 = vector.broadcast %cst_10 : f32 to vector<8x1xf32>
    %18 = arith.divf %16, %17 : vector<8x1xf32>
    %cst_11 = arith.constant 9.99999974E-6 : f32
    %19 = vector.broadcast %cst_11 : f32 to vector<8x1xf32>
    %20 = arith.addf %18, %19 : vector<8x1xf32>
    %21 = math.rsqrt %20 : vector<8x1xf32>
    %22 = vector.broadcast %21 : vector<8x1xf32> to vector<8x128xf32>
    %23 = arith.mulf %13, %22 : vector<8x128xf32>
    %24 = vector.broadcast %5 : vector<1x128xf32> to vector<8x128xf32>
    %25 = arith.mulf %23, %24 : vector<8x128xf32>
    %26 = vector.broadcast %7 : vector<1x128xf32> to vector<8x128xf32>
    %27 = arith.addf %25, %26 : vector<8x128xf32>
    %c0_12 = arith.constant 0 : index
    %c0_13 = arith.constant 0 : index
    %28 = vector.load %arg25[%c0_12, %c0_13] : memref<40x128xf32, #tpu.memory_space<vmem>>, vector<40x128xf32>
    %c0_14 = arith.constant 0 : index
    %c0_15 = arith.constant 0 : index
    %c0_16 = arith.constant 0 : index
    %29 = vector.load %arg7[%c0_14, %c0_15, %c0_16] : memref<1x1x128xf32, #tpu.memory_space<vmem>>, vector<1x1x128xf32>
    %30 = vector.shape_cast %29 : vector<1x1x128xf32> to vector<1x128xf32>
    %c0_17 = arith.constant 0 : index
    %c0_18 = arith.constant 0 : index
    %c0_19 = arith.constant 0 : index
    %31 = vector.load %arg8[%c0_17, %c0_18, %c0_19] : memref<1x1x128xf32, #tpu.memory_space<vmem>>, vector<1x1x128xf32>
    %32 = vector.shape_cast %31 : vector<1x1x128xf32> to vector<1x128xf32>
    %cst_20 = arith.constant dense<0.000000e+00> : vector<40xf32>
    %33 = vector.multi_reduction <add>, %28, %cst_20 [1] : vector<40x128xf32> to vector<40xf32>
    %34 = vector.shape_cast %33 : vector<40xf32> to vector<40x1xf32>
    %cst_21 = arith.constant 1.280000e+02 : f32
    %35 = vector.broadcast %cst_21 : f32 to vector<40x1xf32>
    %36 = arith.divf %34, %35 : vector<40x1xf32>
    %37 = vector.broadcast %36 : vector<40x1xf32> to vector<40x128xf32>
    %38 = arith.subf %28, %37 : vector<40x128xf32>
    %39 = arith.mulf %38, %38 : vector<40x128xf32>
    %cst_22 = arith.constant dense<0.000000e+00> : vector<40xf32>
    %40 = vector.multi_reduction <add>, %39, %cst_22 [1] : vector<40x128xf32> to vector<40xf32>
    %41 = vector.shape_cast %40 : vector<40xf32> to vector<40x1xf32>
    %cst_23 = arith.constant 1.280000e+02 : f32
    %42 = vector.broadcast %cst_23 : f32 to vector<40x1xf32>
    %43 = arith.divf %41, %42 : vector<40x1xf32>
    %cst_24 = arith.constant 9.99999974E-6 : f32
    %44 = vector.broadcast %cst_24 : f32 to vector<40x1xf32>
    %45 = arith.addf %43, %44 : vector<40x1xf32>
    %46 = math.rsqrt %45 : vector<40x1xf32>
    %47 = vector.broadcast %46 : vector<40x1xf32> to vector<40x128xf32>
    %48 = arith.mulf %38, %47 : vector<40x128xf32>
    %49 = vector.broadcast %30 : vector<1x128xf32> to vector<40x128xf32>
    %50 = arith.mulf %48, %49 : vector<40x128xf32>
    %51 = vector.broadcast %32 : vector<1x128xf32> to vector<40x128xf32>
    %52 = arith.addf %50, %51 : vector<40x128xf32>
    %c0_25 = arith.constant 0 : index
    %c0_26 = arith.constant 0 : index
    %c0_27 = arith.constant 0 : index
    %53 = vector.load %arg9[%c0_25, %c0_26, %c0_27] : memref<1x128x128xbf16, #tpu.memory_space<vmem>>, vector<1x128x128xbf16>
    %54 = vector.shape_cast %53 : vector<1x128x128xbf16> to vector<128x128xbf16>
    %c0_28 = arith.constant 0 : index
    %c0_29 = arith.constant 0 : index
    %c0_30 = arith.constant 0 : index
    %55 = vector.load %arg10[%c0_28, %c0_29, %c0_30] : memref<1x1x128xf32, #tpu.memory_space<vmem>>, vector<1x1x128xf32>
    %56 = vector.shape_cast %55 : vector<1x1x128xf32> to vector<1x128xf32>
    %57 = arith.truncf %27 : vector<8x128xf32> to vector<8x128xbf16>
    %cst_31 = arith.constant dense<0.000000e+00> : vector<8x128xf32>
    %58 = tpu.matmul %57, %54, %cst_31 {dimension_numbers = #tpu.dot_dimension_numbers<[1], [0], [0], [1], [0, 0, 1, 1], [], []>} : vector<8x128xbf16>, vector<128x128xbf16>, vector<8x128xf32> -> vector<8x128xf32>
    %59 = vector.broadcast %56 : vector<1x128xf32> to vector<8x128xf32>
    %60 = arith.addf %58, %59 : vector<8x128xf32>
    %c0_32 = arith.constant 0 : index
    %c0_33 = arith.constant 0 : index
    %c0_34 = arith.constant 0 : index
    %61 = vector.load %arg11[%c0_32, %c0_33, %c0_34] : memref<1x128x256xbf16, #tpu.memory_space<vmem>>, vector<1x128x256xbf16>
    %62 = vector.shape_cast %61 : vector<1x128x256xbf16> to vector<128x256xbf16>
    %c0_35 = arith.constant 0 : index
    %c0_36 = arith.constant 0 : index
    %c0_37 = arith.constant 0 : index
    %63 = vector.load %arg12[%c0_35, %c0_36, %c0_37] : memref<1x1x256xf32, #tpu.memory_space<vmem>>, vector<1x1x256xf32>
    %64 = vector.shape_cast %63 : vector<1x1x256xf32> to vector<1x256xf32>
    %65 = arith.truncf %52 : vector<40x128xf32> to vector<40x128xbf16>
    %cst_38 = arith.constant dense<0.000000e+00> : vector<40x256xf32>
    %66 = tpu.matmul %65, %62, %cst_38 {dimension_numbers = #tpu.dot_dimension_numbers<[1], [0], [0], [1], [0, 0, 1, 1], [], []>} : vector<40x128xbf16>, vector<128x256xbf16>, vector<40x256xf32> -> vector<40x256xf32>
    %67 = vector.broadcast %64 : vector<1x256xf32> to vector<40x256xf32>
    %68 = arith.addf %66, %67 : vector<40x256xf32>
    %69 = vector.extract_strided_slice %68 {offsets = [0, 0], sizes = [40, 128], strides = [1, 1]} : vector<40x256xf32> to vector<40x128xf32>
    %70 = vector.extract_strided_slice %68 {offsets = [0, 128], sizes = [40, 128], strides = [1, 1]} : vector<40x256xf32> to vector<40x128xf32>
    %71 = vector.extract_strided_slice %60 {offsets = [0, 0], sizes = [8, 32], strides = [1, 1]} : vector<8x128xf32> to vector<8x32xf32>
    %72 = arith.truncf %71 : vector<8x32xf32> to vector<8x32xbf16>
    %73 = vector.extract_strided_slice %69 {offsets = [0, 0], sizes = [40, 32], strides = [1, 1]} : vector<40x128xf32> to vector<40x32xf32>
    %74 = arith.truncf %73 : vector<40x32xf32> to vector<40x32xbf16>
    %75 = vector.extract_strided_slice %70 {offsets = [0, 0], sizes = [40, 32], strides = [1, 1]} : vector<40x128xf32> to vector<40x32xf32>
    %76 = arith.truncf %75 : vector<40x32xf32> to vector<40x32xbf16>
    %cst_39 = arith.constant dense<0.000000e+00> : vector<8x40xf32>
    %77 = tpu.matmul %72, %74, %cst_39 {dimension_numbers = #tpu.dot_dimension_numbers<[1], [1], [0], [0], [0, 0, 1, 0], [], []>} : vector<8x32xbf16>, vector<40x32xbf16>, vector<8x40xf32> -> vector<8x40xf32>
    %cst_40 = arith.constant 0.176776692 : f32
    %78 = vector.broadcast %cst_40 : f32 to vector<8x40xf32>
    %79 = arith.mulf %77, %78 : vector<8x40xf32>
    %cst_41 = arith.constant dense<0xFF800000> : vector<8xf32>
    %80 = vector.multi_reduction <maximumf>, %79, %cst_41 [1] : vector<8x40xf32> to vector<8xf32>
    %81 = vector.shape_cast %80 : vector<8xf32> to vector<8x1xf32>
    %82 = vector.broadcast %81 : vector<8x1xf32> to vector<8x40xf32>
    %83 = arith.subf %79, %82 : vector<8x40xf32>
    %84 = math.exp %83 : vector<8x40xf32>
    %cst_42 = arith.constant dense<0.000000e+00> : vector<8xf32>
    %85 = vector.multi_reduction <add>, %84, %cst_42 [1] : vector<8x40xf32> to vector<8xf32>
    %86 = vector.shape_cast %85 : vector<8xf32> to vector<8x1xf32>
    %87 = tpu.reciprocal %86 {approx = true} : vector<8x1xf32> -> vector<8x1xf32>
    %88 = vector.broadcast %87 : vector<8x1xf32> to vector<8x40xf32>
    %89 = arith.mulf %84, %88 : vector<8x40xf32>
    %90 = arith.truncf %89 : vector<8x40xf32> to vector<8x40xbf16>
    %cst_43 = arith.constant dense<0.000000e+00> : vector<8x32xf32>
    %91 = tpu.matmul %90, %76, %cst_43 {dimension_numbers = #tpu.dot_dimension_numbers<[1], [0], [0], [1], [0, 0, 1, 1], [], []>} : vector<8x40xbf16>, vector<40x32xbf16>, vector<8x32xf32> -> vector<8x32xf32>
    %c0_44 = arith.constant 0 : index
    %c0_45 = arith.constant 0 : index
    %92 = vector.load %arg26[%c0_44, %c0_45] : memref<8x128xf32, #tpu.memory_space<vmem>>, vector<8x32xf32>
    tpu.vector_store %arg26[%c0_44, %c0_45], %91 {strides = array<i32>} : memref<8x128xf32, #tpu.memory_space<vmem>>, vector<8x32xf32>,
    %93 = vector.extract_strided_slice %60 {offsets = [0, 32], sizes = [8, 32], strides = [1, 1]} : vector<8x128xf32> to vector<8x32xf32>
    %94 = arith.truncf %93 : vector<8x32xf32> to vector<8x32xbf16>
    %95 = vector.extract_strided_slice %69 {offsets = [0, 32], sizes = [40, 32], strides = [1, 1]} : vector<40x128xf32> to vector<40x32xf32>
    %96 = arith.truncf %95 : vector<40x32xf32> to vector<40x32xbf16>
    %97 = vector.extract_strided_slice %70 {offsets = [0, 32], sizes = [40, 32], strides = [1, 1]} : vector<40x128xf32> to vector<40x32xf32>
    %98 = arith.truncf %97 : vector<40x32xf32> to vector<40x32xbf16>
    %cst_46 = arith.constant dense<0.000000e+00> : vector<8x40xf32>
    %99 = tpu.matmul %94, %96, %cst_46 {dimension_numbers = #tpu.dot_dimension_numbers<[1], [1], [0], [0], [0, 0, 1, 0], [], []>} : vector<8x32xbf16>, vector<40x32xbf16>, vector<8x40xf32> -> vector<8x40xf32>
    %cst_47 = arith.constant 0.176776692 : f32
    %100 = vector.broadcast %cst_47 : f32 to vector<8x40xf32>
    %101 = arith.mulf %99, %100 : vector<8x40xf32>
    %cst_48 = arith.constant dense<0xFF800000> : vector<8xf32>
    %102 = vector.multi_reduction <maximumf>, %101, %cst_48 [1] : vector<8x40xf32> to vector<8xf32>
    %103 = vector.shape_cast %102 : vector<8xf32> to vector<8x1xf32>
    %104 = vector.broadcast %103 : vector<8x1xf32> to vector<8x40xf32>
    %105 = arith.subf %101, %104 : vector<8x40xf32>
    %106 = math.exp %105 : vector<8x40xf32>
    %cst_49 = arith.constant dense<0.000000e+00> : vector<8xf32>
    %107 = vector.multi_reduction <add>, %106, %cst_49 [1] : vector<8x40xf32> to vector<8xf32>
    %108 = vector.shape_cast %107 : vector<8xf32> to vector<8x1xf32>
    %109 = tpu.reciprocal %108 {approx = true} : vector<8x1xf32> -> vector<8x1xf32>
    %110 = vector.broadcast %109 : vector<8x1xf32> to vector<8x40xf32>
    %111 = arith.mulf %106, %110 : vector<8x40xf32>
    %112 = arith.truncf %111 : vector<8x40xf32> to vector<8x40xbf16>
    %cst_50 = arith.constant dense<0.000000e+00> : vector<8x32xf32>
    %113 = tpu.matmul %112, %98, %cst_50 {dimension_numbers = #tpu.dot_dimension_numbers<[1], [0], [0], [1], [0, 0, 1, 1], [], []>} : vector<8x40xbf16>, vector<40x32xbf16>, vector<8x32xf32> -> vector<8x32xf32>
    %c0_51 = arith.constant 0 : index
    %c32 = arith.constant 32 : index
    %114 = vector.load %arg26[%c0_51, %c32] : memref<8x128xf32, #tpu.memory_space<vmem>>, vector<8x32xf32>
    tpu.vector_store %arg26[%c0_51, %c32], %113 {strides = array<i32>} : memref<8x128xf32, #tpu.memory_space<vmem>>, vector<8x32xf32>,
    %115 = vector.extract_strided_slice %60 {offsets = [0, 64], sizes = [8, 32], strides = [1, 1]} : vector<8x128xf32> to vector<8x32xf32>
    %116 = arith.truncf %115 : vector<8x32xf32> to vector<8x32xbf16>
    %117 = vector.extract_strided_slice %69 {offsets = [0, 64], sizes = [40, 32], strides = [1, 1]} : vector<40x128xf32> to vector<40x32xf32>
    %118 = arith.truncf %117 : vector<40x32xf32> to vector<40x32xbf16>
    %119 = vector.extract_strided_slice %70 {offsets = [0, 64], sizes = [40, 32], strides = [1, 1]} : vector<40x128xf32> to vector<40x32xf32>
    %120 = arith.truncf %119 : vector<40x32xf32> to vector<40x32xbf16>
    %cst_52 = arith.constant dense<0.000000e+00> : vector<8x40xf32>
    %121 = tpu.matmul %116, %118, %cst_52 {dimension_numbers = #tpu.dot_dimension_numbers<[1], [1], [0], [0], [0, 0, 1, 0], [], []>} : vector<8x32xbf16>, vector<40x32xbf16>, vector<8x40xf32> -> vector<8x40xf32>
    %cst_53 = arith.constant 0.176776692 : f32
    %122 = vector.broadcast %cst_53 : f32 to vector<8x40xf32>
    %123 = arith.mulf %121, %122 : vector<8x40xf32>
    %cst_54 = arith.constant dense<0xFF800000> : vector<8xf32>
    %124 = vector.multi_reduction <maximumf>, %123, %cst_54 [1] : vector<8x40xf32> to vector<8xf32>
    %125 = vector.shape_cast %124 : vector<8xf32> to vector<8x1xf32>
    %126 = vector.broadcast %125 : vector<8x1xf32> to vector<8x40xf32>
    %127 = arith.subf %123, %126 : vector<8x40xf32>
    %128 = math.exp %127 : vector<8x40xf32>
    %cst_55 = arith.constant dense<0.000000e+00> : vector<8xf32>
    %129 = vector.multi_reduction <add>, %128, %cst_55 [1] : vector<8x40xf32> to vector<8xf32>
    %130 = vector.shape_cast %129 : vector<8xf32> to vector<8x1xf32>
    %131 = tpu.reciprocal %130 {approx = true} : vector<8x1xf32> -> vector<8x1xf32>
    %132 = vector.broadcast %131 : vector<8x1xf32> to vector<8x40xf32>
    %133 = arith.mulf %128, %132 : vector<8x40xf32>
    %134 = arith.truncf %133 : vector<8x40xf32> to vector<8x40xbf16>
    %cst_56 = arith.constant dense<0.000000e+00> : vector<8x32xf32>
    %135 = tpu.matmul %134, %120, %cst_56 {dimension_numbers = #tpu.dot_dimension_numbers<[1], [0], [0], [1], [0, 0, 1, 1], [], []>} : vector<8x40xbf16>, vector<40x32xbf16>, vector<8x32xf32> -> vector<8x32xf32>
    %c0_57 = arith.constant 0 : index
    %c64 = arith.constant 64 : index
    %136 = vector.load %arg26[%c0_57, %c64] : memref<8x128xf32, #tpu.memory_space<vmem>>, vector<8x32xf32>
    tpu.vector_store %arg26[%c0_57, %c64], %135 {strides = array<i32>} : memref<8x128xf32, #tpu.memory_space<vmem>>, vector<8x32xf32>,
    %137 = vector.extract_strided_slice %60 {offsets = [0, 96], sizes = [8, 32], strides = [1, 1]} : vector<8x128xf32> to vector<8x32xf32>
    %138 = arith.truncf %137 : vector<8x32xf32> to vector<8x32xbf16>
    %139 = vector.extract_strided_slice %69 {offsets = [0, 96], sizes = [40, 32], strides = [1, 1]} : vector<40x128xf32> to vector<40x32xf32>
    %140 = arith.truncf %139 : vector<40x32xf32> to vector<40x32xbf16>
    %141 = vector.extract_strided_slice %70 {offsets = [0, 96], sizes = [40, 32], strides = [1, 1]} : vector<40x128xf32> to vector<40x32xf32>
    %142 = arith.truncf %141 : vector<40x32xf32> to vector<40x32xbf16>
    %cst_58 = arith.constant dense<0.000000e+00> : vector<8x40xf32>
    %143 = tpu.matmul %138, %140, %cst_58 {dimension_numbers = #tpu.dot_dimension_numbers<[1], [1], [0], [0], [0, 0, 1, 0], [], []>} : vector<8x32xbf16>, vector<40x32xbf16>, vector<8x40xf32> -> vector<8x40xf32>
    %cst_59 = arith.constant 0.176776692 : f32
    %144 = vector.broadcast %cst_59 : f32 to vector<8x40xf32>
    %145 = arith.mulf %143, %144 : vector<8x40xf32>
    %cst_60 = arith.constant dense<0xFF800000> : vector<8xf32>
    %146 = vector.multi_reduction <maximumf>, %145, %cst_60 [1] : vector<8x40xf32> to vector<8xf32>
    %147 = vector.shape_cast %146 : vector<8xf32> to vector<8x1xf32>
    %148 = vector.broadcast %147 : vector<8x1xf32> to vector<8x40xf32>
    %149 = arith.subf %145, %148 : vector<8x40xf32>
    %150 = math.exp %149 : vector<8x40xf32>
    %cst_61 = arith.constant dense<0.000000e+00> : vector<8xf32>
    %151 = vector.multi_reduction <add>, %150, %cst_61 [1] : vector<8x40xf32> to vector<8xf32>
    %152 = vector.shape_cast %151 : vector<8xf32> to vector<8x1xf32>
    %153 = tpu.reciprocal %152 {approx = true} : vector<8x1xf32> -> vector<8x1xf32>
    %154 = vector.broadcast %153 : vector<8x1xf32> to vector<8x40xf32>
    %155 = arith.mulf %150, %154 : vector<8x40xf32>
    %156 = arith.truncf %155 : vector<8x40xf32> to vector<8x40xbf16>
    %cst_62 = arith.constant dense<0.000000e+00> : vector<8x32xf32>
    %157 = tpu.matmul %156, %142, %cst_62 {dimension_numbers = #tpu.dot_dimension_numbers<[1], [0], [0], [1], [0, 0, 1, 1], [], []>} : vector<8x40xbf16>, vector<40x32xbf16>, vector<8x32xf32> -> vector<8x32xf32>
    %c0_63 = arith.constant 0 : index
    %c96 = arith.constant 96 : index
    %158 = vector.load %arg26[%c0_63, %c96] : memref<8x128xf32, #tpu.memory_space<vmem>>, vector<8x32xf32>
    tpu.vector_store %arg26[%c0_63, %c96], %157 {strides = array<i32>} : memref<8x128xf32, #tpu.memory_space<vmem>>, vector<8x32xf32>,
    %c0_64 = arith.constant 0 : index
    %c0_65 = arith.constant 0 : index
    %159 = vector.load %arg26[%c0_64, %c0_65] : memref<8x128xf32, #tpu.memory_space<vmem>>, vector<8x128xf32>
    %c0_66 = arith.constant 0 : index
    %c0_67 = arith.constant 0 : index
    %c0_68 = arith.constant 0 : index
    %160 = vector.load %arg13[%c0_66, %c0_67, %c0_68] : memref<1x128x128xbf16, #tpu.memory_space<vmem>>, vector<1x128x128xbf16>
    %161 = vector.shape_cast %160 : vector<1x128x128xbf16> to vector<128x128xbf16>
    %c0_69 = arith.constant 0 : index
    %c0_70 = arith.constant 0 : index
    %c0_71 = arith.constant 0 : index
    %162 = vector.load %arg14[%c0_69, %c0_70, %c0_71] : memref<1x1x128xf32, #tpu.memory_space<vmem>>, vector<1x1x128xf32>
    %163 = vector.shape_cast %162 : vector<1x1x128xf32> to vector<1x128xf32>
    %164 = arith.truncf %159 : vector<8x128xf32> to vector<8x128xbf16>
    %cst_72 = arith.constant dense<0.000000e+00> : vector<8x128xf32>
    %165 = tpu.matmul %164, %161, %cst_72 {dimension_numbers = #tpu.dot_dimension_numbers<[1], [0], [0], [1], [0, 0, 1, 1], [], []>} : vector<8x128xbf16>, vector<128x128xbf16>, vector<8x128xf32> -> vector<8x128xf32>
    %166 = vector.broadcast %163 : vector<1x128xf32> to vector<8x128xf32>
    %167 = arith.addf %165, %166 : vector<8x128xf32>
    %168 = arith.addf %3, %167 : vector<8x128xf32>
    %c0_73 = arith.constant 0 : index
    %c0_74 = arith.constant 0 : index
    %c0_75 = arith.constant 0 : index
    %169 = vector.load %arg15[%c0_73, %c0_74, %c0_75] : memref<1x1x128xf32, #tpu.memory_space<vmem>>, vector<1x1x128xf32>
    %170 = vector.shape_cast %169 : vector<1x1x128xf32> to vector<1x128xf32>
    %c0_76 = arith.constant 0 : index
    %c0_77 = arith.constant 0 : index
    %c0_78 = arith.constant 0 : index
    %171 = vector.load %arg16[%c0_76, %c0_77, %c0_78] : memref<1x1x128xf32, #tpu.memory_space<vmem>>, vector<1x1x128xf32>
    %172 = vector.shape_cast %171 : vector<1x1x128xf32> to vector<1x128xf32>
    %cst_79 = arith.constant dense<0.000000e+00> : vector<8xf32>
    %173 = vector.multi_reduction <add>, %168, %cst_79 [1] : vector<8x128xf32> to vector<8xf32>
    %174 = vector.shape_cast %173 : vector<8xf32> to vector<8x1xf32>
    %cst_80 = arith.constant 1.280000e+02 : f32
    %175 = vector.broadcast %cst_80 : f32 to vector<8x1xf32>
    %176 = arith.divf %174, %175 : vector<8x1xf32>
    %177 = vector.broadcast %176 : vector<8x1xf32> to vector<8x128xf32>
    %178 = arith.subf %168, %177 : vector<8x128xf32>
    %179 = arith.mulf %178, %178 : vector<8x128xf32>
    %cst_81 = arith.constant dense<0.000000e+00> : vector<8xf32>
    %180 = vector.multi_reduction <add>, %179, %cst_81 [1] : vector<8x128xf32> to vector<8xf32>
    %181 = vector.shape_cast %180 : vector<8xf32> to vector<8x1xf32>
    %cst_82 = arith.constant 1.280000e+02 : f32
    %182 = vector.broadcast %cst_82 : f32 to vector<8x1xf32>
    %183 = arith.divf %181, %182 : vector<8x1xf32>
    %cst_83 = arith.constant 9.99999974E-6 : f32
    %184 = vector.broadcast %cst_83 : f32 to vector<8x1xf32>
    %185 = arith.addf %183, %184 : vector<8x1xf32>
    %186 = math.rsqrt %185 : vector<8x1xf32>
    %187 = vector.broadcast %186 : vector<8x1xf32> to vector<8x128xf32>
    %188 = arith.mulf %178, %187 : vector<8x128xf32>
    %189 = vector.broadcast %170 : vector<1x128xf32> to vector<8x128xf32>
    %190 = arith.mulf %188, %189 : vector<8x128xf32>
    %191 = vector.broadcast %172 : vector<1x128xf32> to vector<8x128xf32>
    %192 = arith.addf %190, %191 : vector<8x128xf32>
    %c0_84 = arith.constant 0 : index
    %c0_85 = arith.constant 0 : index
    %c0_86 = arith.constant 0 : index
    %193 = vector.load %arg17[%c0_84, %c0_85, %c0_86] : memref<1x128x512xbf16, #tpu.memory_space<vmem>>, vector<1x128x512xbf16>
    %194 = vector.shape_cast %193 : vector<1x128x512xbf16> to vector<128x512xbf16>
    %c0_87 = arith.constant 0 : index
    %c0_88 = arith.constant 0 : index
    %c0_89 = arith.constant 0 : index
    %195 = vector.load %arg18[%c0_87, %c0_88, %c0_89] : memref<1x1x512xf32, #tpu.memory_space<vmem>>, vector<1x1x512xf32>
    %196 = vector.shape_cast %195 : vector<1x1x512xf32> to vector<1x512xf32>
    %c0_90 = arith.constant 0 : index
    %c0_91 = arith.constant 0 : index
    %c0_92 = arith.constant 0 : index
    %197 = vector.load %arg19[%c0_90, %c0_91, %c0_92] : memref<1x512x128xbf16, #tpu.memory_space<vmem>>, vector<1x512x128xbf16>
    %198 = vector.shape_cast %197 : vector<1x512x128xbf16> to vector<512x128xbf16>
    %c0_93 = arith.constant 0 : index
    %c0_94 = arith.constant 0 : index
    %c0_95 = arith.constant 0 : index
    %199 = vector.load %arg20[%c0_93, %c0_94, %c0_95] : memref<1x1x128xf32, #tpu.memory_space<vmem>>, vector<1x1x128xf32>
    %200 = vector.shape_cast %199 : vector<1x1x128xf32> to vector<1x128xf32>
    %201 = arith.truncf %192 : vector<8x128xf32> to vector<8x128xbf16>
    %cst_96 = arith.constant dense<0.000000e+00> : vector<8x512xf32>
    %202 = tpu.matmul %201, %194, %cst_96 {dimension_numbers = #tpu.dot_dimension_numbers<[1], [0], [0], [1], [0, 0, 1, 1], [], []>} : vector<8x128xbf16>, vector<128x512xbf16>, vector<8x512xf32> -> vector<8x512xf32>
    %203 = vector.broadcast %196 : vector<1x512xf32> to vector<8x512xf32>
    %204 = arith.addf %202, %203 : vector<8x512xf32>
    %205 = arith.mulf %204, %204 : vector<8x512xf32>
    %206 = arith.mulf %204, %205 : vector<8x512xf32>
    %cst_97 = arith.constant 4.471500e-02 : f32
    %207 = vector.broadcast %cst_97 : f32 to vector<8x512xf32>
    %208 = arith.mulf %207, %206 : vector<8x512xf32>
    %209 = arith.addf %204, %208 : vector<8x512xf32>
    %cst_98 = arith.constant 0.797884583 : f32
    %210 = vector.broadcast %cst_98 : f32 to vector<8x512xf32>
    %211 = arith.mulf %210, %209 : vector<8x512xf32>
    %212 = math.tanh %211 : vector<8x512xf32>
    %cst_99 = arith.constant 1.000000e+00 : f32
    %213 = vector.broadcast %cst_99 : f32 to vector<8x512xf32>
    %214 = arith.addf %213, %212 : vector<8x512xf32>
    %cst_100 = arith.constant 5.000000e-01 : f32
    %215 = vector.broadcast %cst_100 : f32 to vector<8x512xf32>
    %216 = arith.mulf %215, %214 : vector<8x512xf32>
    %217 = arith.mulf %204, %216 : vector<8x512xf32>
    %218 = arith.truncf %217 : vector<8x512xf32> to vector<8x512xbf16>
    %cst_101 = arith.constant dense<0.000000e+00> : vector<8x128xf32>
    %219 = tpu.matmul %218, %198, %cst_101 {dimension_numbers = #tpu.dot_dimension_numbers<[1], [0], [0], [1], [0, 0, 1, 1], [], []>} : vector<8x512xbf16>, vector<512x128xbf16>, vector<8x128xf32> -> vector<8x128xf32>
    %220 = vector.broadcast %200 : vector<1x128xf32> to vector<8x128xf32>
    %221 = arith.addf %219, %220 : vector<8x128xf32>
    %222 = arith.addf %168, %221 : vector<8x128xf32>
    %c0_102 = arith.constant 0 : index
    %c0_103 = arith.constant 0 : index
    %223 = vector.load %arg24[%c0_102, %c0_103] : memref<8x128xf32, #tpu.memory_space<vmem>>, vector<8x128xf32>
    tpu.vector_store %arg24[%c0_102, %c0_103], %222 {strides = array<i32>} : memref<8x128xf32, #tpu.memory_space<vmem>>, vector<8x128xf32>,
    %c1_i32 = arith.constant 1 : i32
    %224 = arith.cmpi eq, %arg1, %c1_i32 : i32
    %225 = arith.extui %224 : i1 to i32
    %c0_i32_104 = arith.constant 0 : i32
    %226 = arith.cmpi ne, %225, %c0_i32_104 : i32
    scf.if %226 {
      %c0_105 = arith.constant 0 : index
      %c0_106 = arith.constant 0 : index
      %227 = vector.load %arg21[%c0_105, %c0_106] : memref<1x128xf32, #tpu.memory_space<vmem>>, vector<1x128xf32>
      %c0_107 = arith.constant 0 : index
      %c0_108 = arith.constant 0 : index
      %228 = vector.load %arg22[%c0_107, %c0_108] : memref<1x128xf32, #tpu.memory_space<vmem>>, vector<1x128xf32>
      %cst_109 = arith.constant dense<0.000000e+00> : vector<8xf32>
      %229 = vector.multi_reduction <add>, %222, %cst_109 [1] : vector<8x128xf32> to vector<8xf32>
      %230 = vector.shape_cast %229 : vector<8xf32> to vector<8x1xf32>
      %cst_110 = arith.constant 1.280000e+02 : f32
      %231 = vector.broadcast %cst_110 : f32 to vector<8x1xf32>
      %232 = arith.divf %230, %231 : vector<8x1xf32>
      %233 = vector.broadcast %232 : vector<8x1xf32> to vector<8x128xf32>
      %234 = arith.subf %222, %233 : vector<8x128xf32>
      %235 = arith.mulf %234, %234 : vector<8x128xf32>
      %cst_111 = arith.constant dense<0.000000e+00> : vector<8xf32>
      %236 = vector.multi_reduction <add>, %235, %cst_111 [1] : vector<8x128xf32> to vector<8xf32>
      %237 = vector.shape_cast %236 : vector<8xf32> to vector<8x1xf32>
      %cst_112 = arith.constant 1.280000e+02 : f32
      %238 = vector.broadcast %cst_112 : f32 to vector<8x1xf32>
      %239 = arith.divf %237, %238 : vector<8x1xf32>
      %cst_113 = arith.constant 9.99999974E-6 : f32
      %240 = vector.broadcast %cst_113 : f32 to vector<8x1xf32>
      %241 = arith.addf %239, %240 : vector<8x1xf32>
      %242 = math.rsqrt %241 : vector<8x1xf32>
      %243 = vector.broadcast %242 : vector<8x1xf32> to vector<8x128xf32>
      %244 = arith.mulf %234, %243 : vector<8x128xf32>
      %245 = vector.broadcast %227 : vector<1x128xf32> to vector<8x128xf32>
      %246 = arith.mulf %244, %245 : vector<8x128xf32>
      %247 = vector.broadcast %228 : vector<1x128xf32> to vector<8x128xf32>
      %248 = arith.addf %246, %247 : vector<8x128xf32>
      %c0_114 = arith.constant 0 : index
      %c0_115 = arith.constant 0 : index
      %c0_116 = arith.constant 0 : index
      %249 = vector.load %arg23[%c0_114, %c0_115, %c0_116] : memref<1x8x128xf32, #tpu.memory_space<vmem>>, vector<1x8x128xf32>
      %250 = vector.shape_cast %249 : vector<1x8x128xf32> to vector<8x128xf32>
      %251 = vector.shape_cast %248 : vector<8x128xf32> to vector<1x8x128xf32>
      tpu.vector_store %arg23[%c0_114, %c0_115, %c0_116], %251 {strides = array<i32>} : memref<1x8x128xf32, #tpu.memory_space<vmem>>, vector<1x8x128xf32>,
    } else {
    }
    return
  }
  func.func @transform_0(%arg0: i32, %arg1: i32) -> (i32, i32, i32) {
    %c0_i32 = arith.constant 0 : i32
    %c0_i32_0 = arith.constant 0 : i32
    %c0_i32_1 = arith.constant 0 : i32
    return %arg0, %c0_i32, %c0_i32_0 : i32, i32, i32
  }
  func.func @transform_1(%arg0: i32, %arg1: i32) -> (i32, i32, i32) {
    %c0_i32 = arith.constant 0 : i32
    %c0_i32_0 = arith.constant 0 : i32
    %c0_i32_1 = arith.constant 0 : i32
    return %arg0, %c0_i32, %c0_i32_0 : i32, i32, i32
  }
  func.func @transform_2(%arg0: i32, %arg1: i32) -> (i32, i32, i32) {
    %c0_i32 = arith.constant 0 : i32
    %c0_i32_0 = arith.constant 0 : i32
    %c0_i32_1 = arith.constant 0 : i32
    return %arg0, %c0_i32, %c0_i32_0 : i32, i32, i32
  }
  func.func @transform_3(%arg0: i32, %arg1: i32) -> (i32, i32, i32) {
    %c0_i32 = arith.constant 0 : i32
    %c0_i32_0 = arith.constant 0 : i32
    %c0_i32_1 = arith.constant 0 : i32
    return %arg1, %c0_i32, %c0_i32_0 : i32, i32, i32
  }
  func.func @transform_4(%arg0: i32, %arg1: i32) -> (i32, i32, i32) {
    %c0_i32 = arith.constant 0 : i32
    %c0_i32_0 = arith.constant 0 : i32
    %c0_i32_1 = arith.constant 0 : i32
    return %arg1, %c0_i32, %c0_i32_0 : i32, i32, i32
  }
  func.func @transform_5(%arg0: i32, %arg1: i32) -> (i32, i32, i32) {
    %c0_i32 = arith.constant 0 : i32
    %c0_i32_0 = arith.constant 0 : i32
    %c0_i32_1 = arith.constant 0 : i32
    return %arg1, %c0_i32, %c0_i32_0 : i32, i32, i32
  }
  func.func @transform_6(%arg0: i32, %arg1: i32) -> (i32, i32, i32) {
    %c0_i32 = arith.constant 0 : i32
    %c0_i32_0 = arith.constant 0 : i32
    %c0_i32_1 = arith.constant 0 : i32
    return %arg1, %c0_i32, %c0_i32_0 : i32, i32, i32
  }
  func.func @transform_7(%arg0: i32, %arg1: i32) -> (i32, i32, i32) {
    %c0_i32 = arith.constant 0 : i32
    %c0_i32_0 = arith.constant 0 : i32
    %c0_i32_1 = arith.constant 0 : i32
    return %arg1, %c0_i32, %c0_i32_0 : i32, i32, i32
  }
  func.func @transform_8(%arg0: i32, %arg1: i32) -> (i32, i32, i32) {
    %c0_i32 = arith.constant 0 : i32
    %c0_i32_0 = arith.constant 0 : i32
    %c0_i32_1 = arith.constant 0 : i32
    return %arg1, %c0_i32, %c0_i32_0 : i32, i32, i32
  }
  func.func @transform_9(%arg0: i32, %arg1: i32) -> (i32, i32, i32) {
    %c0_i32 = arith.constant 0 : i32
    %c0_i32_0 = arith.constant 0 : i32
    %c0_i32_1 = arith.constant 0 : i32
    return %arg1, %c0_i32, %c0_i32_0 : i32, i32, i32
  }
  func.func @transform_10(%arg0: i32, %arg1: i32) -> (i32, i32, i32) {
    %c0_i32 = arith.constant 0 : i32
    %c0_i32_0 = arith.constant 0 : i32
    %c0_i32_1 = arith.constant 0 : i32
    return %arg1, %c0_i32, %c0_i32_0 : i32, i32, i32
  }
  func.func @transform_11(%arg0: i32, %arg1: i32) -> (i32, i32, i32) {
    %c0_i32 = arith.constant 0 : i32
    %c0_i32_0 = arith.constant 0 : i32
    %c0_i32_1 = arith.constant 0 : i32
    return %arg1, %c0_i32, %c0_i32_0 : i32, i32, i32
  }
  func.func @transform_12(%arg0: i32, %arg1: i32) -> (i32, i32, i32) {
    %c0_i32 = arith.constant 0 : i32
    %c0_i32_0 = arith.constant 0 : i32
    %c0_i32_1 = arith.constant 0 : i32
    return %arg1, %c0_i32, %c0_i32_0 : i32, i32, i32
  }
  func.func @transform_13(%arg0: i32, %arg1: i32) -> (i32, i32, i32) {
    %c0_i32 = arith.constant 0 : i32
    %c0_i32_0 = arith.constant 0 : i32
    %c0_i32_1 = arith.constant 0 : i32
    return %arg1, %c0_i32, %c0_i32_0 : i32, i32, i32
  }
  func.func @transform_14(%arg0: i32, %arg1: i32) -> (i32, i32, i32) {
    %c0_i32 = arith.constant 0 : i32
    %c0_i32_0 = arith.constant 0 : i32
    %c0_i32_1 = arith.constant 0 : i32
    return %arg1, %c0_i32, %c0_i32_0 : i32, i32, i32
  }
  func.func @transform_15(%arg0: i32, %arg1: i32) -> (i32, i32, i32) {
    %c0_i32 = arith.constant 0 : i32
    %c0_i32_0 = arith.constant 0 : i32
    %c0_i32_1 = arith.constant 0 : i32
    return %arg1, %c0_i32, %c0_i32_0 : i32, i32, i32
  }
  func.func @transform_16(%arg0: i32, %arg1: i32) -> (i32, i32, i32) {
    %c0_i32 = arith.constant 0 : i32
    %c0_i32_0 = arith.constant 0 : i32
    %c0_i32_1 = arith.constant 0 : i32
    return %arg1, %c0_i32, %c0_i32_0 : i32, i32, i32
  }
  func.func @transform_17(%arg0: i32, %arg1: i32) -> (i32, i32, i32) {
    %c0_i32 = arith.constant 0 : i32
    %c0_i32_0 = arith.constant 0 : i32
    %c0_i32_1 = arith.constant 0 : i32
    return %arg1, %c0_i32, %c0_i32_0 : i32, i32, i32
  }
  func.func @transform_18(%arg0: i32, %arg1: i32) -> (i32, i32, i32) {
    %c0_i32 = arith.constant 0 : i32
    %c0_i32_0 = arith.constant 0 : i32
    %c0_i32_1 = arith.constant 0 : i32
    return %arg1, %c0_i32, %c0_i32_0 : i32, i32, i32
  }
  func.func @transform_19(%arg0: i32, %arg1: i32) -> (i32, i32) {
    %c0_i32 = arith.constant 0 : i32
    %c0_i32_0 = arith.constant 0 : i32
    %c0_i32_1 = arith.constant 0 : i32
    return %c0_i32, %c0_i32_0 : i32, i32
  }
  func.func @transform_20(%arg0: i32, %arg1: i32) -> (i32, i32) {
    %c0_i32 = arith.constant 0 : i32
    %c0_i32_0 = arith.constant 0 : i32
    %c0_i32_1 = arith.constant 0 : i32
    return %c0_i32, %c0_i32_0 : i32, i32
  }
  func.func @transform_21(%arg0: i32, %arg1: i32) -> (i32, i32, i32) {
    %c0_i32 = arith.constant 0 : i32
    %c0_i32_0 = arith.constant 0 : i32
    %c0_i32_1 = arith.constant 0 : i32
    return %arg0, %c0_i32, %c0_i32_0 : i32, i32, i32
  }
}

</mosaic_0001>

<bundles_post_ra>
// kernel: linear_video_tokenizer_forward.3
= control target key start
LH: loop header
LB: loop body
LE: loop exit
PB: predicated region body
PF: predicated region fallthrough
CT: control target
= control target key end

     0   :  { %s1050_s0 = inlined_call_operand.hbm [shape: f32[8,16,128], index: 0, kind: input, shape index: {}]   ;;  %s1051_s1 = inlined_call_operand.vmem [shape: f32[1,1,128], index: 1, kind: input, shape index: {}]   ;;  %s1052_s2 = inlined_call_operand.<no memory space> [shape: f32[1,1], index: 2, kind: input, shape index: {}]   ;;  %s1053_s3 = inlined_call_operand.vmem [shape: f32[8,16], index: 3, kind: output, shape index: {}]  }
   0x1   :  { %v8_v0 = vstv %s1052_s2 }
   0x2   :  { %9 = vst [vmem:[#allocation2] sm:$0x1] %v8_v0 }
   0x3   :  { %10 = vsyncpa [#allocation4], 0  ;;  %s746_s14 = smov [#allocation3]  }
   0x4   :  { %s16_s15 = sshll.u32 %s746_s14, 4  ;;  %s17_s15 = int_to_ptr.vmem [resolvable:$true] %s16_s15 }
   0x5   :  { %s732_s16 = scalar_lea.vmem %s17_s15, 2048  ;;  %p737_p1 = scmp.lt.s32.totalorder %s17_s15, %s17_s15 }
   0x6   :  { %p733_p0 = scmp.ne.s32.totalorder %s17_s15, %s732_s16  ;;  %p738_p2 = scmp.lt.s32.totalorder %s732_s16, %s732_s16 }
   0x8   :  { %p739_p3 = por %p738_p2, %p737_p1 }
   0xa   :  { %p740_p4 = pnand %p739_p3, %p733_p0 }
   0xc   :  { %743 = shalt.err (!%p740_p4)
}
   0xd   :  { %s747_s17 = smov 128   ;;  %s748_s18 = smov 8  }
   0xe   :  { %22 = dma.hbm_to_vmem [thread:$0]  %s1050_s0, 2048, %s17_s15, [#allocation4], %s747_s17, %s747_s17, %s748_s18  }
   0xf   :  { %744 = dma.done.wait [#allocation4], 2048  }
  0x10   :  { %745 = vsyncadd [#allocation4], 4294965248  ;;  %v749_v1 = vmov 0   ;;  %v30_v2 = vld [vmem:[#allocation3] sm:$0xff]  ;;  %v682_v3 = vld [vmem:[%s1051_s1] ss:$0 sm:$0xff]  ;;  %v143_v47 = vlaneseq }
  0x11   :  { %688 = vset.pattern.permute.xlu0 %v749_v1  ;;  %689 = vset.pattern.permute.xlu1 %v749_v1  ;;  %v31_v4 = vld [vmem:[#allocation3 + $0x8] sm:$0xff]  ;;  %v53_v5 = vmul.f32 %v682_v3, %v30_v2  ;;  %v32_v6 = vld [vmem:[#allocation3 + $0x10] sm:$0xff]  ;;  %v33_v7 = vld [vmem:[#allocation3 + $0x18] sm:$0xff]  ;;  %vm154_vm0 = vcmask 130112   ;;  %vm219_vm1 = vcmask 1041409   ;;  %vm221_vm2 = vcmask 1042434  }
  0x12   :  { %v55_v8 = vmul.f32 %v682_v3, %v32_v6  ;;  %v54_v9 = vmul.f32 %v682_v3, %v31_v4  ;;  %v34_v10 = vld [vmem:[#allocation3 + $0x20] sm:$0xff]  ;;  %v56_v11 = vmul.f32 %v682_v3, %v33_v7  ;;  %v35_v12 = vld [vmem:[#allocation3 + $0x28] sm:$0xff]  ;;  %v36_v14 = vld [vmem:[#allocation3 + $0x30] sm:$0xff]  ;;  %v144_v50 = vand.u32 127, %v143_v47 }
  0x13   :  { %69 = vadd.xlane.f32.xlu0 %v53_v5  ;;  %v57_v13 = vmul.f32 %v682_v3, %v34_v10  ;;  %v58_v15 = vmul.f32 %v682_v3, %v35_v12  ;;  %v37_v16 = vld [vmem:[#allocation3 + $0x38] sm:$0xff]  ;;  %v59_v17 = vmul.f32 %v682_v3, %v36_v14  ;;  %v38_v18 = vld [vmem:[#allocation3 + $0x40] sm:$0xff]  ;;  %v39_v20 = vld [vmem:[#allocation3 + $0x48] sm:$0xff]  ;;  %v779_v52 = vshrl.u32 %v143_v47, 7 }
  0x14   :  { %73 = vadd.xlane.f32.xlu1 %v55_v8  ;;  %v60_v19 = vmul.f32 %v682_v3, %v37_v16  ;;  %v61_v21 = vmul.f32 %v682_v3, %v38_v18  ;;  %v40_v22 = vld [vmem:[#allocation3 + $0x50] sm:$0xff]  ;;  %v62_v23 = vmul.f32 %v682_v3, %v39_v20  ;;  %v41_v24 = vld [vmem:[#allocation3 + $0x58] sm:$0xff]  ;;  %v42_v26 = vld [vmem:[#allocation3 + $0x60] sm:$0xff]  ;;  %v149_v53 = vadd.s32 4294967288, %v144_v50 }
  0x15   :  { %v63_v25 = vmul.f32 %v682_v3, %v40_v22  ;;  %v64_v27 = vmul.f32 %v682_v3, %v41_v24  ;;  %v43_v28 = vld [vmem:[#allocation3 + $0x68] sm:$0xff]  ;;  %v65_v29 = vmul.f32 %v682_v3, %v42_v26  ;;  %v44_v30 = vld [vmem:[#allocation3 + $0x70] sm:$0xff]  ;;  %v45_v32 = vld [vmem:[#allocation3 + $0x78] sm:$0xff]  ;;  %v782_v56 = vsub.s32 %v144_v50, %v779_v52 }
  0x16   :  { %v66_v31 = vmul.f32 %v682_v3, %v43_v28  ;;  %v67_v33 = vmul.f32 %v682_v3, %v44_v30  ;;  %v68_v34 = vmul.f32 %v682_v3, %v45_v32  ;;  %v683_v35 = vld [vmem:[#allocation2] ss:$0 sm:$0xff]  ;;  %v785_v57 = vsub.s32 %v149_v53, %v779_v52 }
  0x17   :  { %71 = vadd.xlane.f32.xlu0 %v54_v9  ;;  %vm223_vm3 = vcmask 1043459   ;;  %vm225_vm4 = vcmask 1044484   ;;  %vm227_vm5 = vcmask 1045509   ;;  %vm229_vm6 = vcmask 1046534  }
  0x18   :  { %75 = vadd.xlane.f32.xlu1 %v56_v11  ;;  %vm231_vm7 = vcmask 1047559   ;;  %vm234_vm8 = vcmask 130048  }
  0x1b   :  { %77 = vadd.xlane.f32.xlu0 %v57_v13 }
  0x1c   :  { %79 = vadd.xlane.f32.xlu1 %v58_v15 }
  0x1f   :  { %81 = vadd.xlane.f32.xlu0 %v59_v17 }
  0x20   :  { %83 = vadd.xlane.f32.xlu1 %v60_v19 }
  0x23   :  { %85 = vadd.xlane.f32.xlu0 %v61_v21 }
  0x24   :  { %87 = vadd.xlane.f32.xlu1 %v62_v23 }
  0x27   :  { %89 = vadd.xlane.f32.xlu0 %v63_v25 }
  0x28   :  { %91 = vadd.xlane.f32.xlu1 %v64_v27 }
  0x2b   :  { %93 = vadd.xlane.f32.xlu0 %v65_v29 }
  0x2c   :  { %95 = vadd.xlane.f32.xlu1 %v66_v31 }
  0x2f   :  { %97 = vadd.xlane.f32.xlu0 %v67_v33 }
  0x30   :  { %99 = vadd.xlane.f32.xlu1 %v68_v34 }
  0x45   :  { %108 = vperm.xlu0 %688, %v683_v35  }
  0x9c   :  { %v70_v36 = vpop.xlane.xlu0 %69 }
  0x9d   :  { %v74_v37 = vpop.xlane.xlu1 %73 }
  0xa0   :  { %v72_v38 = vpop.xlane.xlu0 %71 }
  0xa1   :  { %v76_v39 = vpop.xlane.xlu1 %75 }
  0xa4   :  { %v78_v40 = vpop.xlane.xlu0 %77 }
  0xa5   :  { %v80_v41 = vpop.xlane.xlu1 %79 }
  0xa8   :  { %v82_v42 = vpop.xlane.xlu0 %81 }
  0xa9   :  { %v84_v43 = vpop.xlane.xlu1 %83 }
  0xac   :  { %v86_v44 = vpop.xlane.xlu0 %85 }
  0xad   :  { %v88_v46 = vpop.xlane.xlu1 %87 }
  0xb0   :  { %v90_v45 = vpop.xlane.xlu0 %89 }
  0xb1   :  { %v92_v49 = vpop.xlane.xlu1 %91 }
  0xb4   :  { %v94_v48 = vpop.xlane.xlu0 %93 }
  0xb5   :  { %v96_v54 = vpop.xlane.xlu1 %95 }
  0xb8   :  { %v98_v51 = vpop.xlane.xlu0 %97 }
  0xb9   :  { %v100_v0 = vpop.xlane.xlu1 %99 }
  0xc0   :  { %v109_v55 = vpop.permute.xlu0 %108 }
  0xc1   :  { %v787_v58 = vadd.f32 %v109_v55, %v70_v36  ;;  %v789_v59 = vadd.f32 %v109_v55, %v72_v38  ;;  %v791_v60 = vadd.f32 %v109_v55, %v74_v37  ;;  %v793_v61 = vadd.f32 %v109_v55, %v76_v39 }
  0xc2   :  { %v795_v62 = vadd.f32 %v109_v55, %v78_v40  ;;  %v797_v63 = vadd.f32 %v109_v55, %v80_v41  ;;  %v799_v1 = vadd.f32 %v109_v55, %v82_v42  ;;  %v801_v2 = vadd.f32 %v109_v55, %v84_v43 }
  0xc3   :  { %v803_v3 = vadd.f32 %v109_v55, %v86_v44  ;;  %v805_v4 = vadd.f32 %v109_v55, %v88_v46  ;;  %v807_v5 = vadd.f32 %v109_v55, %v90_v45  ;;  %v809_v6 = vadd.f32 %v109_v55, %v92_v49 }
  0xc4   :  { %v811_v7 = vadd.f32 %v109_v55, %v94_v48  ;;  %v813_v8 = vadd.f32 %v109_v55, %v96_v54  ;;  %v148_v9 = vrot.slane %v787_v58, %v782_v56  ;;  %v153_v10 = vrot.slane %v789_v59, %v785_v57 }
  0xc5   :  { %v159_v11 = vrot.slane %v791_v60, %v782_v56  ;;  %v163_v12 = vrot.slane %v793_v61, %v785_v57  ;;  %v823_v13 = vadd.f32 %v109_v55, %v98_v51  ;;  %v825_v14 = vadd.f32 %v109_v55, %v100_v0 }
  0xc6   :  { %v168_v15 = vrot.slane %v795_v62, %v782_v56  ;;  %v172_v16 = vrot.slane %v797_v63, %v785_v57  ;;  %v155_v17 = vsel %vm154_vm0, %v153_v10, %v148_v9  ;;  %v177_v19 = vrot.slane %v799_v1, %v782_v56 }
  0xc7   :  { %v164_v18 = vsel %vm154_vm0, %v163_v12, %v159_v11  ;;  %v181_v20 = vrot.slane %v801_v2, %v785_v57  ;;  %v186_v22 = vrot.slane %v803_v3, %v782_v56  ;;  %v190_v23 = vrot.slane %v805_v4, %v785_v57 }
  0xc8   :  { %v173_v21 = vsel %vm154_vm0, %v172_v16, %v168_v15  ;;  %v195_v24 = vrot.slane %v807_v5, %v782_v56  ;;  %v199_v25 = vrot.slane %v809_v6, %v785_v57  ;;  %v204_v26 = vrot.slane %v811_v7, %v782_v56 }
  0xc9   :  { %v208_v27 = vrot.slane %v813_v8, %v785_v57  ;;  %v220_v28 = vsel %vm219_vm1, %v164_v18, %v155_v17  ;;  %v182_v29 = vsel %vm154_vm0, %v181_v20, %v177_v19  ;;  %v213_v30 = vrot.slane %v823_v13, %v782_v56 }
  0xca   :  { %v217_v31 = vrot.slane %v825_v14, %v785_v57  ;;  %v222_v32 = vsel %vm221_vm2, %v173_v21, %v220_v28  ;;  %v191_v33 = vsel %vm154_vm0, %v190_v23, %v186_v22  ;;  %v200_v35 = vsel %vm154_vm0, %v199_v25, %v195_v24 }
  0xcb   :  { %v224_v34 = vsel %vm223_vm3, %v182_v29, %v222_v32  ;;  %v209_v37 = vsel %vm154_vm0, %v208_v27, %v204_v26  ;;  %v241_v43 = vsub.s32 0, %v779_v52  ;;  %v253_v44 = vsub.s32 3, %v779_v52 }
  0xcc   :  { %v226_v36 = vsel %vm225_vm4, %v191_v33, %v224_v34  ;;  %v218_v39 = vsel %vm154_vm0, %v217_v31, %v213_v30  ;;  %v245_v46 = vsub.s32 1, %v779_v52  ;;  %v257_v49 = vsub.s32 4, %v779_v52 }
  0xcd   :  { %v228_v38 = vsel %vm227_vm5, %v200_v35, %v226_v36  ;;  %v261_v55 = vsub.s32 5, %v779_v52  ;;  %v265_v12 = vsub.s32 6, %v779_v52  ;;  %v269_v19 = vsub.s32 7, %v779_v52 }
  0xce   :  { %v230_v40 = vsel %vm229_vm6, %v209_v37, %v228_v38 }
  0xcf   :  { %v232_v41 = vsel %vm231_vm7, %v218_v39, %v230_v40 }
  0xd0   :  { %v235_v42 = vsel %vm234_vm8, %v232_v41, -inf }
  0xd1   :  { %236 = vmax.xlane.f32.xlu1 %v235_v42 }
 0x15a   :  { %v237_v45 = vpop.xlane.xlu1 %236 }
 0x15b   :  { %v242_v47 = vrot.slane %v237_v45, %v241_v43  ;;  %v254_v50 = vrot.slane %v237_v45, %v253_v44  ;;  %v246_v51 = vrot.slane %v237_v45, %v245_v46  ;;  %v258_v0 = vrot.slane %v237_v45, %v257_v49 }
 0x15c   :  { %v262_v15 = vrot.slane %v237_v45, %v261_v55  ;;  %v270_v23 = vrot.slane %v237_v45, %v269_v19 }
 0x15d   :  { %v279_v48 = vsub.f32 %v787_v58, %v242_v47  ;;  %v280_v53 = vsub.f32 %v789_v59, %v242_v47  ;;  %v286_v9 = vsub.f32 %v801_v2, %v254_v50  ;;  %v249_v58 = vsub.s32 2, %v779_v52 }
 0x15e   :  { %v281_v10 = vsub.f32 %v791_v60, %v246_v51  ;;  %v288_v59 = vsub.f32 %v805_v4, %v258_v0  ;;  %v282_v18 = vsub.f32 %v793_v61, %v246_v51  ;;  %v266_v60 = vrot.slane %v237_v45, %v265_v12 }
 0x15f   :  { %v295_v54 = vmul.f32 1.442695, %v279_v48  ;;  %v297_v11 = vmul.f32 1.442695, %v280_v53  ;;  %v309_v16 = vmul.f32 1.442695, %v286_v9  ;;  %v250_v17 = vrot.slane %v237_v45, %v249_v58 }
 0x160   :  { %v299_v2 = vmul.f32 1.442695, %v281_v10  ;;  %v290_v20 = vsub.f32 %v809_v6, %v262_v15  ;;  %v313_v21 = vmul.f32 1.442695, %v288_v59  ;;  %v301_v4 = vmul.f32 1.442695, %v282_v18 }
 0x161   :  { %690 = vpow2.f32 %v295_v54  ;;  %v283_v22 = vsub.f32 %v795_v62, %v250_v17  ;;  %v292_v61 = vsub.f32 %v813_v8, %v266_v60  ;;  %v284_v25 = vsub.f32 %v797_v63, %v250_v17 }
 0x162   :  { %692 = vpow2.f32 %v297_v11  ;;  %v317_v24 = vmul.f32 1.442695, %v290_v20  ;;  %v294_v6 = vsub.f32 %v825_v14, %v270_v23  ;;  %v285_v28 = vsub.f32 %v799_v1, %v254_v50 }
 0x163   :  { %694 = vpow2.f32 %v309_v16  ;;  %v303_v26 = vmul.f32 1.442695, %v283_v22  ;;  %v321_v62 = vmul.f32 1.442695, %v292_v61  ;;  %v305_v29 = vmul.f32 1.442695, %v284_v25 }
 0x164   :  { %696 = vpow2.f32 %v299_v2  ;;  %v325_v63 = vmul.f32 1.442695, %v294_v6  ;;  %v287_v31 = vsub.f32 %v803_v3, %v258_v0  ;;  %v307_v32 = vmul.f32 1.442695, %v285_v28 }
 0x165   :  { %698 = vpow2.f32 %v313_v21  ;;  %v289_v14 = vsub.f32 %v807_v5, %v262_v15  ;;  %v291_v36 = vsub.f32 %v811_v7, %v266_v60  ;;  %v293_v39 = vsub.f32 %v823_v13, %v270_v23 }
 0x166   :  { %700 = vpow2.f32 %v301_v4  ;;  %v311_v34 = vmul.f32 1.442695, %v287_v31 }
 0x167   :  { %702 = vpow2.f32 %v317_v24  ;;  %v315_v37 = vmul.f32 1.442695, %v289_v14  ;;  %v319_v40 = vmul.f32 1.442695, %v291_v36  ;;  %v323_v42 = vmul.f32 1.442695, %v293_v39 }
 0x168   :  { %704 = vpow2.f32 %v303_v26 }
 0x169   :  { %706 = vpow2.f32 %v321_v62 }
 0x16a   :  { %708 = vpow2.f32 %v305_v29 }
 0x16b   :  { %710 = vpow2.f32 %v325_v63 }
 0x16c   :  { %712 = vpow2.f32 %v307_v32 }
 0x16d   :  { %714 = vpow2.f32 %v311_v34 }
 0x16e   :  { %v901_v27 = vpop.eup %690  ;;  %716 = vpow2.f32 %v315_v37 }
 0x16f   :  { %344 = vperm.xlu1 %689, %v901_v27   ;;  %v906_v30 = vpop.eup %692  ;;  %718 = vpow2.f32 %v319_v40 }
 0x170   :  { %v909_v8 = vpop.eup %694  ;;  %720 = vpow2.f32 %v323_v42 }
 0x171   :  { %v912_v33 = vpop.eup %696  ;;  %365 = vperm.xlu0 %688, %v909_v8  }
 0x172   :  { %v916_v1 = vpop.eup %698 }
 0x173   :  { %347 = vperm.xlu1 %689, %v906_v30   ;;  %v919_v35 = vpop.eup %700 }
 0x174   :  { %v923_v3 = vpop.eup %702 }
 0x175   :  { %371 = vperm.xlu0 %688, %v916_v1   ;;  %v926_v38 = vpop.eup %704 }
 0x176   :  { %v930_v5 = vpop.eup %706 }
 0x177   :  { %350 = vperm.xlu1 %689, %v912_v33   ;;  %v933_v41 = vpop.eup %708 }
 0x178   :  { %v937_v7 = vpop.eup %710 }
 0x179   :  { %377 = vperm.xlu0 %688, %v923_v3   ;;  %v939_v45 = vpop.eup %712 }
 0x17a   :  { %v943_v13 = vpop.eup %714 }
 0x17b   :  { %353 = vperm.xlu1 %689, %v919_v35   ;;  %v946_v47 = vpop.eup %716 }
 0x17c   :  { %v949_v48 = vpop.eup %718 }
 0x17d   :  { %383 = vperm.xlu0 %688, %v930_v5   ;;  %v721_v50 = vpop.eup %720 }
 0x17f   :  { %356 = vperm.xlu1 %689, %v926_v38  }
 0x181   :  { %389 = vperm.xlu0 %688, %v937_v7  }
 0x183   :  { %359 = vperm.xlu1 %689, %v933_v41  }
 0x187   :  { %362 = vperm.xlu1 %689, %v939_v45  }
 0x18b   :  { %368 = vperm.xlu1 %689, %v943_v13  }
 0x18f   :  { %374 = vperm.xlu1 %689, %v946_v47  }
 0x193   :  { %380 = vperm.xlu1 %689, %v949_v48  }
 0x197   :  { %386 = vperm.xlu1 %689, %v721_v50  }
 0x1ea   :  { %v345_v51 = vpop.permute.xlu1 %344 }
 0x1eb   :  { %v394_v25 = vrot.slane %v345_v51, %v782_v56 }
 0x1ec   :  { %v366_v9 = vpop.permute.xlu0 %365 }
 0x1ed   :  { %v425_v24 = vrot.slane %v366_v9, %v785_v57 }
 0x1ee   :  { %v348_v53 = vpop.permute.xlu1 %347 }
 0x1ef   :  { %v398_v21 = vrot.slane %v348_v53, %v785_v57 }
 0x1f0   :  { %v372_v11 = vpop.permute.xlu0 %371 }
 0x1f1   :  { %v434_v62 = vrot.slane %v372_v11, %v785_v57  ;;  %v399_v63 = vsel %vm154_vm0, %v398_v21, %v394_v25 }
 0x1f2   :  { %v351_v54 = vpop.permute.xlu1 %350 }
 0x1f3   :  { %v403_v22 = vrot.slane %v351_v54, %v782_v56 }
 0x1f4   :  { %v378_v16 = vpop.permute.xlu0 %377 }
 0x1f5   :  { %v443_v31 = vrot.slane %v378_v16, %v785_v57 }
 0x1f6   :  { %v354_v0 = vpop.permute.xlu1 %353 }
 0x1f7   :  { %v407_v18 = vrot.slane %v354_v0, %v785_v57 }
 0x1f8   :  { %v384_v2 = vpop.permute.xlu0 %383 }
 0x1f9   :  { %v408_v26 = vsel %vm154_vm0, %v407_v18, %v403_v22  ;;  %v452_v34 = vrot.slane %v384_v2, %v785_v57 }
 0x1fa   :  { %v357_v10 = vpop.permute.xlu1 %356  ;;  %v463_v36 = vsel %vm219_vm1, %v408_v26, %v399_v63 }
 0x1fb   :  { %v412_v23 = vrot.slane %v357_v10, %v782_v56 }
 0x1fc   :  { %v390_v37 = vpop.permute.xlu0 %389 }
 0x1fd   :  { %v461_v0 = vrot.slane %v390_v37, %v785_v57 }
 0x1fe   :  { %v360_v15 = vpop.permute.xlu1 %359 }
 0x1ff   :  { %v416_v60 = vrot.slane %v360_v15, %v785_v57 }
 0x201   :  { %v417_v28 = vsel %vm154_vm0, %v416_v60, %v412_v23 }
 0x202   :  { %v363_v59 = vpop.permute.xlu1 %362  ;;  %v464_v40 = vsel %vm221_vm2, %v417_v28, %v463_v36 }
 0x203   :  { %v421_v4 = vrot.slane %v363_v59, %v782_v56 }
 0x205   :  { %v426_v32 = vsel %vm154_vm0, %v425_v24, %v421_v4 }
 0x206   :  { %v369_v17 = vpop.permute.xlu1 %368  ;;  %v465_v51 = vsel %vm223_vm3, %v426_v32, %v464_v40 }
 0x207   :  { %v430_v61 = vrot.slane %v369_v17, %v782_v56 }
 0x209   :  { %v435_v39 = vsel %vm154_vm0, %v434_v62, %v430_v61 }
 0x20a   :  { %v375_v20 = vpop.permute.xlu1 %374  ;;  %v466_v9 = vsel %vm225_vm4, %v435_v39, %v465_v51 }
 0x20b   :  { %v439_v6 = vrot.slane %v375_v20, %v782_v56 }
 0x20d   :  { %v444_v42 = vsel %vm154_vm0, %v443_v31, %v439_v6 }
 0x20e   :  { %v381_v29 = vpop.permute.xlu1 %380  ;;  %v467_v11 = vsel %vm227_vm5, %v444_v42, %v466_v9 }
 0x20f   :  { %v448_v14 = vrot.slane %v381_v29, %v782_v56 }
 0x211   :  { %v453_v53 = vsel %vm154_vm0, %v452_v34, %v448_v14 }
 0x212   :  { %v387_v54 = vpop.permute.xlu1 %386  ;;  %v468_v59 = vsel %vm229_vm6, %v453_v53, %v467_v11 }
 0x213   :  { %v457_v10 = vrot.slane %v387_v54, %v782_v56 }
 0x215   :  { %v462_v15 = vsel %vm154_vm0, %v461_v0, %v457_v10 }
 0x216   :  { %v469_v16 = vsel %vm231_vm7, %v462_v15, %v468_v59 }
 0x217   :  { %v471_v17 = vsel %vm234_vm8, %v469_v16, 0.0 }
 0x218   :  { %472 = vadd.xlane.f32.xlu1 %v471_v17 }
 0x2a1   :  { %v473_v18 = vpop.xlane.xlu1 %472 }
 0x2a2   :  { %722 = vrcp.f32 %v473_v18 }
 0x2af   :  { %v723_v2 = vpop.eup %722 }
 0x2b0   :  { %v495_v60 = vrot.slane %v723_v2, %v257_v49  ;;  %v479_v20 = vrot.slane %v723_v2, %v241_v43  ;;  %v507_v4 = vrot.slane %v723_v2, %v269_v19  ;;  %v483_v24 = vrot.slane %v723_v2, %v245_v46 }
 0x2b2   :  { %v525_v21 = vmul.f32 %v916_v1, %v495_v60  ;;  %v516_v22 = vmul.f32 %v901_v27, %v479_v20  ;;  %v530_v23 = vmul.f32 %v721_v50, %v507_v4  ;;  %v517_v61 = vmul.f32 %v906_v30, %v479_v20 }
 0x2b3   :  { %v518_v49 = vmul.f32 %v912_v33, %v483_v24  ;;  %v519_v43 = vmul.f32 %v919_v35, %v483_v24  ;;  %v487_v27 = vrot.slane %v723_v2, %v249_v58  ;;  %v491_v30 = vrot.slane %v723_v2, %v253_v44 }
 0x2b4   :  { %576 = vperm.xlu1 %689, %v525_v21   ;;  %549 = vperm.xlu0 %688, %v516_v22   ;;  %v524_v35 = vmul.f32 %v943_v13, %v495_v60  ;;  %v499_v58 = vrot.slane %v723_v2, %v261_v55  ;;  %v503_v44 = vrot.slane %v723_v2, %v265_v12 }
 0x2b5   :  { %v520_v19 = vmul.f32 %v926_v38, %v487_v27  ;;  %v521_v1 = vmul.f32 %v933_v41, %v487_v27  ;;  %v522_v46 = vmul.f32 %v939_v45, %v491_v30  ;;  %v523_v33 = vmul.f32 %v909_v8, %v491_v30 }
 0x2b6   :  { %v526_v38 = vmul.f32 %v946_v47, %v499_v58  ;;  %v527_v41 = vmul.f32 %v923_v3, %v499_v58  ;;  %v528_v45 = vmul.f32 %v949_v48, %v503_v44  ;;  %v529_v8 = vmul.f32 %v930_v5, %v503_v44 }
 0x2b7   :  { %v531_v13 = vmul.f32 %v937_v7, %v507_v4 }
 0x2b8   :  { %591 = vperm.xlu1 %689, %v530_v23   ;;  %552 = vperm.xlu0 %688, %v517_v61  }
 0x2bc   :  { %555 = vperm.xlu0 %688, %v518_v49  }
 0x2c0   :  { %558 = vperm.xlu0 %688, %v519_v43  }
 0x2c4   :  { %561 = vperm.xlu0 %688, %v520_v19  }
 0x2c8   :  { %564 = vperm.xlu0 %688, %v521_v1  }
 0x2cc   :  { %567 = vperm.xlu0 %688, %v522_v46  }
 0x2d0   :  { %570 = vperm.xlu0 %688, %v523_v33  }
 0x2d4   :  { %573 = vperm.xlu0 %688, %v524_v35  }
 0x2d8   :  { %579 = vperm.xlu0 %688, %v526_v38  }
 0x2dc   :  { %582 = vperm.xlu0 %688, %v527_v41  }
 0x2e0   :  { %585 = vperm.xlu0 %688, %v528_v45  }
 0x2e4   :  { %588 = vperm.xlu0 %688, %v529_v8  }
 0x2e8   :  { %594 = vperm.xlu0 %688, %v531_v13  }
 0x32f   :  { %v550_v55 = vpop.permute.xlu0 %549  ;;  %v577_v29 = vpop.permute.xlu1 %576 }
 0x330   :  { %v599_v36 = vrot.slane %v550_v55, %v782_v56  ;;  %v639_v42 = vrot.slane %v577_v29, %v785_v57 }
 0x333   :  { %v553_v50 = vpop.permute.xlu0 %552  ;;  %v592_v11 = vpop.permute.xlu1 %591 }
 0x334   :  { %v603_v7 = vrot.slane %v553_v50, %v785_v57  ;;  %v662_v21 = vrot.slane %v592_v11, %v782_v56 }
 0x336   :  { %v604_v54 = vsel %vm154_vm0, %v603_v7, %v599_v36 }
 0x337   :  { %v556_v25 = vpop.permute.xlu0 %555 }
 0x338   :  { %v608_v31 = vrot.slane %v556_v25, %v782_v56 }
 0x33b   :  { %v559_v47 = vpop.permute.xlu0 %558 }
 0x33c   :  { %v612_v48 = vrot.slane %v559_v47, %v785_v57 }
 0x33e   :  { %v613_v37 = vsel %vm154_vm0, %v612_v48, %v608_v31 }
 0x33f   :  { %v562_v26 = vpop.permute.xlu0 %561  ;;  %v668_v15 = vsel %vm219_vm1, %v613_v37, %v604_v54 }
 0x340   :  { %v617_v14 = vrot.slane %v562_v26, %v782_v56 }
 0x343   :  { %v565_v6 = vpop.permute.xlu0 %564 }
 0x344   :  { %v621_v5 = vrot.slane %v565_v6, %v785_v57 }
 0x346   :  { %v622_v51 = vsel %vm154_vm0, %v621_v5, %v617_v14 }
 0x347   :  { %v568_v3 = vpop.permute.xlu0 %567  ;;  %v669_v17 = vsel %vm221_vm2, %v622_v51, %v668_v15 }
 0x348   :  { %v626_v39 = vrot.slane %v568_v3, %v782_v56 }
 0x34b   :  { %v571_v62 = vpop.permute.xlu0 %570 }
 0x34c   :  { %v630_v32 = vrot.slane %v571_v62, %v785_v57 }
 0x34e   :  { %v631_v0 = vsel %vm154_vm0, %v630_v32, %v626_v39 }
 0x34f   :  { %v574_v52 = vpop.permute.xlu0 %573  ;;  %v670_v2 = vsel %vm223_vm3, %v631_v0, %v669_v17 }
 0x350   :  { %v635_v34 = vrot.slane %v574_v52, %v782_v56 }
 0x352   :  { %v640_v59 = vsel %vm154_vm0, %v639_v42, %v635_v34 }
 0x353   :  { %v580_v12 = vpop.permute.xlu0 %579  ;;  %v671_v22 = vsel %vm225_vm4, %v640_v59, %v670_v2 }
 0x354   :  { %v644_v9 = vrot.slane %v580_v12, %v782_v56 }
 0x357   :  { %v583_v28 = vpop.permute.xlu0 %582 }
 0x358   :  { %v648_v40 = vrot.slane %v583_v28, %v785_v57 }
 0x35a   :  { %v649_v18 = vsel %vm154_vm0, %v648_v40, %v644_v9 }
 0x35b   :  { %v586_v63 = vpop.permute.xlu0 %585  ;;  %v672_v23 = vsel %vm227_vm5, %v649_v18, %v671_v22 }
 0x35c   :  { %v653_v16 = vrot.slane %v586_v63, %v782_v56 }
 0x35f   :  { %v589_v53 = vpop.permute.xlu0 %588 }
 0x360   :  { %v657_v10 = vrot.slane %v589_v53, %v785_v57 }
 0x362   :  { %v658_v60 = vsel %vm154_vm0, %v657_v10, %v653_v16 }
 0x363   :  { %v595_v20 = vpop.permute.xlu0 %594  ;;  %v673_v61 = vsel %vm229_vm6, %v658_v60, %v672_v23 }
 0x364   :  { %v666_v4 = vrot.slane %v595_v20, %v785_v57 }
 0x366   :  { %v667_v24 = vsel %vm154_vm0, %v666_v4, %v662_v21 }
 0x367   :  { %v674_v49 = vsel %vm231_vm7, %v667_v24, %v673_v61 }
 0x368   :  { %676 = vst.msk [vmem:[%s1053_s3] sm:$0xff] %vm234_vm8, %v674_v49 }
 0x369   :  { %681 = vsyncpa [#allocation4], 1 }

// kernel: linear_video_tokenizer_forward.4
= control target key start
LH: loop header
LB: loop body
LE: loop exit
PB: predicated region body
PF: predicated region fallthrough
CT: control target
= control target key end

     0   :  { %s4717_s0 = inlined_call_operand.vmem [shape: f32[2,32,128], index: 0, kind: input, shape index: {}]   ;;  %s4718_s1 = inlined_call_operand.vmem [shape: f32[2,1,128], index: 1, kind: input, shape index: {}]   ;;  %s4719_s2 = inlined_call_operand.vmem [shape: f32[2,1,128], index: 2, kind: input, shape index: {}]   ;;  %s4720_s3 = inlined_call_operand.hbm [shape: bf16[2,128,384], index: 3, kind: input, shape index: {}]   ;;  %s4721_s4 = inlined_call_operand.vmem [shape: f32[2,1,384], index: 4, kind: input, shape index: {}]   ;;  %s4722_s5 = inlined_call_operand.vmem [shape: bf16[2,128,128], index: 5, kind: input, shape index: {}]   ;;  %s4723_s6 = inlined_call_operand.vmem [shape: f32[2,1,128], index: 6, kind: input, shape index: {}]   ;;  %s4724_s7 = inlined_call_operand.vmem [shape: f32[2,1,128], index: 7, kind: input, shape index: {}]   ;;  %s4725_s8 = inlined_call_operand.vmem [shape: f32[2,1,128], index: 8, kind: input, shape index: {}]   ;;  %s4726_s9 = inlined_call_operand.vmem [shape: bf16[2,128,512], index: 9, kind: input, shape index: {}]   ;;  %s4727_s10 = inlined_call_operand.vmem [shape: f32[2,1,512], index: 10, kind: input, shape index: {}]   ;;  %s4728_s11 = inlined_call_operand.hbm [shape: bf16[2,512,128], index: 11, kind: input, shape index: {}]   ;;  %s4729_s12 = inlined_call_operand.vmem [shape: f32[2,1,128], index: 12, kind: input, shape index: {}]   ;;  %s4730_s13 = inlined_call_operand.vmem [shape: f32[2,32,128], index: 13, kind: output, shape index: {}]  }
   0x1   :  { %4738 = sst [smem:[#allocation19_spill]] %s4717_s0 }
   0x2   :  { %4739 = sst [smem:[#allocation20_spill]] %s4720_s3 }
   0x3   :  { %4740 = sst [smem:[#allocation21_spill]] %s4721_s4 }
   0x4   :  { %4741 = sst [smem:[#allocation22_spill]] %s4722_s5 }
   0x5   :  { %4742 = sst [smem:[#allocation23_spill]] %s4725_s8 }
   0x6   :  { %4743 = sst [smem:[#allocation24_spill]] %s4726_s9 }
   0x7   :  { %4744 = sst [smem:[#allocation25_spill]] %s4727_s10 }
   0x8   :  { %4745 = sst [smem:[#allocation26_spill]] %s4728_s11 }
   0x9   :  { %4746 = sst [smem:[#allocation27_spill]] %s4729_s12 }
   0xa   :  { %4747 = sst [smem:[#allocation28_spill]] %s4730_s13 }
   0xb   :  { %18 = vsyncpa [#allocation5], 0 }
   0xc   :  { %20 = vsyncpa [#allocation5 + $0x1], 0 }
   0xd   :  { %21 = vsyncpa [#allocation7], 0 }
   0xe   :  { %23 = vsyncpa [#allocation7 + $0x1], 0  ;;  %s4002_s25 = smov 0   ;;  %s4004_s26 = smov 0  }
   0xf   :  { %s4006_s27 = smov 0   ;;  %s4008_s28 = smov 0  }
  0x10   :  { %s4010_s29 = smov 0   ;;  %s4012_s30 = smov 0  }
  0x11   :  { %s4014_s14 = smov 0   ;;  %s4016_s15 = smov 0  }
  0x12 LB: > { %4748 = sst [smem:[#allocation10_spill]] %s3896_s26  ;;  %s3104_s16 = sadd.s32 4294967295, %s3920_s15   ;;  %s3920_s15 = sphi %s4016_s15, %s29_s15   ;;  %s3916_s14 = sphi %s4014_s14, %s4784_s14   ;;  %s3912_s30 = sphi %s4012_s30, %s4783_s30   ;;  %s3908_s29 = sphi %s4010_s29, %s4782_s29   ;;  %s3904_s28 = sphi %s4008_s28, %s4781_s28   ;;  %s3900_s27 = sphi %s4006_s27, %s4780_s27   ;;  %s3896_s26 = sphi %s4004_s26, %s4779_s26   ;;  %s3892_s25 = sphi %s4002_s25, %s4778_s25  }
  0x13   : > { %4749 = sst [smem:[#allocation11_spill]] %s3900_s27  ;;  %s38_s17 = sadd.s32 1, %s3912_s30 }
  0x14   : > { %4750 = sst [smem:[#allocation12_spill]] %s3912_s30  ;;  %p39_p0 = scmp.ge.s32.totalorder %s38_s17, 2 }
  0x15   : > { %4751 = sst [smem:[#allocation13_spill]] %s3916_s14  ;;  %s41_s18 = sadd.s32 1, %s3916_s14 }
  0x16   : > { %4752 = sst [smem:[#allocation14_spill]] %s3920_s15  ;;  %s126_s19 = sadd.s32 1, %s3900_s27 }
  0x17   : > { %p133_p1 = scmp.ne.s32.totalorder %s3900_s27, %s3896_s26  ;;  %s4786_s17 = smov (%p39_p0, %s38_s17), 0 }
  0x18   : > { %4753 = sst [smem:[#allocation15_spill]] %s4786_s17  ;;  %s4788_s18 = smov (!%p39_p0, %s41_s18), %s3916_s14 }
  0x19   : > { %s123_s20 = ssub.s32 %s3912_s30, %s4786_s17  ;;  %p134_p2 = scmp.eq.s32.totalorder %s3920_s15, 0 }
  0x1a   : > { %p43_p3 = scmp.ge.s32.totalorder %s4788_s18, 2  ;;  %p124_p4 = scmp.eq.s32.totalorder %s123_s20, 0 }
  0x1b   : > { %p135_p5 = por %p134_p2, %p133_p1  ;;  %p139_p6 = scmp.ne.s32.totalorder %s3896_s26, %s3892_s25 }
  0x1c   : > { %s4790_s18 = smov (%p43_p3, %s4788_s18), 0  ;;  %p140_p7 = scmp.eq.s32.totalorder %s3104_s16, 0 }
  0x1d   : > { %4754 = sst [smem:[#allocation16_spill]] %s4790_s18  ;;  %p3485_p8 = scmp.lt.s32.totalorder %s3920_s15, 4 }
  0x1e   : > { %s4056_s21 = scalar_select %p124_p4, %s3900_s27, %s126_s19  }
  0x1f   : > { %s4060_s22 = sand.u32 1, %s3900_s27   ;;  %p4062_p9 = por %p140_p7, %p139_p6 }
  0x20   : > { %4755 = sst [smem:[#allocation17_spill]] %s4056_s21  ;;  %s3470_s24 = smul.u32 192, %s4060_s22 }
  0x21   : > { %p4067_p10 = pnand %p3485_p8, %p135_p5  ;;  %s3471_s25 = smul.u32 3072, %s3912_s30 }
  0x22   : > { %s4758_s3 = sld [smem:[#allocation20_spill]]  ;;  %s447_s18 = scalar_lea.vmem [#allocation4], %s3470_s24 }
  0x23   : > { %s454_s14 = sshll.u32 %s447_s18, 4  ;;  %s444_s21 = scalar_lea.sflag [#allocation5], %s4060_s22  ;;  %s455_s14 = int_to_ptr.vmem [resolvable:$true] %s454_s14 }
  0x24   : > { %p3796_p11 = pneg %p4067_p10  ;;  %s3807_s27 = scalar_lea.vmem %s455_s14, 3072 }
  0x25   : > { %p3808_p12 = scmp.ne.s32.totalorder %s455_s14, %s3807_s27  ;;  %s3922_s13 = smov [#allocation4]  }
  0x26   : > { %s3812_s12 = sshll.u32 %s3922_s13, 4  ;;  %s3813_s12 = int_to_ptr.vmem [resolvable:$false] %s3812_s12 }
  0x27   : > { %p3810_p13 = pnand %p3808_p12, %p3796_p11  ;;  %s3814_s10 = scalar_lea.vmem %s3813_s12, 6144 }
  0x28   : > { %s453_s16 = scalar_lea.hbm %s4758_s3, %s3471_s25  ;;  %p3815_p1 = scmp.lt.s32.totalorder %s455_s14, %s3813_s12 }
  0x29   : > { %p3811_p0 = pneg %p3810_p13  ;;  %p3816_p2 = scmp.lt.s32.totalorder %s3814_s10, %s3807_s27 }
  0x2b   : > { %p3817_p3 = por %p3816_p2, %p3815_p1 }
  0x2d   : > { %p3818_p4 = pnand %p3817_p3, %p3811_p0 }
  0x2f   : > { %3821 = shalt.err (!%p3818_p4)
}
  0x30   : > { %s3923_s18 = smov 192   ;;  %s3924_s24 = smov 12  }
  0x31   : > { %3481 = dma.hbm_to_vmem [thread:$0]  (!%p4067_p10), %s453_s16, 3072, %s455_s14, %s444_s21, %s3923_s18, %s3923_s18, %s3924_s24  }
  0x32   : > { %p3112_p5 = scmp.ge.s32.totalorder %s3920_s15, 1  ;;  %p537_p6 = scmp.lt.s32.totalorder %s3920_s15, 5 }
  0x33   : > { %s3109_s13 = sshll.u32 %s4060_s22, 8  ;;  %s3245_s10 = sshll.u32 %s3912_s30, 12 }
  0x34   : > { %p4086_p7 = pnand %p3112_p5, %p537_p6  ;;  %s516_s27 = scalar_lea.vmem [#allocation6], %s3109_s13 }
  0x35   : > { %s523_s25 = sshll.u32 %s516_s27, 4  ;;  %s4760_s11 = sld [smem:[#allocation26_spill]]  ;;  %s524_s25 = int_to_ptr.vmem [resolvable:$true] %s523_s25 }
  0x36   : > { %s513_s9 = scalar_lea.sflag [#allocation7], %s4060_s22  ;;  %s3835_s8 = scalar_lea.vmem %s524_s25, 4096 }
  0x37   : > { %p3836_p8 = scmp.ne.s32.totalorder %s524_s25, %s3835_s8  ;;  %s3925_s14 = smov [#allocation6]  }
  0x38   : > { %s3840_s21 = sshll.u32 %s3925_s14, 4  ;;  %s3841_s21 = int_to_ptr.vmem [resolvable:$false] %s3840_s21 }
  0x39   : > { %p3838_p12 = pnand %p3836_p8, %p3796_p11  ;;  %s3842_s16 = scalar_lea.vmem %s3841_s21, 8192 }
  0x3a   : > { %p3843_p0 = scmp.lt.s32.totalorder %s524_s25, %s3841_s21  ;;  %p3844_p1 = scmp.lt.s32.totalorder %s3842_s16, %s3835_s8 }
  0x3b   : > { %s522_s3 = scalar_lea.hbm %s4760_s11, %s3245_s10  ;;  %p3839_p13 = pneg %p3838_p12 }
  0x3c   : > { %p3845_p2 = por %p3844_p1, %p3843_p0 }
  0x3e   : > { %p3846_p3 = pnand %p3845_p2, %p3839_p13 }
  0x40   : > { %3849 = shalt.err (!%p3846_p3)
}
  0x41   : > { %s3926_s18 = smov 64   ;;  %s3927_s24 = smov 4  }
  0x42   : > { %3484 = dma.hbm_to_vmem [thread:$0]  (!%p4067_p10), %s522_s3, 4096, %s524_s25, %s513_s9, %s3926_s18, %s3926_s18, %s3927_s24  }
  0x43   : > { %541 = sbr.rel (%p4086_p7) target bundleno = 3567 (0xdef), region = 72 }
  0x48   : > { %s543_s22 = sand.u32 1, %s3896_s26  }
  0x49   : > { %s3472_s13 = smul.u32 192, %s543_s22  ;;  %s544_s10 = scalar_lea.sflag [#allocation5], %s543_s22 }
  0x4b   : > { %s4103_s27 = scalar_lea.vmem [#allocation4], %s3472_s13 }
  0x4c   : > { %3883 = dma.done.wait (%p4062_p9), %s544_s10, 3072  }
  0x4d   : > { %3885 = vsyncadd (%p4062_p9), %s544_s10, 4294964224  ;;  %s3113_s8 = sshll.u32 %s543_s22, 8  ;;  %s553_s19 = scalar_lea.sflag [#allocation7], %s543_s22 }
  0x4e   : > { %s4109_s17 = scalar_lea.vmem [#allocation6], %s3113_s8 }
  0x4f   : > { %4761 = sst [smem:[#allocation18_spill]] %s4109_s17 }
  0x50   : > { %3887 = dma.done.wait (%p4062_p9), %s553_s19, 4096  }
  0x51   : > { %3889 = vsyncadd (%p4062_p9), %s553_s19, 4294963200  ;;  %p645_p10 = scmp.lt.s32.totalorder %s3908_s29, 1  ;;  %p650_p11 = scmp.lt.s32.totalorder %s3904_s28, 1 }
  0x52   : > { %s4762_s0 = sld [smem:[#allocation19_spill]]  ;;  %p3123_p9 = scmp.ne.s32.totalorder %s3904_s28, 0 }
  0x53   : > { %s4792_s29 = smov (!%p645_p10, %s3908_s29), 1  ;;  %s4763_s4 = sld [smem:[#allocation21_spill]] }
  0x54   : > { %s4119_s3 = scalar_select %p650_p11, %s3904_s28, 1 }
  0x55   : > { %s3246_s9 = sshll.u32 %s4792_s29, 5  ;;  %s4764_s5 = sld [smem:[#allocation22_spill]] }
  0x56   : > { %s3473_s22 = smul.u32 3, %s4119_s3  ;;  %s3247_s13 = sshll.u32 %s4119_s3, 6 }
  0x57   : > { %s3248_s10 = sshll.u32 %s4119_s3, 8  ;;  %s3120_s8 = sshll.u32 %s4119_s3, 2 }
  0x58   : > { %s649_s25 = scalar_lea.vmem %s4762_s0, %s3246_s9  ;;  %s4765_s0 = sld [smem:[#allocation23_spill]] }
  0x59   : > { %s4141_s30 = scalar_lea.vmem %s4763_s4, %s3473_s22  ;;  %s4766_s11 = sld [smem:[#allocation24_spill]] }
  0x5a   : > { %s4767_s23 = sld [smem:[#allocation25_spill]] }
  0x5b   : > { %s4146_s20 = scalar_lea.vmem %s4764_s5, %s3247_s13  ;;  %s4768_s21 = sld [smem:[#allocation27_spill]] }
  0x5c   : > { %s4769_s24 = sld [smem:[#allocation28_spill]] }
  0x5e   : > { %s673_s26 = scalar_lea.vmem %s4765_s0, %s4119_s3  ;;  %695 = sbr.rel (%p3123_p9) target bundleno = 102 (0x66), region = 84 }
  0x5f   : > { %s4161_s22 = scalar_lea.vmem %s4766_s11, %s3248_s10 }
  0x60   : > { %s4166_s13 = scalar_lea.vmem %s4767_s23, %s3120_s8 }
  0x61   : > { %s685_s14 = scalar_lea.vmem %s4768_s21, %s4119_s3 }
  0x62   : > { %s4175_s0 = scalar_lea.vmem %s4769_s24, %s3246_s9 }
  0x63   : > { %v696_v0 = vld [vmem:[%s649_s25] sm:$0xff]  ;;  %v697_v1 = vld [vmem:[%s649_s25 + $0x8] sm:$0xff]  ;;  %v698_v2 = vld [vmem:[%s649_s25 + $0x10] sm:$0xff] }
  0x64   : > { %700 = vst [vmem:[#allocation2 + $0x10] sm:$0xff] %v696_v0  ;;  %701 = vst [vmem:[#allocation2] sm:$0xff] %v697_v1  ;;  %v699_v3 = vld [vmem:[%s649_s25 + $0x18] sm:$0xff] }
  0x65   : > { %702 = vst [vmem:[#allocation2 + $0x18] sm:$0xff] %v698_v2  ;;  %703 = vst [vmem:[#allocation2 + $0x8] sm:$0xff] %v699_v3 }
  0x66 PF: > { %v3558_v8 = vld [vmem:[%s4103_s27 + $0xac] ss:$12 sps:$4 sm:$0xff]   ;;  %v3560_v9 = vld [vmem:[%s4103_s27 + $0xa8] ss:$12 sps:$4 sm:$0xff]   ;;  %v3563_v27 = vld [vmem:[%s4103_s27 + $0xb0] ss:$12 sps:$4 sm:$0xff]   ;;  %s4770_s15 = scalar_lea.vmem %s4718_s1, %s4119_s3  ;;  %s4771_s9 = scalar_lea.vmem %s4719_s2, %s4119_s3 }
  0x67   : > { %954 = vmatprep.subr.bf16.mxu0 %v3558_v8  ;;  %v3561_v26 = vld [vmem:[%s4103_s27 + $0x94] ss:$12 sps:$4 sm:$0xff]   ;;  %v3564_v28 = vld [vmem:[%s4103_s27 + $0x90] ss:$12 sps:$4 sm:$0xff]   ;;  %3358 = vmatprep.subr.bf16.mxu1 %v3563_v27  ;;  %v3567_v30 = vld [vmem:[%s4103_s27 + $0x98] ss:$12 sps:$4 sm:$0xff]   ;;  %s4772_s18 = scalar_lea.vmem %s4723_s6, %s4119_s3  ;;  %s4773_s11 = scalar_lea.vmem %s4724_s7, %s4119_s3 }
  0x68   : > { %955 = vmatpush1.bf16.msra.mxu0 %v3560_v9  ;;  %3359 = vmatpush3.bf16.msra.mxu1 %v3563_v27  ;;  %v3565_v29 = vld [vmem:[%s4103_s27 + $0x7c] ss:$12 sps:$4 sm:$0xff]   ;;  %v3568_v31 = vld [vmem:[%s4103_s27 + $0x78] ss:$12 sps:$4 sm:$0xff]   ;;  %v3571_v33 = vld [vmem:[%s4103_s27 + $0x80] ss:$12 sps:$4 sm:$0xff]  }
  0x69   : > { %956 = vmatprep.subr.bf16.mxu0 %v3561_v26  ;;  %3360 = vmatprep.subr.bf16.mxu1 %v3567_v30  ;;  %v3569_v32 = vld [vmem:[%s4103_s27 + $0x64] ss:$12 sps:$4 sm:$0xff]   ;;  %v3572_v34 = vld [vmem:[%s4103_s27 + $0x60] ss:$12 sps:$4 sm:$0xff]   ;;  %v3575_v36 = vld [vmem:[%s4103_s27 + $0x68] ss:$12 sps:$4 sm:$0xff]  }
  0x6a   : > { %v3573_v35 = vld [vmem:[%s4103_s27 + $0x4c] ss:$12 sps:$4 sm:$0xff]   ;;  %v3576_v37 = vld [vmem:[%s4103_s27 + $0x48] ss:$12 sps:$4 sm:$0xff]   ;;  %v3579_v39 = vld [vmem:[%s4103_s27 + $0x50] ss:$12 sps:$4 sm:$0xff]  }
  0x6b   : > { %v704_v4 = vld [vmem:[#allocation2 + $0x10] sm:$0xff]  ;;  %v705_v6 = vld [vmem:[#allocation2] sm:$0xff]  ;;  %v3581_v41 = vld [vmem:[%s4103_s27 + $0x1c] ss:$12 sps:$4 sm:$0xff]   ;;  %v3928_v43 = vmov 0   ;;  %vm1062_vm0 = vcmask 261120  }
  0x6c   : > { %v706_v5 = vld [vmem:[#allocation2 + $0x18] sm:$0xff]  ;;  %710 = vadd.xlane.f32.xlu0 %v704_v4  ;;  %v707_v7 = vld [vmem:[#allocation2 + $0x8] sm:$0xff]  ;;  %957 = vmatpush1.bf16.msra.mxu0 %v3564_v28  ;;  %v3577_v38 = vld [vmem:[%s4103_s27 + $0x34] ss:$12 sps:$4 sm:$0xff]   ;;  %s3930_s25 = smov 64   ;;  %s3931_s19 = smov 32  }
  0x6d   : > { %714 = vadd.xlane.f32.xlu1 %v706_v5  ;;  %958 = vmatprep.subr.bf16.mxu0 %v3565_v29  ;;  %v3580_v40 = vld [vmem:[%s4103_s27 + $0x30] ss:$12 sps:$4 sm:$0xff]   ;;  %v3583_v42 = vld [vmem:[%s4103_s27 + $0x38] ss:$12 sps:$4 sm:$0xff]   ;;  %v3587_v46 = vld [vmem:[%s4103_s27 + $0x20] ss:$12 sps:$4 sm:$0xff]  }
  0x6e   : > { %3361 = vmatpush3.bf16.msra.mxu1 %v3567_v30  ;;  %986 = vmatprep.mubr.bf16.mxu0 %v3928_v43  ;;  %v3584_v44 = vld [vmem:[%s4103_s27 + $0x18] ss:$12 sps:$4 sm:$0xff]   ;;  %v3588_v47 = vld [vmem:[%s4103_s27] ss:$12 sps:$4 sm:$0xff]   ;;  %v3589_v48 = vld [vmem:[%s4103_s27 + $0x8] ss:$12 sps:$4 sm:$0xff]  }
  0x6f   : > { %3362 = vmatprep.subr.bf16.mxu1 %v3571_v33  ;;  %v3585_v45 = vld [vmem:[%s4103_s27 + $0x4] ss:$12 sps:$4 sm:$0xff]   ;;  %v3124_v63 = vld [vmem:[%s4770_s15] ss:$0 sm:$0xff]  ;;  %vm1435_vm1 = vcmask 523520   ;;  %vm1636_vm2 = vcmask 785920  }
  0x70   : > { %712 = vadd.xlane.f32.xlu0 %v705_v6  ;;  %959 = vmatpush1.bf16.msra.mxu0 %v3568_v31  ;;  %vm1837_vm3 = vcmask 1048320   ;;  %s4775_s12 = sld [smem:[#allocation18_spill]]  ;;  %p3242_p4 = scmp.ne.s32.totalorder %s3904_s28, 1 }
  0x71   : > { %716 = vadd.xlane.f32.xlu1 %v707_v7  ;;  %960 = vmatprep.subr.bf16.mxu0 %v3569_v32 }
  0x72   : > { %3363 = vmatpush3.bf16.msra.mxu1 %v3571_v33 }
  0x73   : > { %3364 = vmatprep.subr.bf16.mxu1 %v3575_v36 }
  0x74   : > { %961 = vmatpush1.bf16.msra.mxu0 %v3572_v34 }
  0x75   : > { %962 = vmatprep.subr.bf16.mxu0 %v3573_v35 }
  0x76   : > { %3365 = vmatpush3.bf16.msra.mxu1 %v3575_v36 }
  0x77   : > { %3366 = vmatprep.subr.bf16.mxu1 %v3579_v39 }
  0x78   : > { %963 = vmatpush1.bf16.msra.mxu0 %v3576_v37 }
  0x79   : > { %964 = vmatprep.subr.bf16.mxu0 %v3577_v38 }
  0x7a   : > { %3367 = vmatpush3.bf16.msra.mxu1 %v3579_v39 }
  0x7b   : > { %3368 = vmatprep.subr.bf16.mxu1 %v3583_v42 }
  0x7c   : > { %965 = vmatpush1.bf16.msra.mxu0 %v3580_v40 }
  0x7d   : > { %966 = vmatprep.subr.bf16.mxu0 %v3581_v41 }
  0x7e   : > { %3369 = vmatpush3.bf16.msra.mxu1 %v3583_v42 }
  0x7f   : > { %3370 = vmatprep.subr.bf16.mxu1 %v3587_v46 }
  0x80   : > { %967 = vmatpush1.bf16.msra.mxu0 %v3584_v44 }
  0x81   : > { %968 = vmatprep.subr.bf16.mxu0 %v3585_v45 }
  0x82   : > { %3371 = vmatpush3.bf16.msra.mxu1 %v3587_v46 }
  0x83   : > { %3372 = vmatprep.subr.bf16.mxu1 %v3589_v48 }
  0x84   : > { %969 = vmatpush1.bf16.msra.mxu0 %v3588_v47 }
  0x86   : > { %3373 = vmatpush3.bf16.msra.mxu1 %v3589_v48 }
  0xf5   : > { %v711_v10 = vpop.xlane.xlu0 %710 }
  0xf6   : > { %v715_v11 = vpop.xlane.xlu1 %714  ;;  %v719_v12 = vmul.f32 0.0078125, %v711_v10 }
  0xf7   : > { %v721_v13 = vmul.f32 0.0078125, %v715_v11 }
  0xf8   : > { %v4180_v14 = vsub.f32 %v704_v4, %v719_v12  ;;  %v3125_v4 = vld [vmem:[%s4771_s9] ss:$0 sm:$0xff] }
  0xf9   : > { %v4182_v15 = vsub.f32 %v706_v5, %v721_v13  ;;  %v713_v16 = vpop.xlane.xlu0 %712 }
  0xfa   : > { %v717_v17 = vpop.xlane.xlu1 %716  ;;  %v720_v18 = vmul.f32 0.0078125, %v713_v16  ;;  %v727_v19 = vmul.f32 %v4180_v14, %v4180_v14 }
  0xfb   : > { %v722_v20 = vmul.f32 0.0078125, %v717_v17  ;;  %v729_v23 = vmul.f32 %v4182_v15, %v4182_v15 }
  0xfc   : > { %v4186_v21 = vsub.f32 %v705_v6, %v720_v18  ;;  %731 = vadd.xlane.f32.xlu0 %v727_v19 }
  0xfd   : > { %v4188_v22 = vsub.f32 %v707_v7, %v722_v20  ;;  %v807_v20 = vld [vmem:[%s4141_s30] sm:$0x7]  ;;  %s3929_s30 = smov 96  }
  0xfe   : > { %v728_v24 = vmul.f32 %v4186_v21, %v4186_v21 }
  0xff   : > { %v730_v25 = vmul.f32 %v4188_v22, %v4188_v22 }
 0x100   : > { %735 = vadd.xlane.f32.xlu0 %v729_v23  ;;  %733 = vadd.xlane.f32.xlu1 %v728_v24 }
 0x104   : > { %737 = vadd.xlane.f32.xlu1 %v730_v25 }
 0x185   : > { %v732_v49 = vpop.xlane.xlu0 %731 }
 0x186   : > { %v739_v50 = vmul.f32 0.0078125, %v732_v49 }
 0x188   : > { %v743_v51 = vadd.f32 1e-05, %v739_v50 }
 0x189   : > { %v734_v52 = vpop.xlane.xlu1 %733  ;;  %v736_v53 = vpop.xlane.xlu0 %735 }
 0x18a   : > { %3678 = vrsqrt.f32 %v743_v51  ;;  %v740_v54 = vmul.f32 0.0078125, %v734_v52  ;;  %v741_v55 = vmul.f32 0.0078125, %v736_v53 }
 0x18c   : > { %v744_v56 = vadd.f32 1e-05, %v740_v54  ;;  %v745_v57 = vadd.f32 1e-05, %v741_v55 }
 0x18d   : > { %v738_v58 = vpop.xlane.xlu1 %737 }
 0x18e   : > { %3680 = vrsqrt.f32 %v744_v56  ;;  %v742_v59 = vmul.f32 0.0078125, %v738_v58 }
 0x18f   : > { %3682 = vrsqrt.f32 %v745_v57 }
 0x190   : > { %v746_v60 = vadd.f32 1e-05, %v742_v59 }
 0x192   : > { %3684 = vrsqrt.f32 %v746_v60 }
 0x197   : > { %v3679_v61 = vpop.eup %3678 }
 0x198   : > { %v751_v62 = vmul.f32 %v3679_v61, %v4180_v14 }
 0x19a   : > { %v761_v3 = vmul.f32 %v3124_v63, %v751_v62 }
 0x19b   : > { %v3681_v0 = vpop.eup %3680 }
 0x19c   : > { %v3683_v1 = vpop.eup %3682  ;;  %v752_v2 = vmul.f32 %v3681_v0, %v4186_v21  ;;  %v771_v8 = vadd.f32 %v3125_v4, %v761_v3 }
 0x19d   : > { %v753_v5 = vmul.f32 %v3683_v1, %v4182_v15  ;;  %v811_v15 = vlaneseq }
 0x19e   : > { %v762_v6 = vmul.f32 %v3124_v63, %v752_v2 }
 0x19f   : > { %v3685_v7 = vpop.eup %3684  ;;  %v763_v11 = vmul.f32 %v3124_v63, %v753_v5  ;;  %v4234_v18 = vshrl.u32 %v811_v15, 7 }
 0x1a0   : > { %v772_v9 = vadd.f32 %v3125_v4, %v762_v6  ;;  %v754_v10 = vmul.f32 %v3685_v7, %v4188_v22 }
 0x1a1   : > { %v773_v14 = vadd.f32 %v3125_v4, %v763_v11  ;;  %v813_v19 = vsub.s32 0, %v4234_v18  ;;  %v821_v23 = vsub.s32 2, %v4234_v18  ;;  %v817_v35 = vsub.s32 1, %v4234_v18 }
 0x1a2   : > { %v808_v12 = vpack.c.bf16 %v772_v9, %v771_v8  ;;  %v764_v13 = vmul.f32 %v3124_v63, %v754_v10 }
 0x1a3   : > { %v814_v22 = vrot.slane %v807_v20, %v813_v19  ;;  %v822_v29 = vrot.slane %v807_v20, %v821_v23  ;;  %v818_v45 = vrot.slane %v807_v20, %v817_v35 }
 0x1a4   : > { %987 = vmatmul.mubr.bf16.vlgmr.msra.gmra.mxu0 %v808_v12  ;;  %3374 = vmatprep.mubr.bf16.mxu1 %v808_v12  ;;  %v774_v16 = vadd.f32 %v3125_v4, %v764_v13 }
 0x1a5   : > { %996 = vmatprep.mubr.bf16.mxu0 %v3928_v43 }
 0x1a6   : > { %v809_v17 = vpack.c.bf16 %v774_v16, %v773_v14 }
 0x1a8   : > { %3375 = vmatmul.mubr.bf16.vlgmr.msra.gmra.mxu1 %v809_v17 }
 0x1ac   : > { %997 = vmatmul.mubr.bf16.gmra.mxu0 %v809_v17 }
 0x264   : > { %v988_v21 = vpop.f32.mrf.mxu0 }
 0x265   : > { %v989_v27 = vadd.f32 %v988_v21, %v814_v22 }
 0x266   : > { %v990_v24 = vpop.f32.mrf.mxu0 }
 0x267   : > { %v991_v51 = vadd.f32 %v990_v24, %v818_v45 }
 0x268   : > { %v992_v25 = vpop.f32.mrf.mxu0  ;;  %v3376_v26 = vpop.f32.mrf.mxu1 }
 0x269   : > { %v993_v28 = vadd.f32 %v992_v25, %v814_v22  ;;  %v1050_v36 = vadd.f32 %v3376_v26, %v822_v29 }
 0x26a   : > { %v994_v30 = vpop.f32.mrf.mxu0  ;;  %v1041_v31 = vpop.f32.mrf.mxu1 }
 0x26b   : > { %v4243_v32 = vpack.c.bf16 %v993_v28, %v989_v27  ;;  %v1042_v40 = vadd.f32 %v1041_v31, %v822_v29  ;;  %v995_v48 = vadd.f32 %v994_v30, %v818_v45 }
 0x26c   : > { %v998_v33 = vpop.f32.mrf.mxu0  ;;  %v3377_v34 = vpop.f32.mrf.mxu1 }
 0x26d   : > { %v1053_v37 = vadd.f32 %v3377_v34, %v822_v29  ;;  %3382 = vmatprep.mubr.msk.bf16.mxu0 %vm1062_vm0, %v4243_v32  ;;  %v4260_v53 = vpack.c.bf16 %v995_v48, %v991_v51  ;;  %v999_v57 = vadd.f32 %v998_v33, %v814_v22 }
 0x26e   : > { %v1000_v38 = vpop.f32.mrf.mxu0  ;;  %v1044_v39 = vpop.f32.mrf.mxu1 }
 0x26f   : > { %v4248_v41 = vpack.c.bf16 %v1053_v37, %v1050_v36  ;;  %v1045_v42 = vadd.f32 %v1044_v39, %v822_v29  ;;  %v1001_v49 = vadd.f32 %v1000_v38, %v818_v45  ;;  %v1070_v55 = vsel %vm1062_vm0, %v4260_v53, 0 }
 0x270   : > { %v1002_v44 = vpop.f32.mrf.mxu0 }
 0x271   : > { %v4252_v46 = vpack.c.bf16 %v1045_v42, %v1042_v40  ;;  %3386 = vmatprep.subr.bf16.mxu1 %v4248_v41  ;;  %v1003_v56 = vadd.f32 %v1002_v44, %v814_v22 }
 0x272   : > { %v1004_v47 = vpop.f32.mrf.mxu0  ;;  %3387 = vmatpush3.bf16.msra.mxu1 %v4248_v41 }
 0x273   : > { %v1005_v50 = vadd.f32 %v1004_v47, %v818_v45  ;;  %3388 = vmatprep.subr.bf16.mxu1 %v4252_v46  ;;  %v4270_v58 = vpack.c.bf16 %v1003_v56, %v999_v57 }
 0x275   : > { %v4257_v52 = vpack.c.bf16 %v1005_v50, %v1001_v49 }
 0x276   : > { %3389 = vmatpush3.bf16.msra.mxu1 %v4252_v46 }
 0x277   : > { %3462 = vmatprep.subr.msk.bf16.mxu0 %vm1062_vm0, %v4257_v52  ;;  %v1073_v54 = vsel %vm1062_vm0, %v4257_v52, 0 }
 0x278   : > { %3379 = vmatpush3.bf16.xpose.msra.mxu0 %v1073_v54 }
 0x279   : > { %3463 = vmatprep.subr.msk.bf16.mxu0 %vm1062_vm0, %v4260_v53 }
 0x280   : > { %3381 = vmatpush3.bf16.xpose.msra.mxu0 %v1070_v55 }
 0x287   : > { %3383 = vmatmul.mubr.msk.bf16.vlgmr.msra.gmra.mxu0 %vm1062_vm0, %v4270_v58 }
 0x347   : > { %v3384_v59 = vpop.f32.mrf.mxu0 }
 0x348   : > { %v1126_v63 = vmul.f32 0.17677669, %v3384_v59 }
 0x349   : > { %v1109_v60 = vpop.f32.mrf.mxu0 }
 0x34a   : > { %v1124_v61 = vmul.f32 0.17677669, %v1109_v60  ;;  %v1134_v4 = vsel %vm1062_vm0, %v1126_v63, -inf }
 0x34b   : > { %v3385_v62 = vpop.f32.mrf.mxu0 }
 0x34c   : > { %v1128_v0 = vsel %vm1062_vm0, %v1124_v61, -inf  ;;  %v1127_v3 = vmul.f32 0.17677669, %v3385_v62 }
 0x34d   : > { %1129 = vmax.xlane.f32.xlu0 %v1128_v0  ;;  %v1112_v1 = vpop.f32.mrf.mxu0 }
 0x34e   : > { %v1125_v2 = vmul.f32 0.17677669, %v1112_v1  ;;  %v1137_v6 = vsel %vm1062_vm0, %v1127_v3, -inf }
 0x350   : > { %v1131_v5 = vsel %vm1062_vm0, %v1125_v2, -inf }
 0x351   : > { %1135 = vmax.xlane.f32.xlu0 %v1134_v4  ;;  %1132 = vmax.xlane.f32.xlu1 %v1131_v5 }
 0x355   : > { %1138 = vmax.xlane.f32.xlu1 %v1137_v6 }
 0x3d6   : > { %v1130_v7 = vpop.xlane.xlu0 %1129 }
 0x3d7   : > { %v1140_v8 = vsub.f32 %v1124_v61, %v1130_v7 }
 0x3d9   : > { %v1144_v13 = vmul.f32 1.442695, %v1140_v8 }
 0x3da   : > { %v1136_v9 = vpop.xlane.xlu0 %1135  ;;  %v1133_v10 = vpop.xlane.xlu1 %1132 }
 0x3db   : > { %v1142_v11 = vsub.f32 %v1126_v63, %v1136_v9  ;;  %v1141_v12 = vsub.f32 %v1125_v2, %v1133_v10 }
 0x3dd   : > { %v1148_v14 = vmul.f32 1.442695, %v1142_v11  ;;  %v1146_v16 = vmul.f32 1.442695, %v1141_v12 }
 0x3de   : > { %v1139_v17 = vpop.xlane.xlu1 %1138 }
 0x3df   : > { %3686 = vpow2.f32 %v1148_v14  ;;  %v1143_v15 = vsub.f32 %v1127_v3, %v1139_v17 }
 0x3e0   : > { %3688 = vpow2.f32 %v1146_v16 }
 0x3e1   : > { %3690 = vpow2.f32 %v1144_v13  ;;  %v1150_v20 = vmul.f32 1.442695, %v1143_v15 }
 0x3e3   : > { %3692 = vpow2.f32 %v1150_v20 }
 0x3ec   : > { %v3687_v21 = vpop.eup %3686 }
 0x3ed   : > { %v3689_v22 = vpop.eup %3688  ;;  %v1158_v24 = vsel %vm1062_vm0, %v3687_v21, 0.0 }
 0x3ee   : > { %v3691_v25 = vpop.eup %3690  ;;  %1159 = vadd.xlane.f32.xlu0 %v1158_v24  ;;  %v1155_v26 = vsel %vm1062_vm0, %v3689_v22, 0.0 }
 0x3ef   : > { %1156 = vadd.xlane.f32.xlu1 %v1155_v26  ;;  %v1152_v28 = vsel %vm1062_vm0, %v3691_v25, 0.0 }
 0x3f0   : > { %v3693_v27 = vpop.eup %3692 }
 0x3f1   : > { %v1161_v29 = vsel %vm1062_vm0, %v3693_v27, 0.0 }
 0x3f2   : > { %1153 = vadd.xlane.f32.xlu0 %v1152_v28 }
 0x3f3   : > { %1162 = vadd.xlane.f32.xlu1 %v1161_v29 }
 0x404   : > { %1241 = vrot.lane.b32.xlu1 %v4260_v53, %s3929_s30 }
 0x408   : > { %1235 = vrot.lane.b32.xlu1 %v4243_v32, %s3929_s30  ;;  %1243 = vrot.lane.b32.xlu0 %v4257_v52, %s3929_s30 }
 0x40c   : > { %1446 = vrot.lane.b32.xlu1 %v4257_v52, %s3930_s25  ;;  %1237 = vrot.lane.b32.xlu0 %v4270_v58, %s3929_s30 }
 0x410   : > { %1444 = vrot.lane.b32.xlu1 %v4260_v53, %s3930_s25  ;;  %1440 = vrot.lane.b32.xlu0 %v4243_v32, %s3930_s25 }
 0x414   : > { %1442 = vrot.lane.b32.xlu1 %v4270_v58, %s3930_s25 }
 0x477   : > { %v1160_v30 = vpop.xlane.xlu0 %1159 }
 0x478   : > { %v1157_v31 = vpop.xlane.xlu1 %1156 }
 0x479   : > { %3694 = vrcp.f32 %v1157_v31 }
 0x47a   : > { %3696 = vrcp.f32 %v1160_v30 }
 0x47b   : > { %v1154_v33 = vpop.xlane.xlu0 %1153 }
 0x47c   : > { %3698 = vrcp.f32 %v1154_v33  ;;  %v1163_v34 = vpop.xlane.xlu1 %1162 }
 0x47d   : > { %3700 = vrcp.f32 %v1163_v34 }
 0x47f   : > { %v1244_v36 = vpop.permute.xlu0 %1243 }
 0x480   : > { %3464 = vmatprep.subr.msk.bf16.mxu1 %vm1062_vm0, %v1244_v36  ;;  %v1242_v40 = vpop.permute.xlu1 %1241  ;;  %v1255_v51 = vsel %vm1062_vm0, %v1244_v36, 0 }
 0x481   : > { %v1252_v55 = vsel %vm1062_vm0, %v1242_v40, 0 }
 0x483   : > { %v1238_v57 = vpop.permute.xlu0 %1237 }
 0x484   : > { %v1236_v54 = vpop.permute.xlu1 %1235 }
 0x486   : > { %v3695_v37 = vpop.eup %3694 }
 0x487   : > { %v3697_v38 = vpop.eup %3696  ;;  %v1169_v45 = vmul.f32 %v3695_v37, %v3689_v22  ;;  %v1441_v59 = vpop.permute.xlu0 %1440 }
 0x488   : > { %v1170_v47 = vmul.f32 %v3697_v38, %v3687_v21  ;;  %v1447_v56 = vpop.permute.xlu1 %1446 }
 0x489   : > { %v3699_v39 = vpop.eup %3698  ;;  %v1458_v60 = vsel %vm1062_vm0, %v1447_v56, 0 }
 0x48a   : > { %v3701_v42 = vpop.eup %3700  ;;  %v1168_v44 = vmul.f32 %v3699_v39, %v3691_v25 }
 0x48b   : > { %v1171_v48 = vmul.f32 %v3701_v42, %v3693_v27 }
 0x48c   : > { %v1172_v49 = vpack.c.bf16 %v1169_v45, %v1168_v44  ;;  %v1445_v61 = vpop.permute.xlu1 %1444 }
 0x48d   : > { %v1173_v50 = vpack.c.bf16 %v1171_v48, %v1170_v47  ;;  %v1455_v62 = vsel %vm1062_vm0, %v1445_v61, 0 }
 0x48e   : > { %3390 = vmatprep.mubr.msk.bf16.mxu1 %vm1062_vm0, %v1172_v49 }
 0x48f   : > { %3391 = vmatmul.mubr.msk.bf16.vlgmr.msra.gmra.mxu1 %vm1062_vm0, %v1173_v50 }
 0x490   : > { %3395 = vmatpush3.bf16.xpose.msra.mxu1 %v1255_v51  ;;  %3398 = vmatprep.mubr.msk.bf16.mxu1 %vm1062_vm0, %v1236_v54  ;;  %v1443_v63 = vpop.permute.xlu1 %1442 }
 0x491   : > { %3465 = vmatprep.subr.msk.bf16.mxu1 %vm1062_vm0, %v1242_v40 }
 0x498   : > { %3397 = vmatpush3.bf16.xpose.msra.mxu1 %v1252_v55 }
 0x499   : > { %3466 = vmatprep.subr.msk.bf16.mxu1 %vm1062_vm0, %v1447_v56 }
 0x49f   : > { %3399 = vmatmul.mubr.msk.bf16.vlgmr.msra.gmra.mxu1 %vm1062_vm0, %v1238_v57 }
 0x4a0   : > { %3411 = vmatpush3.bf16.xpose.msra.mxu1 %v1458_v60  ;;  %3414 = vmatprep.mubr.msk.bf16.mxu1 %vm1062_vm0, %v1441_v59 }
 0x4a1   : > { %3467 = vmatprep.subr.msk.bf16.mxu1 %vm1062_vm0, %v1445_v61 }
 0x4a8   : > { %3413 = vmatpush3.bf16.xpose.msra.mxu1 %v1455_v62 }
 0x4af   : > { %3415 = vmatmul.mubr.msk.bf16.vlgmr.msra.gmra.mxu1 %vm1062_vm0, %v1443_v63 }
 0x54f   : > { %v3392_v0 = vpop.f32.mrf.mxu1 }
 0x550   : > { %1231 = vst.msk [vmem:[#allocation3 + $0x10] sm:$0xff] %vm1062_vm0, %v3392_v0 }
 0x551   : > { %v1214_v1 = vpop.f32.mrf.mxu1 }
 0x552   : > { %1229 = vst.msk [vmem:[#allocation3] sm:$0xff] %vm1062_vm0, %v1214_v1 }
 0x553   : > { %v3393_v2 = vpop.f32.mrf.mxu1 }
 0x554   : > { %1232 = vst.msk [vmem:[#allocation3 + $0x18] sm:$0xff] %vm1062_vm0, %v3393_v2 }
 0x555   : > { %v1217_v3 = vpop.f32.mrf.mxu1 }
 0x556   : > { %1230 = vst.msk [vmem:[#allocation3 + $0x8] sm:$0xff] %vm1062_vm0, %v1217_v3 }
 0x55f   : > { %v3400_v4 = vpop.f32.mrf.mxu1 }
 0x560   : > { %v1308_v49 = vmul.f32 0.17677669, %v3400_v4 }
 0x561   : > { %v1291_v5 = vpop.f32.mrf.mxu1 }
 0x562   : > { %v1306_v48 = vmul.f32 0.17677669, %v1291_v5  ;;  %v1316_v54 = vsel %vm1062_vm0, %v1308_v49, -inf }
 0x563   : > { %v3401_v6 = vpop.f32.mrf.mxu1 }
 0x564   : > { %v1310_v50 = vsel %vm1062_vm0, %v1306_v48, -inf  ;;  %v4337_v51 = vmul.f32 0.17677669, %v3401_v6 }
 0x565   : > { %v1294_v7 = vpop.f32.mrf.mxu1 }
 0x56f   : > { %v3416_v8 = vpop.f32.mrf.mxu1 }
 0x570   : > { %v1511_v12 = vmul.f32 0.17677669, %v3416_v8 }
 0x571   : > { %v1494_v9 = vpop.f32.mrf.mxu1 }
 0x572   : > { %v1509_v10 = vmul.f32 0.17677669, %v1494_v9  ;;  %v1519_v15 = vsel %vm1062_vm0, %v1511_v12, -inf }
 0x573   : > { %v3417_v11 = vpop.f32.mrf.mxu1 }
 0x574   : > { %v1513_v13 = vsel %vm1062_vm0, %v1509_v10, -inf  ;;  %v1512_v17 = vmul.f32 0.17677669, %v3417_v11 }
 0x575   : > { %1514 = vmax.xlane.f32.xlu0 %v1513_v13  ;;  %v1497_v14 = vpop.f32.mrf.mxu1 }
 0x576   : > { %v1510_v16 = vmul.f32 0.17677669, %v1497_v14  ;;  %v1522_v21 = vsel %vm1062_vm0, %v1512_v17, -inf }
 0x578   : > { %v1516_v20 = vsel %vm1062_vm0, %v1510_v16, -inf }
 0x579   : > { %1520 = vmax.xlane.f32.xlu0 %v1519_v15  ;;  %1517 = vmax.xlane.f32.xlu1 %v1516_v20 }
 0x57d   : > { %1523 = vmax.xlane.f32.xlu0 %v1522_v21 }
 0x58a   : > { %1559 = vrot.lane.b32.xlu1 %v4252_v46, %s3930_s25 }
 0x5fe   : > { %v1515_v22 = vpop.xlane.xlu0 %1514 }
 0x5ff   : > { %v1525_v24 = vsub.f32 %v1509_v10, %v1515_v22 }
 0x601   : > { %v1529_v28 = vmul.f32 1.442695, %v1525_v24 }
 0x602   : > { %v1521_v25 = vpop.xlane.xlu0 %1520  ;;  %v1518_v26 = vpop.xlane.xlu1 %1517 }
 0x603   : > { %v1527_v27 = vsub.f32 %v1511_v12, %v1521_v25  ;;  %v1526_v30 = vsub.f32 %v1510_v16, %v1518_v26 }
 0x605   : > { %v1533_v29 = vmul.f32 1.442695, %v1527_v27  ;;  %v1531_v34 = vmul.f32 1.442695, %v1526_v30 }
 0x606   : > { %v1524_v31 = vpop.xlane.xlu0 %1523 }
 0x607   : > { %3702 = vpow2.f32 %v1533_v29  ;;  %v1528_v33 = vsub.f32 %v1512_v17, %v1524_v31 }
 0x608   : > { %3704 = vpow2.f32 %v1529_v28 }
 0x609   : > { %v1535_v36 = vmul.f32 1.442695, %v1528_v33 }
 0x60b   : > { %3706 = vpow2.f32 %v1535_v36 }
 0x60c   : > { %3708 = vpow2.f32 %v1531_v34 }
 0x614   : > { %v3703_v37 = vpop.eup %3702 }
 0x615   : > { %v1543_v38 = vsel %vm1062_vm0, %v3703_v37, 0.0  ;;  %v3705_v39 = vpop.eup %3704 }
 0x616   : > { %1544 = vadd.xlane.f32.xlu0 %v1543_v38  ;;  %v1537_v42 = vsel %vm1062_vm0, %v3705_v39, 0.0 }
 0x618   : > { %v3707_v40 = vpop.eup %3706 }
 0x619   : > { %v1546_v44 = vsel %vm1062_vm0, %v3707_v40, 0.0  ;;  %v3709_v45 = vpop.eup %3708 }
 0x61a   : > { %1538 = vadd.xlane.f32.xlu0 %v1537_v42  ;;  %1547 = vadd.xlane.f32.xlu1 %v1546_v44  ;;  %v1540_v47 = vsel %vm1062_vm0, %v3709_v45, 0.0 }
 0x61e   : > { %1541 = vadd.xlane.f32.xlu1 %v1540_v47 }
 0x62f   : > { %1647 = vrot.lane.b32.xlu1 %v4257_v52, %s3931_s19  ;;  %v1307_v52 = vmul.f32 0.17677669, %v1294_v7 }
 0x630   : > { %1561 = vrot.lane.b32.xlu0 %v4248_v41, %s3930_s25 }
 0x631   : > { %v1313_v55 = vsel %vm1062_vm0, %v1307_v52, -inf }
 0x633   : > { %1645 = vrot.lane.b32.xlu1 %v4260_v53, %s3931_s19  ;;  %v1319_v53 = vsel %vm1062_vm0, %v4337_v51, -inf }
 0x634   : > { %1641 = vrot.lane.b32.xlu0 %v4243_v32, %s3931_s19  ;;  %v1560_v32 = vpop.permute.xlu1 %1559 }
 0x637   : > { %1643 = vrot.lane.b32.xlu1 %v4270_v58, %s3931_s19 }
 0x653   : > { %1311 = vmax.xlane.f32.xlu0 %v1310_v50 }
 0x657   : > { %1317 = vmax.xlane.f32.xlu0 %v1316_v54 }
 0x65b   : > { %1320 = vmax.xlane.f32.xlu0 %v1319_v53  ;;  %1314 = vmax.xlane.f32.xlu1 %v1313_v55 }
 0x69f   : > { %v1545_v58 = vpop.xlane.xlu0 %1544 }
 0x6a3   : > { %v1539_v56 = vpop.xlane.xlu0 %1538  ;;  %v1548_v57 = vpop.xlane.xlu1 %1547 }
 0x6a4   : > { %3710 = vrcp.f32 %v1548_v57 }
 0x6a5   : > { %3712 = vrcp.f32 %v1539_v56 }
 0x6a6   : > { %3714 = vrcp.f32 %v1545_v58 }
 0x6a7   : > { %v1562_v59 = vpop.permute.xlu0 %1561  ;;  %v1542_v60 = vpop.xlane.xlu1 %1541 }
 0x6a8   : > { %3716 = vrcp.f32 %v1542_v60  ;;  %3418 = vmatprep.subr.bf16.mxu1 %v1562_v59 }
 0x6a9   : > { %3419 = vmatpush3.bf16.msra.mxu1 %v1562_v59 }
 0x6aa   : > { %3420 = vmatprep.subr.bf16.mxu1 %v1560_v32 }
 0x6ab   : > { %v1648_v61 = vpop.permute.xlu1 %1647  ;;  %v1642_v8 = vpop.permute.xlu0 %1641 }
 0x6ac   : > { %v1659_v9 = vsel %vm1062_vm0, %v1648_v61, 0 }
 0x6ad   : > { %3421 = vmatpush3.bf16.msra.mxu1 %v1560_v32 }
 0x6ae   : > { %3468 = vmatprep.subr.msk.bf16.mxu1 %vm1062_vm0, %v1648_v61 }
 0x6af   : > { %v1646_v10 = vpop.permute.xlu1 %1645 }
 0x6b0   : > { %v1656_v11 = vsel %vm1062_vm0, %v1646_v10, 0 }
 0x6b1   : > { %v3711_v62 = vpop.eup %3710 }
 0x6b2   : > { %v3713_v63 = vpop.eup %3712  ;;  %v1556_v2 = vmul.f32 %v3711_v62, %v3707_v40 }
 0x6b3   : > { %v3715_v0 = vpop.eup %3714  ;;  %v1553_v3 = vmul.f32 %v3713_v63, %v3705_v39  ;;  %v1644_v12 = vpop.permute.xlu1 %1643 }
 0x6b4   : > { %v1555_v5 = vmul.f32 %v3715_v0, %v3703_v37 }
 0x6b5   : > { %v3717_v1 = vpop.eup %3716 }
 0x6b6   : > { %v1554_v4 = vmul.f32 %v3717_v1, %v3709_v45  ;;  %v1558_v7 = vpack.c.bf16 %v1556_v2, %v1555_v5 }
 0x6b8   : > { %v1557_v6 = vpack.c.bf16 %v1554_v4, %v1553_v3 }
 0x6ba   : > { %3422 = vmatprep.mubr.msk.bf16.mxu1 %vm1062_vm0, %v1557_v6 }
 0x6bb   : > { %3423 = vmatmul.mubr.msk.bf16.vlgmr.msra.gmra.mxu1 %vm1062_vm0, %v1558_v7 }
 0x6bc   : > { %3427 = vmatpush3.bf16.xpose.msra.mxu1 %v1659_v9  ;;  %3430 = vmatprep.mubr.msk.bf16.mxu1 %vm1062_vm0, %v1642_v8 }
 0x6bd   : > { %3469 = vmatprep.subr.msk.bf16.mxu1 %vm1062_vm0, %v1646_v10 }
 0x6c4   : > { %3429 = vmatpush3.bf16.xpose.msra.mxu1 %v1656_v11 }
 0x6cb   : > { %3431 = vmatmul.mubr.msk.bf16.vlgmr.msra.gmra.mxu1 %vm1062_vm0, %v1644_v12 }
 0x6cc   : > { %2351 = vmatprep.mubr.bf16.mxu1 %v3928_v43 }
 0x6dc   : > { %v1312_v13 = vpop.xlane.xlu0 %1311 }
 0x6dd   : > { %v1322_v17 = vsub.f32 %v1306_v48, %v1312_v13 }
 0x6df   : > { %v1326_v22 = vmul.f32 1.442695, %v1322_v17 }
 0x6e0   : > { %v1318_v16 = vpop.xlane.xlu0 %1317 }
 0x6e1   : > { %v1324_v21 = vsub.f32 %v1308_v49, %v1318_v16  ;;  %3718 = vpow2.f32 %v1326_v22 }
 0x6e3   : > { %v1330_v27 = vmul.f32 1.442695, %v1324_v21 }
 0x6e4   : > { %v1315_v15 = vpop.xlane.xlu1 %1314  ;;  %v1321_v25 = vpop.xlane.xlu0 %1320 }
 0x6e5   : > { %v1323_v24 = vsub.f32 %v1307_v52, %v1315_v15  ;;  %v1325_v28 = vsub.f32 %v4337_v51, %v1321_v25  ;;  %3720 = vpow2.f32 %v1330_v27 }
 0x6e7   : > { %v1328_v29 = vmul.f32 1.442695, %v1323_v24  ;;  %v1332_v33 = vmul.f32 1.442695, %v1325_v28 }
 0x6e9   : > { %3722 = vpow2.f32 %v1328_v29 }
 0x6ea   : > { %3724 = vpow2.f32 %v1332_v33 }
 0x6ee   : > { %v3719_v48 = vpop.eup %3718 }
 0x6ef   : > { %v1334_v50 = vsel %vm1062_vm0, %v3719_v48, 0.0 }
 0x6f2   : > { %v4364_v49 = vpop.eup %3720 }
 0x6f3   : > { %v1340_v54 = vsel %vm1062_vm0, %v4364_v49, 0.0 }
 0x6f6   : > { %v3723_v52 = vpop.eup %3722 }
 0x6f7   : > { %v1337_v53 = vsel %vm1062_vm0, %v3723_v52, 0.0  ;;  %v4371_v55 = vpop.eup %3724 }
 0x6f8   : > { %v1343_v32 = vsel %vm1062_vm0, %v4371_v55, 0.0 }
 0x77b   : > { %v4352_v14 = vpop.f32.mrf.mxu1 }
 0x77d   : > { %v4354_v20 = vpop.f32.mrf.mxu1 }
 0x77f   : > { %v4356_v26 = vpop.f32.mrf.mxu1 }
 0x781   : > { %v4359_v30 = vpop.f32.mrf.mxu1 }
 0x78b   : > { %v3432_v31 = vpop.f32.mrf.mxu1 }
 0x78c   : > { %v1712_v38 = vmul.f32 0.17677669, %v3432_v31 }
 0x78d   : > { %v1695_v34 = vpop.f32.mrf.mxu1 }
 0x78e   : > { %v1710_v36 = vmul.f32 0.17677669, %v1695_v34  ;;  %v1720_v45 = vsel %vm1062_vm0, %v1712_v38, -inf }
 0x78f   : > { %v3433_v37 = vpop.f32.mrf.mxu1 }
 0x790   : > { %v1714_v39 = vsel %vm1062_vm0, %v1710_v36, -inf  ;;  %v1713_v44 = vmul.f32 0.17677669, %v3433_v37 }
 0x791   : > { %1715 = vmax.xlane.f32.xlu0 %v1714_v39  ;;  %v1698_v40 = vpop.f32.mrf.mxu1 }
 0x792   : > { %v1711_v42 = vmul.f32 0.17677669, %v1698_v40  ;;  %v1723_v51 = vsel %vm1062_vm0, %v1713_v44, -inf }
 0x794   : > { %v1717_v47 = vsel %vm1062_vm0, %v1711_v42, -inf }
 0x795   : > { %1721 = vmax.xlane.f32.xlu0 %v1720_v45  ;;  %1718 = vmax.xlane.f32.xlu1 %v1717_v47 }
 0x799   : > { %1335 = vadd.xlane.f32.xlu0 %v1334_v50  ;;  %1724 = vmax.xlane.f32.xlu1 %v1723_v51 }
 0x79d   : > { %1341 = vadd.xlane.f32.xlu0 %v1340_v54  ;;  %1338 = vadd.xlane.f32.xlu1 %v1337_v53  ;;  %v3590_v53 = vld [vmem:[%s4146_s20 + $0x38] sm:$0xff]  }
 0x7a1   : > { %1344 = vadd.xlane.f32.xlu1 %v1343_v32  ;;  %v3592_v32 = vld [vmem:[%s4146_s20 + $0x28] sm:$0xff]  }
 0x7b2   : > { %1358 = vrot.lane.b32.xlu1 %v4252_v46, %s3929_s30 }
 0x7b6   : > { %1762 = vrot.lane.b32.xlu1 %v4248_v41, %s3931_s19 }
 0x81a   : > { %v1716_v58 = vpop.xlane.xlu0 %1715 }
 0x81b   : > { %v1726_v56 = vsub.f32 %v1710_v36, %v1716_v58 }
 0x81d   : > { %v1730_v62 = vmul.f32 1.442695, %v1726_v56 }
 0x81e   : > { %v1722_v57 = vpop.xlane.xlu0 %1721  ;;  %v1719_v59 = vpop.xlane.xlu1 %1718 }
 0x81f   : > { %v1728_v60 = vsub.f32 %v1712_v38, %v1722_v57  ;;  %v1727_v61 = vsub.f32 %v1711_v42, %v1719_v59  ;;  %v3593_v57 = vld [vmem:[%s4146_s20 + $0x20] sm:$0xff]  }
 0x821   : > { %v1734_v63 = vmul.f32 1.442695, %v1728_v60  ;;  %v1732_v3 = vmul.f32 1.442695, %v1727_v61  ;;  %v3594_v61 = vld [vmem:[%s4146_s20 + $0x18] sm:$0xff]  }
 0x822   : > { %v1725_v0 = vpop.xlane.xlu1 %1724  ;;  %v1336_v1 = vpop.xlane.xlu0 %1335 }
 0x823   : > { %3726 = vpow2.f32 %v1734_v63  ;;  %v1729_v2 = vsub.f32 %v1713_v44, %v1725_v0 }
 0x824   : > { %3728 = vpow2.f32 %v1730_v62  ;;  %v3595_v62 = vld [vmem:[%s4146_s20 + $0x10] sm:$0xff]  }
 0x825   : > { %v1736_v4 = vmul.f32 1.442695, %v1729_v2  ;;  %3730 = vrcp.f32 %v1336_v1  ;;  %v3596_v1 = vld [vmem:[%s4146_s20 + $0x8] sm:$0xff]   ;;  %v3597_v2 = vld [vmem:[%s4146_s20] sm:$0xff]  }
 0x826   : > { %v1339_v5 = vpop.xlane.xlu1 %1338  ;;  %v1342_v25 = vpop.xlane.xlu0 %1341 }
 0x827   : > { %3732 = vpow2.f32 %v1736_v4 }
 0x828   : > { %3734 = vpow2.f32 %v1732_v3 }
 0x829   : > { %3736 = vrcp.f32 %v1339_v5 }
 0x82a   : > { %v1345_v24 = vpop.xlane.xlu1 %1344 }
 0x82b   : > { %3738 = vrcp.f32 %v1345_v24 }
 0x82c   : > { %3740 = vrcp.f32 %v1342_v25  ;;  %v3166_v25 = vld [vmem:[%s4772_s18] ss:$0 sm:$0xff] }
 0x82e   : > { %v1359_v27 = vpop.permute.xlu1 %1358 }
 0x830   : > { %v3727_v6 = vpop.eup %3726 }
 0x831   : > { %v1744_v7 = vsel %vm1062_vm0, %v3727_v6, 0.0  ;;  %v3729_v8 = vpop.eup %3728 }
 0x832   : > { %1745 = vadd.xlane.f32.xlu0 %v1744_v7  ;;  %v3731_v9 = vpop.eup %3730  ;;  %v1738_v12 = vsel %vm1062_vm0, %v3729_v8, 0.0  ;;  %v1763_v28 = vpop.permute.xlu1 %1762 }
 0x833   : > { %v1350_v17 = vmul.f32 %v3731_v9, %v3719_v48 }
 0x834   : > { %v3733_v10 = vpop.eup %3732 }
 0x835   : > { %v3735_v11 = vpop.eup %3734  ;;  %v1747_v13 = vsel %vm1062_vm0, %v3733_v10, 0.0 }
 0x836   : > { %v3737_v16 = vpop.eup %3736  ;;  %1739 = vadd.xlane.f32.xlu0 %v1738_v12  ;;  %1748 = vadd.xlane.f32.xlu1 %v1747_v13  ;;  %v1741_v22 = vsel %vm1062_vm0, %v3735_v11, 0.0 }
 0x837   : > { %v1351_v15 = vmul.f32 %v3737_v16, %v3723_v52 }
 0x838   : > { %v3739_v34 = vpop.eup %3738 }
 0x839   : > { %v1354_v21 = vpack.c.bf16 %v1351_v15, %v1350_v17 }
 0x83a   : > { %1742 = vadd.xlane.f32.xlu1 %v1741_v22 }
 0x83b   : > { %3406 = vmatprep.mubr.msk.bf16.mxu0 %vm1062_vm0, %v1354_v21 }
 0x84b   : > { %1760 = vrot.lane.b32.xlu1 %v4252_v46, %s3931_s19  ;;  %v3741_v46 = vpop.eup %3740 }
 0x84c   : > { %1360 = vrot.lane.b32.xlu0 %v4248_v41, %s3929_s30  ;;  %v1353_v41 = vmul.f32 %v3739_v34, %v4371_v55  ;;  %v1352_v38 = vmul.f32 %v3741_v46, %v4364_v49  ;;  %v3591_v55 = vld [vmem:[%s4146_s20 + $0x30] sm:$0xff]   ;;  %v3791_v46 = vld [vmem:[#allocation2 + $0x18] sm:$0xff] }
 0x84e   : > { %v1355_v39 = vpack.c.bf16 %v1353_v41, %v1352_v38 }
 0x8bb   : > { %v1746_v29 = vpop.xlane.xlu0 %1745 }
 0x8bf   : > { %v1740_v31 = vpop.xlane.xlu0 %1739  ;;  %v1749_v33 = vpop.xlane.xlu1 %1748 }
 0x8c0   : > { %3742 = vrcp.f32 %v1749_v33  ;;  %v3790_v33 = vld [vmem:[#allocation2 + $0x10] sm:$0xff] }
 0x8c1   : > { %3744 = vrcp.f32 %v1740_v31 }
 0x8c2   : > { %3746 = vrcp.f32 %v1746_v29 }
 0x8c3   : > { %v1361_v36 = vpop.permute.xlu0 %1360  ;;  %v1743_v37 = vpop.xlane.xlu1 %1742 }
 0x8c4   : > { %3748 = vrcp.f32 %v1743_v37  ;;  %3402 = vmatprep.subr.bf16.mxu0 %v1361_v36 }
 0x8c5   : > { %3403 = vmatpush3.bf16.msra.mxu0 %v1361_v36 }
 0x8c6   : > { %3404 = vmatprep.subr.bf16.mxu0 %v1359_v27 }
 0x8c7   : > { %v1761_v40 = vpop.permute.xlu1 %1760 }
 0x8c9   : > { %3405 = vmatpush3.bf16.msra.mxu0 %v1359_v27 }
 0x8ca   : > { %3434 = vmatprep.subr.bf16.mxu0 %v1763_v28 }
 0x8cc   : > { %3407 = vmatmul.mubr.msk.bf16.vlgmr.msra.gmra.mxu0 %vm1062_vm0, %v1355_v39  ;;  %v3792_v39 = vld [vmem:[#allocation2] sm:$0xff] }
 0x8cd   : > { %3435 = vmatpush3.bf16.msra.mxu0 %v1763_v28  ;;  %v3743_v42 = vpop.eup %3742 }
 0x8ce   : > { %3436 = vmatprep.subr.bf16.mxu0 %v1761_v40  ;;  %v3745_v44 = vpop.eup %3744  ;;  %v1757_v48 = vmul.f32 %v3743_v42, %v3733_v10  ;;  %v3793_v42 = vld [vmem:[#allocation2 + $0x8] sm:$0xff] }
 0x8cf   : > { %v3747_v45 = vpop.eup %3746  ;;  %v1754_v50 = vmul.f32 %v3745_v44, %v3729_v8 }
 0x8d0   : > { %v1756_v49 = vmul.f32 %v3747_v45, %v3727_v6  ;;  %v3598_v45 = vld [vmem:[%s4161_s22 + $0xe0] ss:$16 sps:$4 sm:$0xff]  }
 0x8d1   : > { %v3749_v47 = vpop.eup %3748  ;;  %3437 = vmatpush3.bf16.msra.mxu0 %v1761_v40 }
 0x8d2   : > { %v1755_v51 = vmul.f32 %v3749_v47, %v3735_v11  ;;  %v1759_v54 = vpack.c.bf16 %v1757_v48, %v1756_v49  ;;  %3442 = vmatprep.subr.bf16.mxu0 %v3590_v53  ;;  %v3600_v47 = vld [vmem:[%s4161_s22 + $0xe4] ss:$16 sps:$4 sm:$0xff]   ;;  %v3601_v48 = vld [vmem:[%s4161_s22 + $0xe8] ss:$16 sps:$4 sm:$0xff]  }
 0x8d3   : > { %2319 = vmatprep.subr.bf16.mxu1 %v3600_v47 }
 0x8d4   : > { %v1758_v52 = vpack.c.bf16 %v1755_v51, %v1754_v50  ;;  %v3603_v50 = vld [vmem:[%s4161_s22 + $0xec] ss:$16 sps:$4 sm:$0xff]   ;;  %2320 = vmatpush1.bf16.msra.mxu1 %v3598_v45 }
 0x8d6   : > { %3438 = vmatprep.mubr.msk.bf16.mxu0 %vm1062_vm0, %v1758_v52 }
 0x8d7   : > { %3439 = vmatmul.mubr.msk.bf16.vlgmr.msra.gmra.mxu0 %vm1062_vm0, %v1759_v54 }
 0x8d8   : > { %3443 = vmatpush3.bf16.msra.mxu0 %v3590_v53 }
 0x8d9   : > { %3444 = vmatprep.subr.bf16.mxu0 %v3591_v55 }
 0x8dc   : > { %3445 = vmatpush3.bf16.msra.mxu0 %v3591_v55 }
 0x8dd   : > { %3446 = vmatprep.subr.bf16.mxu0 %v3592_v32 }
 0x8e0   : > { %3447 = vmatpush3.bf16.msra.mxu0 %v3592_v32 }
 0x8e1   : > { %3448 = vmatprep.subr.bf16.mxu0 %v3593_v57 }
 0x8e4   : > { %3449 = vmatpush3.bf16.msra.mxu0 %v3593_v57 }
 0x8e5   : > { %3450 = vmatprep.subr.bf16.mxu0 %v3594_v61 }
 0x8e8   : > { %3451 = vmatpush3.bf16.msra.mxu0 %v3594_v61 }
 0x8e9   : > { %3452 = vmatprep.subr.bf16.mxu0 %v3595_v62 }
 0x8ec   : > { %3453 = vmatpush3.bf16.msra.mxu0 %v3595_v62 }
 0x8ed   : > { %3454 = vmatprep.subr.bf16.mxu0 %v3596_v1 }
 0x8f0   : > { %3455 = vmatpush3.bf16.msra.mxu0 %v3596_v1  ;;  %v3606_v1 = vld [vmem:[%s4161_s22 + $0xc4] ss:$16 sps:$4 sm:$0xff]  }
 0x8f1   : > { %3456 = vmatprep.subr.bf16.mxu0 %v3597_v2  ;;  %2321 = vmatprep.subr.bf16.mxu1 %v3606_v1 }
 0x8f4   : > { %3457 = vmatpush3.bf16.msra.mxu0 %v3597_v2  ;;  %v3609_v2 = vld [vmem:[%s4161_s22 + $0xcc] ss:$16 sps:$4 sm:$0xff]  }
 0x8f5   : > { %2372 = vmatprep.subr.bf16.mxu0 %v3603_v50 }
 0x98c   : > { %v3408_v58 = vpop.f32.mrf.mxu0 }
 0x98e   : > { %v1404_v56 = vpop.f32.mrf.mxu0 }
 0x98f   : > { %1423 = vrot.lane.b32.xlu0 %v1404_v56, %s3931_s19 }
 0x990   : > { %v3409_v59 = vpop.f32.mrf.mxu0 }
 0x992   : > { %v1407_v60 = vpop.f32.mrf.mxu0 }
 0x993   : > { %1427 = vrot.lane.b32.xlu0 %v3408_v58, %s3931_s19  ;;  %1425 = vrot.lane.b32.xlu1 %v1407_v60, %s3931_s19 }
 0x997   : > { %1624 = vrot.lane.b32.xlu0 %v4354_v20, %s3930_s25  ;;  %1429 = vrot.lane.b32.xlu1 %v3409_v59, %s3931_s19  ;;  %v3440_v63 = vpop.f32.mrf.mxu0 }
 0x999   : > { %v1806_v0 = vpop.f32.mrf.mxu0 }
 0x99b   : > { %1628 = vrot.lane.b32.xlu0 %v4352_v14, %s3930_s25  ;;  %1626 = vrot.lane.b32.xlu1 %v4359_v30, %s3930_s25  ;;  %v3441_v3 = vpop.f32.mrf.mxu0 }
 0x99d   : > { %v1809_v20 = vpop.f32.mrf.mxu0 }
 0x99f   : > { %1630 = vrot.lane.b32.xlu1 %v4356_v26, %s3930_s25  ;;  %1825 = vrot.lane.b32.xlu0 %v1806_v0, %s3929_s30 }
 0x9a3   : > { %1829 = vrot.lane.b32.xlu0 %v3440_v63, %s3929_s30  ;;  %1827 = vrot.lane.b32.xlu1 %v1809_v20, %s3929_s30  ;;  %v3607_v20 = vld [vmem:[%s4161_s22 + $0xc8] ss:$16 sps:$4 sm:$0xff]  }
 0x9a7   : > { %1831 = vrot.lane.b32.xlu1 %v3441_v3, %s3929_s30  ;;  %v3604_v3 = vld [vmem:[%s4161_s22 + $0xc0] ss:$16 sps:$4 sm:$0xff]  }
 0x9a8   : > { %2322 = vmatpush1.bf16.msra.mxu1 %v3604_v3 }
 0xa01   : > { %v1424_v14 = vpop.permute.xlu0 %1423 }
 0xa02   : > { %1436 = vst.msk [vmem:[#allocation3] sm:$0xff] %vm1435_vm1, %v1424_v14  ;;  %v3612_v14 = vld [vmem:[%s4161_s22 + $0xa4] ss:$16 sps:$4 sm:$0xff]  }
 0xa03   : > { %2323 = vmatprep.subr.bf16.mxu1 %v3612_v14 }
 0xa05   : > { %v1428_v30 = vpop.permute.xlu0 %1427  ;;  %v1426_v4 = vpop.permute.xlu1 %1425 }
 0xa06   : > { %1438 = vst.msk [vmem:[#allocation3 + $0x10] sm:$0xff] %vm1435_vm1, %v1428_v30  ;;  %1437 = vst.msk [vmem:[#allocation3 + $0x8] sm:$0xff] %vm1435_vm1, %v1426_v4  ;;  %v3615_v30 = vld [vmem:[%s4161_s22 + $0xac] ss:$16 sps:$4 sm:$0xff]   ;;  %v3610_v4 = vld [vmem:[%s4161_s22 + $0xa0] ss:$16 sps:$4 sm:$0xff]  }
 0xa07   : > { %2324 = vmatpush1.bf16.msra.mxu1 %v3610_v4  ;;  %v3647_v4 = vld [vmem:[%s4775_s12 + $0xf8] sm:$0xff]  }
 0xa09   : > { %v1625_v5 = vpop.permute.xlu0 %1624  ;;  %v1430_v26 = vpop.permute.xlu1 %1429 }
 0xa0a   : > { %1637 = vst.msk [vmem:[#allocation3] sm:$0xff] %vm1636_vm2, %v1625_v5  ;;  %v3613_v5 = vld [vmem:[%s4161_s22 + $0xa8] ss:$16 sps:$4 sm:$0xff]  }
 0xa0b   : > { %1439 = vst.msk [vmem:[#allocation3 + $0x18] sm:$0xff] %vm1435_vm1, %v1430_v26  ;;  %v3618_v26 = vld [vmem:[%s4161_s22 + $0x84] ss:$16 sps:$4 sm:$0xff]  }
 0xa0c   : > { %2325 = vmatprep.subr.bf16.mxu1 %v3618_v26  ;;  %v3649_v26 = vld [vmem:[%s4775_s12 + $0xb8] sm:$0xff]  }
 0xa0d   : > { %v1629_v6 = vpop.permute.xlu0 %1628  ;;  %v1627_v7 = vpop.permute.xlu1 %1626 }
 0xa0e   : > { %1639 = vst.msk [vmem:[#allocation3 + $0x10] sm:$0xff] %vm1636_vm2, %v1629_v6  ;;  %1638 = vst.msk [vmem:[#allocation3 + $0x8] sm:$0xff] %vm1636_vm2, %v1627_v7  ;;  %v3621_v6 = vld [vmem:[%s4161_s22 + $0x8c] ss:$16 sps:$4 sm:$0xff]   ;;  %v3616_v7 = vld [vmem:[%s4161_s22 + $0x80] ss:$16 sps:$4 sm:$0xff]  }
 0xa0f   : > { %2326 = vmatpush1.bf16.msra.mxu1 %v3616_v7  ;;  %v3652_v7 = vld [vmem:[%s4775_s12 + $0x30] sm:$0xff]  }
 0xa11   : > { %v1826_v8 = vpop.permute.xlu0 %1825  ;;  %v1631_v9 = vpop.permute.xlu1 %1630 }
 0xa12   : > { %1838 = vst.msk [vmem:[#allocation3] sm:$0xff] %vm1837_vm3, %v1826_v8  ;;  %v3619_v8 = vld [vmem:[%s4161_s22 + $0x88] ss:$16 sps:$4 sm:$0xff]  }
 0xa13   : > { %1640 = vst.msk [vmem:[#allocation3 + $0x18] sm:$0xff] %vm1636_vm2, %v1631_v9  ;;  %v3624_v9 = vld [vmem:[%s4161_s22 + $0x64] ss:$16 sps:$4 sm:$0xff]  }
 0xa14   : > { %2327 = vmatprep.subr.bf16.mxu1 %v3624_v9  ;;  %v3654_v9 = vld [vmem:[%s4775_s12 + $0x68] sm:$0xff]  }
 0xa15   : > { %v1830_v10 = vpop.permute.xlu0 %1829  ;;  %v1828_v11 = vpop.permute.xlu1 %1827 }
 0xa16   : > { %1840 = vst.msk [vmem:[#allocation3 + $0x10] sm:$0xff] %vm1837_vm3, %v1830_v10  ;;  %1839 = vst.msk [vmem:[#allocation3 + $0x8] sm:$0xff] %vm1837_vm3, %v1828_v11  ;;  %v3622_v10 = vld [vmem:[%s4161_s22 + $0x60] ss:$16 sps:$4 sm:$0xff]   ;;  %v3625_v11 = vld [vmem:[%s4161_s22 + $0x68] ss:$16 sps:$4 sm:$0xff]  }
 0xa17   : > { %2328 = vmatpush1.bf16.msra.mxu1 %v3622_v10  ;;  %v3655_v10 = vld [vmem:[%s4775_s12 + $0xe8] sm:$0xff]  }
 0xa19   : > { %v1832_v12 = vpop.permute.xlu1 %1831  ;;  %v1842_v13 = vld [vmem:[#allocation3] sm:$0xff] }
 0xa1a   : > { %1841 = vst.msk [vmem:[#allocation3 + $0x18] sm:$0xff] %vm1837_vm3, %v1832_v12  ;;  %v3627_v12 = vld [vmem:[%s4161_s22 + $0x6c] ss:$16 sps:$4 sm:$0xff]  }
 0xa1d   : > { %v1843_v16 = vld [vmem:[#allocation3 + $0x8] sm:$0xff]  ;;  %v1844_v15 = vld [vmem:[#allocation3 + $0x10] sm:$0xff] }
 0xa1e   : > { %v1863_v17 = vpack.c.bf16 %v1843_v16, %v1842_v13  ;;  %v3630_v13 = vld [vmem:[%s4161_s22 + $0x44] ss:$16 sps:$4 sm:$0xff]   ;;  %v3633_v16 = vld [vmem:[%s4161_s22 + $0x4c] ss:$16 sps:$4 sm:$0xff]  }
 0xa1f   : > { %2329 = vmatprep.subr.bf16.mxu1 %v3630_v13  ;;  %v3658_v13 = vld [vmem:[%s4775_s12 + $0x60] sm:$0xff]  }
 0xa20   : > { %3458 = vmatprep.mubr.bf16.mxu0 %v1863_v17  ;;  %v3628_v17 = vld [vmem:[%s4161_s22 + $0x40] ss:$16 sps:$4 sm:$0xff]  }
 0xa21   : > { %v1845_v21 = vld [vmem:[#allocation3 + $0x18] sm:$0xff]  ;;  %2330 = vmatpush1.bf16.msra.mxu1 %v3628_v17  ;;  %v3660_v17 = vld [vmem:[%s4775_s12 + $0x20] sm:$0xff]  }
 0xa22   : > { %v1864_v22 = vpack.c.bf16 %v1845_v21, %v1844_v15  ;;  %v3631_v15 = vld [vmem:[%s4161_s22 + $0x48] ss:$16 sps:$4 sm:$0xff]   ;;  %v3636_v21 = vld [vmem:[%s4161_s22 + $0x24] ss:$16 sps:$4 sm:$0xff]  }
 0xa23   : > { %2331 = vmatprep.subr.bf16.mxu1 %v3636_v21  ;;  %v3662_v21 = vld [vmem:[%s4775_s12 + $0x58] sm:$0xff]  }
 0xa24   : > { %3459 = vmatmul.mubr.bf16.vlgmr.msra.gmra.mxu0 %v1864_v22  ;;  %v3639_v22 = vld [vmem:[%s4161_s22 + $0x2c] ss:$16 sps:$4 sm:$0xff]  }
 0xa25   : > { %2404 = vmatprep.mubr.bf16.mxu0 %v3928_v43  ;;  %2373 = vmatpush1.bf16.msra.mxu0 %v3601_v48 }
 0xa26   : > { %2374 = vmatprep.subr.bf16.mxu0 %v3609_v2 }
 0xa29   : > { %2375 = vmatpush1.bf16.msra.mxu0 %v3607_v20 }
 0xa2a   : > { %2376 = vmatprep.subr.bf16.mxu0 %v3615_v30 }
 0xa2d   : > { %2377 = vmatpush1.bf16.msra.mxu0 %v3613_v5  ;;  %v3648_v5 = vld [vmem:[%s4775_s12 + $0x38] sm:$0xff]  }
 0xa2e   : > { %2378 = vmatprep.subr.bf16.mxu0 %v3621_v6  ;;  %v3651_v6 = vld [vmem:[%s4775_s12 + $0xf0] sm:$0xff]  }
 0xa31   : > { %2379 = vmatpush1.bf16.msra.mxu0 %v3619_v8  ;;  %v3653_v8 = vld [vmem:[%s4775_s12 + $0xb0] sm:$0xff]  }
 0xa32   : > { %2380 = vmatprep.subr.bf16.mxu0 %v3627_v12  ;;  %v3657_v12 = vld [vmem:[%s4775_s12 + $0xa8] sm:$0xff]  }
 0xa35   : > { %2381 = vmatpush1.bf16.msra.mxu0 %v3625_v11  ;;  %v3656_v11 = vld [vmem:[%s4775_s12 + $0x28] sm:$0xff]  }
 0xa36   : > { %2382 = vmatprep.subr.bf16.mxu0 %v3633_v16  ;;  %v3659_v16 = vld [vmem:[%s4775_s12 + $0xe0] sm:$0xff]  }
 0xa39   : > { %2383 = vmatpush1.bf16.msra.mxu0 %v3631_v15  ;;  %v3661_v15 = vld [vmem:[%s4775_s12 + $0xa0] sm:$0xff]  }
 0xa3a   : > { %2384 = vmatprep.subr.bf16.mxu0 %v3639_v22  ;;  %v3663_v22 = vld [vmem:[%s4775_s12 + $0xd8] sm:$0xff]  }
 0xae4   : > { %v3460_v24 = vpop.f32.mrf.mxu0 }
 0xae5   : > { %v1962_v31 = vadd.f32 %v3460_v24, %v3166_v25  ;;  %v3634_v24 = vld [vmem:[%s4161_s22 + $0x20] ss:$16 sps:$4 sm:$0xff]  }
 0xae6   : > { %v1953_v27 = vpop.f32.mrf.mxu0  ;;  %2332 = vmatpush1.bf16.msra.mxu1 %v3634_v24  ;;  %v3664_v24 = vld [vmem:[%s4775_s12 + $0x18] sm:$0xff]  }
 0xae7   : > { %v1954_v28 = vadd.f32 %v3166_v25, %v1953_v27  ;;  %v4426_v41 = vadd.f32 %v3791_v46, %v1962_v31  ;;  %v3642_v27 = vld [vmem:[%s4161_s22 + $0x4] ss:$16 sps:$4 sm:$0xff]   ;;  %v3643_v31 = vld [vmem:[%s4161_s22 + $0x8] ss:$16 sps:$4 sm:$0xff]  }
 0xae8   : > { %v3461_v29 = vpop.f32.mrf.mxu0  ;;  %2333 = vmatprep.subr.bf16.mxu1 %v3642_v27  ;;  %v3666_v27 = vld [vmem:[%s4775_s12 + $0x50] sm:$0xff]  }
 0xae9   : > { %v4423_v34 = vadd.f32 %v3790_v33, %v1954_v28  ;;  %v1965_v38 = vadd.f32 %v3461_v29, %v3166_v25  ;;  %v3645_v28 = vld [vmem:[%s4161_s22 + $0xc] ss:$16 sps:$4 sm:$0xff]   ;;  %v3640_v29 = vld [vmem:[%s4161_s22] ss:$16 sps:$4 sm:$0xff]  }
 0xaea   : > { %v1956_v36 = vpop.f32.mrf.mxu0  ;;  %2334 = vmatpush1.bf16.msra.mxu1 %v3640_v29  ;;  %v3668_v29 = vld [vmem:[%s4775_s12 + $0x10] sm:$0xff]  }
 0xaeb   : > { %v1957_v37 = vadd.f32 %v3166_v25, %v1956_v36  ;;  %1974 = vadd.xlane.f32.xlu0 %v4423_v34  ;;  %v4432_v44 = vadd.f32 %v3793_v42, %v1965_v38  ;;  %v3637_v25 = vld [vmem:[%s4161_s22 + $0x28] ss:$16 sps:$4 sm:$0xff]  }
 0xaec   : > { %2385 = vmatpush1.bf16.msra.mxu0 %v3637_v25  ;;  %v3665_v25 = vld [vmem:[%s4775_s12 + $0x98] sm:$0xff]  }
 0xaed   : > { %v4428_v40 = vadd.f32 %v3792_v39, %v1957_v37  ;;  %2386 = vmatprep.subr.bf16.mxu0 %v3645_v28  ;;  %v3667_v28 = vld [vmem:[%s4775_s12 + $0xd0] sm:$0xff]  }
 0xaef   : > { %1976 = vadd.xlane.f32.xlu1 %v4428_v40  ;;  %1978 = vadd.xlane.f32.xlu0 %v4426_v41 }
 0xaf0   : > { %2387 = vmatpush1.bf16.msra.mxu0 %v3643_v31  ;;  %v3669_v31 = vld [vmem:[%s4775_s12 + $0x90] sm:$0xff]  }
 0xaf1   : > { %3330 = vmatprep.subr.bf16.mxu0 %v3647_v4 }
 0xaf3   : > { %1980 = vadd.xlane.f32.xlu0 %v4432_v44 }
 0xb74   : > { %v1975_v51 = vpop.xlane.xlu0 %1974 }
 0xb75   : > { %v1982_v49 = vmul.f32 0.0078125, %v1975_v51 }
 0xb77   : > { %v4440_v52 = vsub.f32 %v4423_v34, %v1982_v49 }
 0xb78   : > { %v1977_v54 = vpop.xlane.xlu1 %1976  ;;  %v1979_v53 = vpop.xlane.xlu0 %1978 }
 0xb79   : > { %v1983_v55 = vmul.f32 0.0078125, %v1977_v54  ;;  %v1984_v32 = vmul.f32 0.0078125, %v1979_v53  ;;  %v1990_v58 = vmul.f32 %v4440_v52, %v4440_v52  ;;  %v3175_v53 = vld [vmem:[%s4773_s11] ss:$0 sm:$0xff] }
 0xb7b   : > { %v4445_v56 = vsub.f32 %v4428_v40, %v1983_v55  ;;  %v4448_v57 = vsub.f32 %v4426_v41, %v1984_v32  ;;  %1994 = vadd.xlane.f32.xlu0 %v1990_v58 }
 0xb7c   : > { %v1981_v59 = vpop.xlane.xlu0 %1980 }
 0xb7d   : > { %v1985_v60 = vmul.f32 0.0078125, %v1981_v59  ;;  %v1991_v61 = vmul.f32 %v4445_v56, %v4445_v56  ;;  %v1992_v62 = vmul.f32 %v4448_v57, %v4448_v57 }
 0xb7f   : > { %v4455_v63 = vsub.f32 %v4432_v44, %v1985_v60  ;;  %1996 = vadd.xlane.f32.xlu1 %v1991_v61  ;;  %1998 = vadd.xlane.f32.xlu0 %v1992_v62  ;;  %v3176_v60 = vld [vmem:[%s673_s26] ss:$0 sm:$0xff] }
 0xb81   : > { %v1993_v0 = vmul.f32 %v4455_v63, %v4455_v63 }
 0xb83   : > { %2000 = vadd.xlane.f32.xlu1 %v1993_v0 }
 0xc04   : > { %v1995_v33 = vpop.xlane.xlu0 %1994 }
 0xc05   : > { %v2002_v36 = vmul.f32 0.0078125, %v1995_v33  ;;  %v3670_v33 = vld [vmem:[%s4775_s12 + $0x48] sm:$0xff]  }
 0xc07   : > { %v2006_v37 = vadd.f32 1e-05, %v2002_v36  ;;  %v3671_v36 = vld [vmem:[%s4775_s12 + $0xc8] sm:$0xff]  }
 0xc08   : > { %v1997_v46 = vpop.xlane.xlu1 %1996  ;;  %v1999_v38 = vpop.xlane.xlu0 %1998 }
 0xc09   : > { %3750 = vrsqrt.f32 %v2006_v37  ;;  %v2003_v39 = vmul.f32 0.0078125, %v1997_v46  ;;  %v2004_v42 = vmul.f32 0.0078125, %v1999_v38  ;;  %v3672_v37 = vld [vmem:[%s4775_s12 + $0x8] sm:$0xff]   ;;  %v3674_v38 = vld [vmem:[%s4775_s12 + $0x40] sm:$0xff]  }
 0xc0a   : > { %v3673_v46 = vld [vmem:[%s4775_s12 + $0x88] sm:$0xff]  }
 0xc0b   : > { %v2007_v45 = vadd.f32 1e-05, %v2003_v39  ;;  %v2008_v47 = vadd.f32 1e-05, %v2004_v42  ;;  %v3675_v39 = vld [vmem:[%s4775_s12 + $0xc0] sm:$0xff]  }
 0xc0c   : > { %v2001_v48 = vpop.xlane.xlu1 %2000  ;;  %v3676_v42 = vld [vmem:[%s4775_s12] sm:$0xff]  }
 0xc0d   : > { %3752 = vrsqrt.f32 %v2007_v45  ;;  %v2005_v50 = vmul.f32 0.0078125, %v2001_v48  ;;  %v3677_v45 = vld [vmem:[%s4775_s12 + $0x80] sm:$0xff]   ;;  %v2153_v48 = vsub.s32 3, %v4234_v18 }
 0xc0e   : > { %3754 = vrsqrt.f32 %v2008_v47  ;;  %v2070_v47 = vld [vmem:[%s4166_s13] sm:$0xf] }
 0xc0f   : > { %v2009_v51 = vadd.f32 1e-05, %v2005_v50  ;;  %v4539_v50 = vrot.slane %v2070_v47, %v813_v19 }
 0xc11   : > { %3756 = vrsqrt.f32 %v2009_v51  ;;  %v4543_v51 = vrot.slane %v2070_v47, %v821_v23 }
 0xc16   : > { %v3751_v49 = vpop.eup %3750 }
 0xc17   : > { %v2014_v54 = vmul.f32 %v3751_v49, %v4440_v52  ;;  %v4547_v49 = vrot.slane %v2070_v47, %v817_v35 }
 0xc19   : > { %v2024_v58 = vmul.f32 %v3175_v53, %v2014_v54  ;;  %v4549_v54 = vrot.slane %v2070_v47, %v2153_v48 }
 0xc1a   : > { %v3753_v55 = vpop.eup %3752 }
 0xc1b   : > { %v2015_v32 = vmul.f32 %v3753_v55, %v4445_v56  ;;  %v3755_v59 = vpop.eup %3754  ;;  %v2034_v0 = vadd.f32 %v3176_v60, %v2024_v58 }
 0xc1c   : > { %v2016_v1 = vmul.f32 %v3755_v59, %v4448_v57 }
 0xc1d   : > { %v2025_v61 = vmul.f32 %v3175_v53, %v2015_v32 }
 0xc1e   : > { %v3757_v62 = vpop.eup %3756  ;;  %v2026_v20 = vmul.f32 %v3175_v53, %v2016_v1 }
 0xc1f   : > { %v2035_v52 = vadd.f32 %v3176_v60, %v2025_v61  ;;  %v2017_v2 = vmul.f32 %v3757_v62, %v4455_v63  ;;  %v3646_v63 = vld [vmem:[%s4775_s12 + $0x78] sm:$0xff]  }
 0xc20   : > { %v2036_v30 = vadd.f32 %v3176_v60, %v2026_v20  ;;  %3302 = vmatprep.subr.bf16.mxu1 %v3646_v63 }
 0xc21   : > { %v2136_v56 = vpack.c.bf16 %v2035_v52, %v2034_v0  ;;  %v2027_v3 = vmul.f32 %v3175_v53, %v2017_v2 }
 0xc23   : > { %2352 = vmatmul.mubr.bf16.vlgmr.msra.gmra.mxu1 %v2136_v56  ;;  %2405 = vmatmul.mubr.bf16.vlgmr.msra.gmra.mxu0 %v2136_v56  ;;  %v2037_v14 = vadd.f32 %v3176_v60, %v2027_v3 }
 0xc24   : > { %2361 = vmatprep.mubr.bf16.mxu1 %v3928_v43  ;;  %2414 = vmatprep.mubr.bf16.mxu0 %v3928_v43  ;;  %v3650_v43 = vld [vmem:[%s4775_s12 + $0x70] sm:$0xff]  }
 0xc25   : > { %v2137_v57 = vpack.c.bf16 %v2037_v14, %v2036_v30  ;;  %3303 = vmatpush3.bf16.msra.mxu1 %v3648_v5  ;;  %3331 = vmatpush3.bf16.msra.mxu0 %v3649_v26 }
 0xc26   : > { %3304 = vmatprep.subr.bf16.mxu1 %v3650_v43  ;;  %3332 = vmatprep.subr.bf16.mxu0 %v3651_v6 }
 0xc29   : > { %3305 = vmatpush3.bf16.msra.mxu1 %v3652_v7  ;;  %3333 = vmatpush3.bf16.msra.mxu0 %v3653_v8 }
 0xc2a   : > { %3306 = vmatprep.subr.bf16.mxu1 %v3654_v9  ;;  %3334 = vmatprep.subr.bf16.mxu0 %v3655_v10 }
 0xc2b   : > { %2362 = vmatmul.mubr.bf16.gmra.mxu1 %v2137_v57  ;;  %2415 = vmatmul.mubr.bf16.gmra.mxu0 %v2137_v57 }
 0xc2d   : > { %3307 = vmatpush3.bf16.msra.mxu1 %v3656_v11  ;;  %3335 = vmatpush3.bf16.msra.mxu0 %v3657_v12 }
 0xc2e   : > { %3308 = vmatprep.subr.bf16.mxu1 %v3658_v13  ;;  %3336 = vmatprep.subr.bf16.mxu0 %v3659_v16 }
 0xc31   : > { %3309 = vmatpush3.bf16.msra.mxu1 %v3660_v17  ;;  %3337 = vmatpush3.bf16.msra.mxu0 %v3661_v15 }
 0xc32   : > { %3310 = vmatprep.subr.bf16.mxu1 %v3662_v21  ;;  %3338 = vmatprep.subr.bf16.mxu0 %v3663_v22 }
 0xc35   : > { %3311 = vmatpush3.bf16.msra.mxu1 %v3664_v24  ;;  %3339 = vmatpush3.bf16.msra.mxu0 %v3665_v25 }
 0xc36   : > { %3312 = vmatprep.subr.bf16.mxu1 %v3666_v27  ;;  %3340 = vmatprep.subr.bf16.mxu0 %v3667_v28 }
 0xc39   : > { %3313 = vmatpush3.bf16.msra.mxu1 %v3668_v29  ;;  %3341 = vmatpush3.bf16.msra.mxu0 %v3669_v31 }
 0xc3a   : > { %3314 = vmatprep.subr.bf16.mxu1 %v3670_v33  ;;  %3342 = vmatprep.subr.bf16.mxu0 %v3671_v36 }
 0xc3d   : > { %3315 = vmatpush3.bf16.msra.mxu1 %v3672_v37  ;;  %3343 = vmatpush3.bf16.msra.mxu0 %v3673_v46 }
 0xc3e   : > { %3316 = vmatprep.subr.bf16.mxu1 %v3674_v38  ;;  %3344 = vmatprep.subr.bf16.mxu0 %v3675_v39 }
 0xc41   : > { %3317 = vmatpush3.bf16.msra.mxu1 %v3676_v42  ;;  %3345 = vmatpush3.bf16.msra.mxu0 %v3677_v45 }
 0xce3   : > { %v2353_v53 = vpop.f32.mrf.mxu1  ;;  %v2406_v55 = vpop.f32.mrf.mxu0 }
 0xce4   : > { %v4552_v32 = vadd.f32 %v2353_v53, %v4539_v50  ;;  %v4555_v58 = vadd.f32 %v2406_v55, %v4543_v51 }
 0xce5   : > { %v2355_v19 = vpop.f32.mrf.mxu1  ;;  %v2408_v59 = vpop.f32.mrf.mxu0 }
 0xce6   : > { %v2425_v23 = vmul.f32 %v4552_v32, %v4552_v32  ;;  %v2427_v18 = vmul.f32 %v4555_v58, %v4555_v58  ;;  %v4562_v35 = vadd.f32 %v2355_v19, %v4547_v49  ;;  %v4565_v60 = vadd.f32 %v2408_v59, %v4549_v54 }
 0xce7   : > { %v2357_v61 = vpop.f32.mrf.mxu1  ;;  %v2410_v62 = vpop.f32.mrf.mxu0 }
 0xce8   : > { %v2441_v0 = vmul.f32 %v2425_v23, %v4552_v32  ;;  %v2443_v52 = vmul.f32 %v2427_v18, %v4555_v58  ;;  %v2426_v1 = vmul.f32 %v4562_v35, %v4562_v35  ;;  %v2428_v2 = vmul.f32 %v4565_v60, %v4565_v60 }
 0xce9   : > { %v4574_v56 = vadd.f32 %v2357_v61, %v4539_v50  ;;  %v4577_v3 = vadd.f32 %v2410_v62, %v4543_v51  ;;  %v2359_v20 = vpop.f32.mrf.mxu1  ;;  %v2412_v14 = vpop.f32.mrf.mxu0 }
 0xcea   : > { %v2457_v30 = vmul.f32 0.044715, %v2441_v0  ;;  %v2459_v57 = vmul.f32 0.044715, %v2443_v52  ;;  %v2442_v63 = vmul.f32 %v2426_v1, %v4562_v35  ;;  %v2444_v4 = vmul.f32 %v2428_v2, %v4565_v60 }
 0xceb   : > { %v2429_v5 = vmul.f32 %v4574_v56, %v4574_v56  ;;  %v2431_v26 = vmul.f32 %v4577_v3, %v4577_v3  ;;  %v4586_v43 = vadd.f32 %v2359_v20, %v4547_v49  ;;  %v4589_v6 = vadd.f32 %v2412_v14, %v4549_v54  ;;  %v2363_v7 = vpop.f32.mrf.mxu1  ;;  %v2416_v8 = vpop.f32.mrf.mxu0 }
 0xcec   : > { %v2473_v9 = vadd.f32 %v2457_v30, %v4552_v32  ;;  %v2475_v10 = vadd.f32 %v2459_v57, %v4555_v58  ;;  %v2458_v11 = vmul.f32 0.044715, %v2442_v63  ;;  %v2460_v12 = vmul.f32 0.044715, %v2444_v4 }
 0xced   : > { %v2445_v13 = vmul.f32 %v2429_v5, %v4574_v56  ;;  %v2447_v16 = vmul.f32 %v2431_v26, %v4577_v3  ;;  %v2430_v17 = vmul.f32 %v4586_v43, %v4586_v43  ;;  %v2432_v15 = vmul.f32 %v4589_v6, %v4589_v6  ;;  %v2365_v27 = vpop.f32.mrf.mxu1  ;;  %v2418_v36 = vpop.f32.mrf.mxu0 }
 0xcee   : > { %v2489_v21 = vmul.f32 0.7978846, %v2473_v9  ;;  %v2491_v22 = vmul.f32 0.7978846, %v2475_v10  ;;  %v2474_v24 = vadd.f32 %v2458_v11, %v4562_v35  ;;  %v2476_v25 = vadd.f32 %v2460_v12, %v4565_v60 }
 0xcef   : > { %v2461_v28 = vmul.f32 0.044715, %v2445_v13  ;;  %v2463_v29 = vmul.f32 0.044715, %v2447_v16  ;;  %v2446_v31 = vmul.f32 %v2430_v17, %v4586_v43  ;;  %v2448_v33 = vmul.f32 %v2432_v15, %v4589_v6  ;;  %v2367_v55 = vpop.f32.mrf.mxu1  ;;  %v2420_v18 = vpop.f32.mrf.mxu0 }
 0xcf0   : > { %3758 = vtanh.f32 %v2489_v21  ;;  %v2490_v37 = vmul.f32 0.7978846, %v2474_v24  ;;  %v2492_v46 = vmul.f32 0.7978846, %v2476_v25  ;;  %v4604_v38 = vadd.f32 %v2363_v7, %v4539_v50 }
 0xcf1   : > { %3760 = vtanh.f32 %v2491_v22  ;;  %v2477_v39 = vadd.f32 %v2461_v28, %v4574_v56  ;;  %v2479_v42 = vadd.f32 %v2463_v29, %v4577_v3  ;;  %v2462_v45 = vmul.f32 0.044715, %v2446_v31  ;;  %v2369_v63 = vpop.f32.mrf.mxu1  ;;  %v2422_v7 = vpop.f32.mrf.mxu0 }
 0xcf2   : > { %3762 = vtanh.f32 %v2490_v37  ;;  %v2464_v47 = vmul.f32 0.044715, %v2448_v33  ;;  %v2433_v48 = vmul.f32 %v4604_v38, %v4604_v38  ;;  %v4611_v53 = vadd.f32 %v2416_v8, %v4543_v51 }
 0xcf3   : > { %3764 = vtanh.f32 %v2492_v46  ;;  %v2493_v19 = vmul.f32 0.7978846, %v2477_v39  ;;  %v2495_v59 = vmul.f32 0.7978846, %v2479_v42  ;;  %v2478_v23 = vadd.f32 %v2462_v45, %v4586_v43 }
 0xcf4   : > { %v2480_v61 = vadd.f32 %v2464_v47, %v4589_v6  ;;  %v2449_v62 = vmul.f32 %v2433_v48, %v4604_v38  ;;  %v2435_v0 = vmul.f32 %v4611_v53, %v4611_v53  ;;  %v4619_v52 = vadd.f32 %v2365_v27, %v4547_v49 }
 0xcf5   : > { %3766 = vtanh.f32 %v2493_v19  ;;  %v2494_v1 = vmul.f32 0.7978846, %v2478_v23  ;;  %v4622_v2 = vadd.f32 %v2418_v36, %v4549_v54  ;;  %v4625_v20 = vadd.f32 %v2367_v55, %v4539_v50 }
 0xcf6   : > { %3768 = vtanh.f32 %v2495_v59  ;;  %v2496_v14 = vmul.f32 0.7978846, %v2480_v61  ;;  %v2465_v30 = vmul.f32 0.044715, %v2449_v62  ;;  %v2451_v57 = vmul.f32 %v2435_v0, %v4611_v53 }
 0xcf7   : > { %3770 = vtanh.f32 %v2494_v1  ;;  %v2434_v4 = vmul.f32 %v4619_v52, %v4619_v52  ;;  %v2436_v5 = vmul.f32 %v4622_v2, %v4622_v2  ;;  %v2437_v26 = vmul.f32 %v4625_v20, %v4625_v20 }
 0xcf8   : > { %3772 = vtanh.f32 %v2496_v14  ;;  %v2481_v50 = vadd.f32 %v2465_v30, %v4604_v38  ;;  %v2467_v8 = vmul.f32 0.044715, %v2451_v57  ;;  %v4636_v9 = vadd.f32 %v2420_v18, %v4543_v51 }
 0xcf9   : > { %v2450_v10 = vmul.f32 %v2434_v4, %v4619_v52  ;;  %v2452_v11 = vmul.f32 %v2436_v5, %v4622_v2  ;;  %v2453_v12 = vmul.f32 %v2437_v26, %v4625_v20  ;;  %v4642_v13 = vadd.f32 %v2369_v63, %v4547_v49 }
 0xcfa   : > { %v2497_v16 = vmul.f32 0.7978846, %v2481_v50  ;;  %v2483_v17 = vadd.f32 %v2467_v8, %v4611_v53  ;;  %v2439_v15 = vmul.f32 %v4636_v9, %v4636_v9  ;;  %v4648_v21 = vadd.f32 %v2422_v7, %v4549_v54 }
 0xcfb   : > { %v2466_v51 = vmul.f32 0.044715, %v2450_v10  ;;  %v2468_v22 = vmul.f32 0.044715, %v2452_v11  ;;  %v2469_v24 = vmul.f32 0.044715, %v2453_v12  ;;  %v2438_v25 = vmul.f32 %v4642_v13, %v4642_v13 }
 0xcfc   : > { %v2499_v27 = vmul.f32 0.7978846, %v2483_v17  ;;  %v2455_v28 = vmul.f32 %v2439_v15, %v4636_v9  ;;  %v2440_v49 = vmul.f32 %v4648_v21, %v4648_v21  ;;  %3774 = vtanh.f32 %v2497_v16 }
 0xcfd   : > { %v3759_v29 = vpop.eup %3758  ;;  %v2482_v31 = vadd.f32 %v2466_v51, %v4619_v52  ;;  %v2484_v33 = vadd.f32 %v2468_v22, %v4622_v2  ;;  %v2485_v54 = vadd.f32 %v2469_v24, %v4625_v20  ;;  %v2454_v36 = vmul.f32 %v2438_v25, %v4642_v13 }
 0xcfe   : > { %v3761_v37 = vpop.eup %3760  ;;  %v2471_v46 = vmul.f32 0.044715, %v2455_v28  ;;  %v2456_v39 = vmul.f32 %v2440_v49, %v4648_v21  ;;  %3776 = vtanh.f32 %v2499_v27  ;;  %v2521_v62 = vadd.f32 1.0, %v3759_v29 }
 0xcff   : > { %v3763_v42 = vpop.eup %3762  ;;  %v2498_v45 = vmul.f32 0.7978846, %v2482_v31  ;;  %v2500_v47 = vmul.f32 0.7978846, %v2484_v33  ;;  %v2501_v55 = vmul.f32 0.7978846, %v2485_v54 }
 0xd00   : > { %v3765_v48 = vpop.eup %3764  ;;  %v2487_v19 = vadd.f32 %v2471_v46, %v4636_v9  ;;  %v2470_v59 = vmul.f32 0.044715, %v2454_v36  ;;  %v2472_v23 = vmul.f32 0.044715, %v2456_v39  ;;  %v2522_v18 = vadd.f32 1.0, %v3763_v42 }
 0xd01   : > { %3778 = vtanh.f32 %v2498_v45  ;;  %v2523_v30 = vadd.f32 1.0, %v3761_v37  ;;  %v2524_v12 = vadd.f32 1.0, %v3765_v48  ;;  %v2537_v16 = vmul.f32 0.5, %v2521_v62 }
 0xd02   : > { %v3767_v61 = vpop.eup %3766  ;;  %3780 = vtanh.f32 %v2500_v47  ;;  %v2503_v0 = vmul.f32 0.7978846, %v2487_v19  ;;  %v2486_v1 = vadd.f32 %v2470_v59, %v4642_v13  ;;  %v2488_v63 = vadd.f32 %v2472_v23, %v4648_v21 }
 0xd03   : > { %v3769_v14 = vpop.eup %3768  ;;  %v2525_v57 = vadd.f32 1.0, %v3767_v61  ;;  %3782 = vtanh.f32 %v2501_v55  ;;  %v2538_v7 = vmul.f32 0.5, %v2522_v18  ;;  %v2539_v51 = vmul.f32 0.5, %v2523_v30 }
 0xd04   : > { %v3771_v4 = vpop.eup %3770  ;;  %v2527_v5 = vadd.f32 1.0, %v3769_v14  ;;  %3784 = vtanh.f32 %v2503_v0  ;;  %v2502_v26 = vmul.f32 0.7978846, %v2486_v1  ;;  %v2504_v10 = vmul.f32 0.7978846, %v2488_v63 }
 0xd05   : > { %v3773_v50 = vpop.eup %3772  ;;  %v2541_v8 = vmul.f32 0.5, %v2525_v57  ;;  %v2526_v11 = vadd.f32 1.0, %v3771_v4  ;;  %v2540_v24 = vmul.f32 0.5, %v2524_v12  ;;  %v2554_v49 = vmul.f32 %v2538_v7, %v4562_v35 }
 0xd06   : > { %v2543_v17 = vmul.f32 0.5, %v2527_v5  ;;  %3786 = vtanh.f32 %v2502_v26  ;;  %v2528_v15 = vadd.f32 1.0, %v3773_v50  ;;  %v2553_v31 = vmul.f32 %v2537_v16, %v4552_v32 }
 0xd07   : > { %3788 = vtanh.f32 %v2504_v10  ;;  %v2542_v22 = vmul.f32 0.5, %v2526_v11  ;;  %v2557_v25 = vmul.f32 %v2541_v8, %v4574_v56  ;;  %v2556_v33 = vmul.f32 %v2540_v24, %v4565_v60 }
 0xd08   : > { %v2544_v27 = vmul.f32 0.5, %v2528_v15  ;;  %v2559_v28 = vmul.f32 %v2543_v17, %v4577_v3  ;;  %v2555_v36 = vmul.f32 %v2539_v51, %v4555_v58 }
 0xd09   : > { %v2558_v29 = vmul.f32 %v2542_v22, %v4586_v43  ;;  %v3775_v46 = vpop.eup %3774  ;;  %v2569_v39 = vpack.c.bf16 %v2557_v25, %v2553_v31 }
 0xd0a   : > { %v2560_v54 = vmul.f32 %v2544_v27, %v4589_v6  ;;  %v2571_v45 = vpack.c.bf16 %v2559_v28, %v2555_v36  ;;  %v2529_v48 = vadd.f32 1.0, %v3775_v46 }
 0xd0b   : > { %v2570_v37 = vpack.c.bf16 %v2558_v29, %v2554_v49  ;;  %v3777_v56 = vpop.eup %3776 }
 0xd0c   : > { %v2572_v42 = vpack.c.bf16 %v2560_v54, %v2556_v33  ;;  %v2531_v55 = vadd.f32 1.0, %v3777_v56  ;;  %v2545_v14 = vmul.f32 0.5, %v2529_v48 }
 0xd0d   : > { %2807 = vmatprep.mubr.bf16.mxu1 %v2570_v37 }
 0xd0e   : > { %v3779_v3 = vpop.eup %3778  ;;  %2856 = vmatprep.mubr.bf16.mxu0 %v2572_v42  ;;  %2808 = vmatmul.mubr.bf16.vlgmr.msra.gmra.mxu1 %v2569_v39  ;;  %v2547_v57 = vmul.f32 0.5, %v2531_v55  ;;  %v2561_v10 = vmul.f32 %v2545_v14, %v4604_v38 }
 0xd0f   : > { %v3781_v35 = vpop.eup %3780  ;;  %2857 = vmatmul.mubr.bf16.vlgmr.msra.gmra.mxu0 %v2571_v45  ;;  %v2530_v32 = vadd.f32 1.0, %v3779_v3 }
 0xd10   : > { %v3783_v43 = vpop.eup %3782  ;;  %v2532_v60 = vadd.f32 1.0, %v3781_v35  ;;  %v2563_v12 = vmul.f32 %v2547_v57, %v4611_v53 }
 0xd11   : > { %v3785_v47 = vpop.eup %3784  ;;  %v2533_v6 = vadd.f32 1.0, %v3783_v43  ;;  %v2546_v61 = vmul.f32 0.5, %v2530_v32 }
 0xd12   : > { %v2535_v58 = vadd.f32 1.0, %v3785_v47  ;;  %v2548_v1 = vmul.f32 0.5, %v2532_v60 }
 0xd13   : > { %v3787_v19 = vpop.eup %3786  ;;  %v2549_v59 = vmul.f32 0.5, %v2533_v6  ;;  %v2562_v5 = vmul.f32 %v2546_v61, %v4619_v52 }
 0xd14   : > { %v3789_v23 = vpop.eup %3788  ;;  %v2534_v18 = vadd.f32 1.0, %v3787_v19  ;;  %v2551_v62 = vmul.f32 0.5, %v2535_v58  ;;  %v2564_v50 = vmul.f32 %v2548_v1, %v4622_v2  ;;  %v3209_v2 = vld [vmem:[%s685_s14] ss:$0 sm:$0xff] }
 0xd15   : > { %v2536_v0 = vadd.f32 1.0, %v3789_v23  ;;  %v2565_v4 = vmul.f32 %v2549_v59, %v4625_v20 }
 0xd16   : > { %v2550_v30 = vmul.f32 0.5, %v2534_v18  ;;  %v2567_v7 = vmul.f32 %v2551_v62, %v4636_v9 }
 0xd17   : > { %v2552_v63 = vmul.f32 0.5, %v2536_v0  ;;  %v2573_v17 = vpack.c.bf16 %v2565_v4, %v2561_v10 }
 0xd18   : > { %v2566_v26 = vmul.f32 %v2550_v30, %v4642_v13  ;;  %v2575_v20 = vpack.c.bf16 %v2567_v7, %v2563_v12 }
 0xd19   : > { %v2568_v8 = vmul.f32 %v2552_v63, %v4648_v21 }
 0xd1a   : > { %v2574_v11 = vpack.c.bf16 %v2566_v26, %v2562_v5 }
 0xd1b   : > { %v2576_v16 = vpack.c.bf16 %v2568_v8, %v2564_v50 }
 0xd1c   : > { %2815 = vmatprep.mubr.bf16.mxu1 %v2574_v11 }
 0xd1d   : > { %2864 = vmatprep.mubr.bf16.mxu0 %v2576_v16  ;;  %2816 = vmatmul.mubr.bf16.gmra.mxu1 %v2573_v17 }
 0xd1e   : > { %2865 = vmatmul.mubr.bf16.gmra.mxu0 %v2575_v20 }
 0xdce   : > { %v3318_v52 = vpop.f32.mrf.mxu1 }
 0xdcf   : > { %v3346_v13 = vpop.f32.mrf.mxu0 }
 0xdd0   : > { %v3319_v9 = vpop.f32.mrf.mxu1 }
 0xdd1   : > { %v3320_v21 = vadd.f32 %v3319_v9, %v3318_v52  ;;  %v3347_v38 = vpop.f32.mrf.mxu0 }
 0xdd2   : > { %v3321_v15 = vpop.f32.mrf.mxu1  ;;  %v3348_v53 = vadd.f32 %v3347_v38, %v3346_v13 }
 0xdd3   : > { %v2810_v51 = vadd.f32 %v3320_v21, %v3209_v2  ;;  %v3349_v22 = vpop.f32.mrf.mxu0 }
 0xdd4   : > { %v3322_v24 = vpop.f32.mrf.mxu1 }
 0xdd5   : > { %v2859_v25 = vadd.f32 %v3348_v53, %v2810_v51  ;;  %v3323_v27 = vadd.f32 %v3322_v24, %v3321_v15  ;;  %v3350_v28 = vpop.f32.mrf.mxu0 }
 0xdd6   : > { %v3351_v31 = vadd.f32 %v3350_v28, %v3349_v22 }
 0xdd7   : > { %v2873_v49 = vadd.f32 %v2859_v25, %v4423_v34  ;;  %v2813_v29 = vadd.f32 %v3323_v27, %v3209_v2 }
 0xdd9   : > { %2877 = vst [vmem:[#allocation2 + $0x10] sm:$0xff] %v2873_v49  ;;  %v2862_v33 = vadd.f32 %v3351_v31, %v2813_v29 }
 0xddb   : > { %v2874_v54 = vadd.f32 %v2862_v33, %v4428_v40 }
 0xddd   : > { %2878 = vst [vmem:[#allocation2] sm:$0xff] %v2874_v54  ;;  %v3324_v36 = vpop.f32.mrf.mxu1 }
 0xdde   : > { %v3352_v37 = vpop.f32.mrf.mxu0 }
 0xddf   : > { %v3325_v46 = vpop.f32.mrf.mxu1 }
 0xde0   : > { %v3326_v39 = vadd.f32 %v3325_v46, %v3324_v36  ;;  %v3353_v42 = vpop.f32.mrf.mxu0 }
 0xde1   : > { %v3327_v56 = vpop.f32.mrf.mxu1  ;;  %v3354_v3 = vadd.f32 %v3353_v42, %v3352_v37 }
 0xde2   : > { %v2818_v45 = vadd.f32 %v3326_v39, %v3209_v2  ;;  %v3355_v35 = vpop.f32.mrf.mxu0 }
 0xde3   : > { %v3328_v43 = vpop.f32.mrf.mxu1 }
 0xde4   : > { %v2867_v32 = vadd.f32 %v3354_v3, %v2818_v45  ;;  %v3329_v47 = vadd.f32 %v3328_v43, %v3327_v56  ;;  %v3356_v34 = vpop.f32.mrf.mxu0 }
 0xde5   : > { %v3357_v6 = vadd.f32 %v3356_v34, %v3355_v35 }
 0xde6   : > { %v2875_v60 = vadd.f32 %v2867_v32, %v4426_v41  ;;  %v2821_v48 = vadd.f32 %v3329_v47, %v3209_v2 }
 0xde8   : > { %2879 = vst [vmem:[#allocation2 + $0x18] sm:$0xff] %v2875_v60  ;;  %v2870_v40 = vadd.f32 %v3357_v6, %v2821_v48  ;;  %2884 = sbr.rel (%p3242_p4) target bundleno = 3567 (0xdef), region = 88 }
 0xdea   : > { %v2876_v55 = vadd.f32 %v2870_v40, %v4432_v44 }
 0xdec   : > { %2880 = vst [vmem:[#allocation2 + $0x8] sm:$0xff] %v2876_v55 }
 0xded   : > { %2885 = vst [vmem:[%s4175_s0] sm:$0xff] %v2873_v49  ;;  %2886 = vst [vmem:[%s4175_s0 + $0x8] sm:$0xff] %v2874_v54 }
 0xdee   : > { %2887 = vst [vmem:[%s4175_s0 + $0x10] sm:$0xff] %v2875_v60  ;;  %2888 = vst [vmem:[%s4175_s0 + $0x18] sm:$0xff] %v2876_v55 }
 0xdef PF: > { %s4777_s3 = sld [smem:[#allocation14_spill]] }
 0xdf0   : > { %s4778_s25 = sld [smem:[#allocation10_spill]] }
 0xdf1   : > { %s4779_s26 = sld [smem:[#allocation11_spill]] }
 0xdf2   : > { %s4780_s27 = sld [smem:[#allocation17_spill]] }
 0xdf3   : > { %s4781_s28 = sld [smem:[#allocation12_spill]] }
 0xdf4   : > { %s4782_s29 = sld [smem:[#allocation13_spill]] }
 0xdf5   : > { %s29_s15 = sadd.s32 1, %s4777_s3   ;;  %s4783_s30 = sld [smem:[#allocation15_spill]] }
 0xdf6   : > { %p26_p5 = scmp.ge.s32.totalorder %s29_s15, 6   ;;  %s4784_s14 = sld [smem:[#allocation16_spill]] }
 0xdf8   :  { %28 = sbr.rel (!%p26_p5) target bundleno = 18 (0x12), region = 166 }
 0xdfd   :  { %2910 = vsyncpa [#allocation5], 1 }
 0xdfe   :  { %2912 = vsyncpa [#allocation5 + $0x1], 1 }
 0xdff   :  { %2913 = vsyncpa [#allocation7], 1 }
 0xe00   :  { %2915 = vsyncpa [#allocation7 + $0x1], 1 }

// kernel: linear_video_tokenizer_forward.5
= control target key start
LH: loop header
LB: loop body
LE: loop exit
PB: predicated region body
PF: predicated region fallthrough
CT: control target
= control target key end

     0   :  { %s4435_s0 = inlined_call_operand.vmem [shape: f32[2,8,128], index: 0, kind: input, shape index: {}]   ;;  %s4436_s1 = inlined_call_operand.vmem [shape: f32[2,32,128], index: 1, kind: input, shape index: {}]   ;;  %s4437_s2 = inlined_call_operand.vmem [shape: f32[2,8,128], index: 2, kind: input, shape index: {}]   ;;  %s4438_s3 = inlined_call_operand.vmem [shape: f32[2,1,128], index: 3, kind: input, shape index: {}]   ;;  %s4439_s4 = inlined_call_operand.vmem [shape: f32[2,1,128], index: 4, kind: input, shape index: {}]   ;;  %s4440_s5 = inlined_call_operand.vmem [shape: f32[2,1,128], index: 5, kind: input, shape index: {}]   ;;  %s4441_s6 = inlined_call_operand.vmem [shape: f32[2,1,128], index: 6, kind: input, shape index: {}]   ;;  %s4442_s7 = inlined_call_operand.vmem [shape: bf16[2,128,128], index: 7, kind: input, shape index: {}]   ;;  %s4443_s8 = inlined_call_operand.vmem [shape: f32[2,1,128], index: 8, kind: input, shape index: {}]   ;;  %s4444_s9 = inlined_call_operand.vmem [shape: bf16[2,128,256], index: 9, kind: input, shape index: {}]   ;;  %s4445_s10 = inlined_call_operand.vmem [shape: f32[2,1,256], index: 10, kind: input, shape index: {}]   ;;  %s4446_s11 = inlined_call_operand.vmem [shape: bf16[2,128,128], index: 11, kind: input, shape index: {}]   ;;  %s4447_s12 = inlined_call_operand.vmem [shape: f32[2,1,128], index: 12, kind: input, shape index: {}]   ;;  %s4448_s13 = inlined_call_operand.vmem [shape: f32[2,1,128], index: 13, kind: input, shape index: {}]   ;;  %s4449_s14 = inlined_call_operand.vmem [shape: f32[2,1,128], index: 14, kind: input, shape index: {}]   ;;  %s4450_s15 = inlined_call_operand.vmem [shape: bf16[2,128,512], index: 15, kind: input, shape index: {}]   ;;  %s4451_s16 = inlined_call_operand.vmem [shape: f32[2,1,512], index: 16, kind: input, shape index: {}]   ;;  %s4452_s17 = inlined_call_operand.vmem [shape: bf16[2,512,128], index: 17, kind: input, shape index: {}]   ;;  %s4453_s18 = inlined_call_operand.vmem [shape: f32[2,1,128], index: 18, kind: input, shape index: {}]   ;;  %s4454_s19 = inlined_call_operand.vmem [shape: f32[1,128], index: 19, kind: input, shape index: {}]   ;;  %s4455_s20 = inlined_call_operand.vmem [shape: f32[1,128], index: 20, kind: input, shape index: {}]   ;;  %s4456_s21 = inlined_call_operand.hbm [shape: f32[2,8,128], index: 21, kind: output, shape index: {}]  }
   0x1   :  { %4473 = sst [smem:[#allocation22_spill]] %s4435_s0 }
   0x2   :  { %4474 = sst [smem:[#allocation23_spill]] %s4436_s1 }
   0x3   :  { %4475 = sst [smem:[#allocation24_spill]] %s4437_s2 }
   0x4   :  { %4476 = sst [smem:[#allocation25_spill]] %s4438_s3 }
   0x5   :  { %4477 = sst [smem:[#allocation26_spill]] %s4439_s4 }
   0x6   :  { %4478 = sst [smem:[#allocation27_spill]] %s4440_s5 }
   0x7   :  { %4479 = sst [smem:[#allocation28_spill]] %s4442_s7 }
   0x8   :  { %4480 = sst [smem:[#allocation29_spill]] %s4444_s9 }
   0x9   :  { %4481 = sst [smem:[#allocation30_spill]] %s4445_s10 }
   0xa   :  { %4482 = sst [smem:[#allocation31_spill]] %s4446_s11 }
   0xb   :  { %4483 = sst [smem:[#allocation32_spill]] %s4448_s13 }
   0xc   :  { %4484 = sst [smem:[#allocation33_spill]] %s4449_s14 }
   0xd   :  { %4485 = sst [smem:[#allocation34_spill]] %s4450_s15 }
   0xe   :  { %4486 = sst [smem:[#allocation35_spill]] %s4451_s16 }
   0xf   :  { %4487 = sst [smem:[#allocation36_spill]] %s4452_s17 }
  0x10   :  { %4488 = sst [smem:[#allocation37_spill]] %s4453_s18 }
  0x11   :  { %4489 = sst [smem:[#allocation38_spill]] %s4454_s19 }
  0x12   :  { %4490 = sst [smem:[#allocation39_spill]] %s4455_s20 }
  0x13   :  { %4491 = sst [smem:[#allocation40_spill]] %s4456_s21 }
  0x14   :  { %26 = vsyncpa [#allocation6], 0 }
  0x15   :  { %28 = vsyncpa [#allocation6 + $0x1], 0  ;;  %s3843_s2 = smov 0   ;;  %s3845_s25 = smov 0  }
  0x16   :  { %s3847_s26 = smov 0   ;;  %s3849_s27 = smov 0  }
  0x17   :  { %s3851_s3 = smov 0   ;;  %s3853_s28 = smov 0  }
  0x18   :  { %s3855_s29 = smov 0   ;;  %s3857_s0 = smov 0  }
  0x19 LB: > { %4492 = sst [smem:[#allocation8_spill]] %s3696_s2  ;;  %s3031_s4 = sadd.s32 4294967295, %s3724_s0   ;;  %s3724_s0 = sphi %s3857_s0, %s34_s0   ;;  %s3720_s29 = sphi %s3855_s29, %s4557_s29   ;;  %s3716_s28 = sphi %s3853_s28, %s4556_s28   ;;  %s3712_s3 = sphi %s3851_s3, %s4555_s3   ;;  %s3708_s27 = sphi %s3849_s27, %s4554_s27   ;;  %s3704_s26 = sphi %s3847_s26, %s4553_s26   ;;  %s3700_s25 = sphi %s3845_s25, %s4552_s25   ;;  %s3696_s2 = sphi %s3843_s2, %s4551_s2  }
  0x1a   : > { %4493 = sst [smem:[#allocation9_spill]] %s3700_s25  ;;  %s3032_s30 = sadd.s32 4294967294, %s3724_s0  }
  0x1b   : > { %4494 = sst [smem:[#allocation10_spill]] %s3704_s26  ;;  %s43_s5 = sadd.s32 1, %s3716_s28 }
  0x1c   : > { %4495 = sst [smem:[#allocation11_spill]] %s3708_s27  ;;  %p44_p0 = scmp.ge.s32.totalorder %s43_s5, 2 }
  0x1d   : > { %4496 = sst [smem:[#allocation12_spill]] %s3712_s3  ;;  %s46_s22 = sadd.s32 1, %s3720_s29 }
  0x1e   : > { %4497 = sst [smem:[#allocation13_spill]] %s3716_s28  ;;  %p599_p1 = scmp.ne.s32.totalorder %s3704_s26, %s3700_s25 }
  0x1f   : > { %4498 = sst [smem:[#allocation14_spill]] %s3720_s29  ;;  %p600_p2 = scmp.eq.s32.totalorder %s3031_s4, 3 }
  0x20   : > { %4499 = sst [smem:[#allocation15_spill]] %s3724_s0  ;;  %s4559_s5 = smov (%p44_p0, %s43_s5), 0 }
  0x21   : > { %4500 = sst [smem:[#allocation16_spill]] %s4559_s5  ;;  %s4561_s22 = smov (!%p44_p0, %s46_s22), %s3720_s29 }
  0x22   : > { %p3892_p3 = por %p600_p2, %p599_p1  ;;  %p605_p4 = scmp.ne.s32.totalorder %s3700_s25, %s3696_s2 }
  0x23   : > { %p48_p5 = scmp.ge.s32.totalorder %s4561_s22, 2  ;;  %p606_p6 = scmp.eq.s32.totalorder %s3032_s30, 3 }
  0x24   : > { %s4501_s23 = scalar_select %p3892_p3, 1, 0 }
  0x25   : > { %p3035_p7 = scmp.ge.s32.totalorder %s3724_s0, 1  ;;  %p760_p8 = scmp.lt.s32.totalorder %s3724_s0, 5 }
  0x26   : > { %4502 = sst [smem:[#allocation17_spill]] %s4501_s23  ;;  %s4563_s22 = smov (%p48_p5, %s4561_s22), 0 }
  0x27   : > { %4503 = sst [smem:[#allocation18_spill]] %s4563_s22  ;;  %p3902_p9 = por %p606_p6, %p605_p4 }
  0x28   : > { %p761_p10 = pnand %p3035_p7, %p760_p8  ;;  %s586_s24 = ssub.s32 %s3720_s29, %s4563_s22 }
  0x29   : > { %s4504_s1 = scalar_select %p3902_p9, 1, 0 }
  0x2a   : > { %s589_s4 = sadd.s32 1, %s3704_s26  ;;  %p587_p11 = scmp.eq.s32.totalorder %s586_s24, 0 }
  0x2b   : > { %4505 = sst [smem:[#allocation19_spill]] %s4504_s1  ;;  %764 = sbr.rel (%p761_p10) target bundleno = 4337 (0x10f1), region = 104 }
  0x2c   : > { %s3910_s5 = scalar_select %p587_p11, %s3704_s26, %s589_s4  }
  0x2e   : > { %4506 = sst [smem:[#allocation20_spill]] %s3910_s5 }
  0x30   : > { %s4462_s30 = sand.u32 1, %s3700_s25   ;;  %p888_p12 = scmp.lt.s32.totalorder %s3712_s3, 1 }
  0x31   : > { %s3916_s28 = sshll.u32 %s4462_s30, 3  ;;  %p901_p13 = scmp.lt.s32.totalorder %s3708_s27, 1 }
  0x32   : > { %s889_s1 = scalar_select %p888_p12, %s3712_s3, 1 }
  0x33   : > { %s3921_s2 = scalar_select %p901_p13, %s3708_s27, 1 }
  0x34   : > { %s3037_s24 = sshll.u32 %s889_s1, 3  ;;  %s3174_s4 = sshll.u32 %s889_s1, 5 }
  0x35   : > { %s4507_s5 = sld [smem:[#allocation22_spill]]  ;;  %s3176_s22 = sshll.u32 %s3921_s2, 7 }
  0x36   : > { %s4508_s21 = sld [smem:[#allocation23_spill]]  ;;  %s3178_s15 = sshll.u32 %s3921_s2, 8 }
  0x37   : > { %s4510_s20 = sld [smem:[#allocation24_spill]]  ;;  %s887_s14 = scalar_lea.vmem [#allocation5], %s3916_s28 }
  0x38   : > { %s4514_s7 = sld [smem:[#allocation28_spill]] }
  0x39   : > { %s4515_s9 = sld [smem:[#allocation29_spill]] }
  0x3a   : > { %s4516_s10 = sld [smem:[#allocation30_spill]] }
  0x3b   : > { %s891_s30 = scalar_lea.vmem %s4507_s5, %s3037_s24  ;;  %s3045_s5 = sshll.u32 %s3921_s2, 1 }
  0x3c   : > { %s3929_s23 = scalar_lea.vmem %s4508_s21, %s3174_s4  ;;  %s4517_s11 = sld [smem:[#allocation31_spill]] }
  0x3d   : > { %4509 = sst [smem:[#allocation21_spill]] %s3929_s23  ;;  %s3934_s19 = scalar_lea.vmem %s4510_s20, %s3037_s24 }
  0x3e   : > { %s3175_s20 = sshll.u32 %s3921_s2, 6  ;;  %s4522_s4 = sld [smem:[#allocation36_spill]] }
  0x3f   : > { %s3956_s18 = scalar_lea.vmem %s4514_s7, %s3175_s20  ;;  %s3967_s21 = scalar_lea.vmem %s4515_s9, %s3176_s22 }
  0x40   : > { %s3972_s16 = scalar_lea.vmem %s4516_s10, %s3045_s5  ;;  %s3050_s5 = sshll.u32 %s3921_s2, 2 }
  0x41   : > { %s4520_s10 = sld [smem:[#allocation34_spill]] }
  0x42   : > { %s3977_s17 = scalar_lea.vmem %s4517_s11, %s3175_s20  ;;  %s4521_s11 = sld [smem:[#allocation35_spill]] }
  0x43   : > { %s4523_s0 = sld [smem:[#allocation37_spill]] }
  0x44   : > { %s4006_s25 = scalar_lea.vmem %s4522_s4, %s3178_s15  ;;  %s4524_s13 = sld [smem:[#allocation11_spill]] }
  0x47   : > { %s3996_s3 = scalar_lea.vmem %s4520_s10, %s3178_s15 }
  0x48   : > { %s4001_s27 = scalar_lea.vmem %s4521_s11, %s3050_s5 }
  0x49   : > { %s960_s7 = scalar_lea.vmem %s4523_s0, %s3921_s2 }
  0x4a   : > { %p3053_p0 = scmp.ne.s32.totalorder %s4524_s13, 0 }
  0x4b   : > { %s4525_s9 = sld [smem:[#allocation21_spill]] (!%p3053_p0) }
  0x4c   : > { %965 = sbr.rel (%p3053_p0) target bundleno = 85 (0x55), region = 108 }
  0x51   : > { %v966_v0 = vld [vmem:[%s891_s30] sm:$0xff]  ;;  %v969_v2 = vld [vmem:[%s4525_s9 + $0x8] sm:$0xff]  ;;  %v970_v3 = vld [vmem:[%s4525_s9 + $0x10] sm:$0xff] }
  0x52   : > { %v968_v1 = vld [vmem:[%s4525_s9] sm:$0xff]  ;;  %967 = vst [vmem:[#allocation2] sm:$0xff] %v966_v0  ;;  %973 = vst [vmem:[#allocation3] sm:$0xff] %v969_v2  ;;  %v971_v4 = vld [vmem:[%s4525_s9 + $0x18] sm:$0xff] }
  0x53   : > { %972 = vst [vmem:[#allocation3 + $0x8] sm:$0xff] %v968_v1  ;;  %v976_v5 = vld [vmem:[%s3934_s19] sm:$0xff]  ;;  %974 = vst [vmem:[#allocation3 + $0x20] sm:$0xff] %v970_v3 }
  0x54   : > { %975 = vst [vmem:[#allocation3 + $0x10] sm:$0xff] %v971_v4  ;;  %977 = vst [vmem:[#allocation3 + $0x18] sm:$0xff] %v976_v5 }
  0x55 PF: > { %v3471_v12 = vld [vmem:[%s3967_s21 + $0x74] ss:$8 sps:$4 sm:$0xff]   ;;  %v3473_v13 = vld [vmem:[%s3967_s21 + $0x70] ss:$8 sps:$4 sm:$0xff]   ;;  %v3474_v38 = vld [vmem:[%s3967_s21 + $0x64] ss:$8 sps:$4 sm:$0xff]   ;;  %s4528_s29 = scalar_lea.vmem %s4441_s6, %s3921_s2  ;;  %s4533_s22 = scalar_lea.vmem %s4443_s8, %s3921_s2 }
  0x56   : > { %1314 = vmatprep.subr.bf16.mxu1 %v3471_v12  ;;  %v3476_v39 = vld [vmem:[%s3967_s21 + $0x60] ss:$8 sps:$4 sm:$0xff]   ;;  %v3477_v40 = vld [vmem:[%s3967_s21 + $0x54] ss:$8 sps:$4 sm:$0xff]   ;;  %v3480_v42 = vld [vmem:[%s3967_s21 + $0x50] ss:$8 sps:$4 sm:$0xff]  }
  0x57   : > { %1315 = vmatpush1.bf16.msra.mxu1 %v3473_v13  ;;  %v3479_v41 = vld [vmem:[%s3956_s18 + $0x38] sm:$0xff]   ;;  %v3726_v43 = vmov 0.0   ;;  %v3481_v44 = vld [vmem:[%s3967_s21 + $0x44] ss:$8 sps:$4 sm:$0xff]   ;;  %v3483_v45 = vld [vmem:[%s3956_s18 + $0x30] sm:$0xff]   ;;  %v3727_v54 = vmov 0  }
  0x58   : > { %1316 = vmatprep.subr.bf16.mxu1 %v3474_v38  ;;  %3274 = vmatprep.subr.bf16.mxu0 %v3726_v43  ;;  %v3484_v46 = vld [vmem:[%s3967_s21 + $0x40] ss:$8 sps:$4 sm:$0xff]   ;;  %v3485_v47 = vld [vmem:[%s3967_s21 + $0x34] ss:$8 sps:$4 sm:$0xff]   ;;  %v3488_v49 = vld [vmem:[%s3967_s21 + $0x30] ss:$8 sps:$4 sm:$0xff]  }
  0x59   : > { %v1008_v8 = vld [vmem:[#allocation3] sm:$0xff]  ;;  %v978_v11 = vld [vmem:[#allocation2] sm:$0xff]  ;;  %3275 = vmatpush3.bf16.msra.mxu0 %v3479_v41  ;;  %v3493_v53 = vld [vmem:[%s3967_s21 + $0x14] ss:$8 sps:$4 sm:$0xff]   ;;  %1346 = vmatprep.mubr.bf16.mxu1 %v3727_v54  ;;  %vm3728_vm0 = vmmov 0   ;;  %s4526_s13 = sld [smem:[#allocation27_spill]] }
  0x5a   : > { %v1007_v6 = vld [vmem:[#allocation3 + $0x8] sm:$0xff]  ;;  %v1009_v7 = vld [vmem:[#allocation3 + $0x20] sm:$0xff]  ;;  %3276 = vmatprep.subr.bf16.mxu0 %v3726_v43  ;;  %v3491_v51 = vld [vmem:[%s3956_s18 + $0x20] sm:$0xff]   ;;  %3290 = vmatprep.mubr.msk.bf16.mxu0 %vm3728_vm0, %v3726_v43  ;;  %s4529_s15 = sld [smem:[#allocation25_spill]]  ;;  %vm1382_vm1 = vcmask 261120   ;;  %vm1452_vm2 = vcmask 1043456  }
  0x5b   : > { %1014 = vadd.xlane.f32.xlu0 %v1007_v6  ;;  %1018 = vadd.xlane.f32.xlu1 %v1009_v7  ;;  %v1010_v9 = vld [vmem:[#allocation3 + $0x10] sm:$0xff]  ;;  %v1011_v10 = vld [vmem:[#allocation3 + $0x18] sm:$0xff]  ;;  %v3487_v48 = vld [vmem:[%s3956_s18 + $0x28] sm:$0xff]   ;;  %s4531_s24 = sld [smem:[#allocation26_spill]]  ;;  %vm1436_vm3 = vcmask 326656   ;;  %s3729_s0 = smov 96  }
  0x5c   : > { %1317 = vmatpush1.bf16.msra.mxu1 %v3476_v39  ;;  %v3489_v50 = vld [vmem:[%s3967_s21 + $0x24] ss:$8 sps:$4 sm:$0xff]   ;;  %v3492_v52 = vld [vmem:[%s3967_s21 + $0x20] ss:$8 sps:$4 sm:$0xff]   ;;  %v3495_v55 = vld [vmem:[%s3956_s18 + $0x18] sm:$0xff]   ;;  %s3730_s9 = smov 64  }
  0x5d   : > { %1318 = vmatprep.subr.bf16.mxu1 %v3477_v40  ;;  %3277 = vmatpush3.bf16.msra.mxu0 %v3483_v45  ;;  %v3496_v56 = vld [vmem:[%s3967_s21 + $0x10] ss:$8 sps:$4 sm:$0xff]   ;;  %v3497_v57 = vld [vmem:[%s3967_s21 + $0x4] ss:$8 sps:$4 sm:$0xff]   ;;  %v3500_v59 = vld [vmem:[%s3967_s21] ss:$8 sps:$4 sm:$0xff]  }
  0x5e   : > { %3278 = vmatprep.subr.bf16.mxu0 %v3726_v43  ;;  %v3499_v58 = vld [vmem:[%s3956_s18 + $0x10] sm:$0xff]   ;;  %v3501_v60 = vld [vmem:[%s3956_s18 + $0x8] sm:$0xff]   ;;  %v3502_v61 = vld [vmem:[%s3956_s18] sm:$0xff]   ;;  %s3731_s10 = smov 32   ;;  %vm1635_vm4 = vcmask 523520   ;;  %vm1768_vm5 = vcmask 785920  }
  0x5f   : > { %1016 = vadd.xlane.f32.xlu0 %v1008_v8  ;;  %1020 = vadd.xlane.f32.xlu1 %v1010_v9  ;;  %s4527_s19 = scalar_lea.vmem %s4526_s13, %s3921_s2  ;;  %vm1901_vm6 = vcmask 1048320   ;;  %s4534_s13 = scalar_lea.vmem %s4447_s12, %s3921_s2 }
  0x60   : > { %1319 = vmatpush1.bf16.msra.mxu1 %v3480_v42  ;;  %s4530_s5 = scalar_lea.vmem %s4529_s15, %s3921_s2  ;;  %s4535_s18 = sld [smem:[#allocation32_spill]] }
  0x61   : > { %1320 = vmatprep.subr.bf16.mxu1 %v3481_v44  ;;  %3279 = vmatpush3.bf16.msra.mxu0 %v3487_v48  ;;  %s4532_s1 = scalar_lea.vmem %s4531_s24, %s3921_s2  ;;  %s4537_s26 = sld [smem:[#allocation33_spill]] }
  0x62   : > { %3280 = vmatprep.subr.bf16.mxu0 %v3726_v43  ;;  %v3055_v40 = vld [vmem:[%s4532_s1] ss:$0 sm:$0xff]  ;;  %s4540_s23 = sld [smem:[#allocation11_spill]] }
  0x63   : > { %1022 = vadd.xlane.f32.xlu0 %v1011_v10  ;;  %981 = vadd.xlane.f32.xlu1 %v978_v11 }
  0x64   : > { %1321 = vmatpush1.bf16.msra.mxu1 %v3484_v46 }
  0x65   : > { %1322 = vmatprep.subr.bf16.mxu1 %v3485_v47  ;;  %3281 = vmatpush3.bf16.msra.mxu0 %v3491_v51  ;;  %v1224_v51 = vlaneseq }
  0x66   : > { %3282 = vmatprep.subr.bf16.mxu0 %v3726_v43 }
  0x67   : > { %s4538_s15 = scalar_lea.vmem %s4537_s26, %s3921_s2 }
  0x68   : > { %1323 = vmatpush1.bf16.msra.mxu1 %v3488_v49  ;;  %p3167_p1 = scmp.ne.s32.totalorder %s4540_s23, 1 }
  0x69   : > { %1324 = vmatprep.subr.bf16.mxu1 %v3489_v50  ;;  %3283 = vmatpush3.bf16.msra.mxu0 %v3495_v55  ;;  %v4112_v55 = vshrl.u32 %v1224_v51, 7  ;;  %s4541_s20 = sld [smem:[#allocation38_spill]] (!%p3167_p1) }
  0x6a   : > { %3284 = vmatprep.subr.bf16.mxu0 %v3726_v43 }
  0x6c   : > { %1325 = vmatpush1.bf16.msra.mxu1 %v3492_v52 }
  0x6d   : > { %1326 = vmatprep.subr.bf16.mxu1 %v3493_v53  ;;  %3285 = vmatpush3.bf16.msra.mxu0 %v3499_v58 }
  0x6e   : > { %3286 = vmatprep.subr.bf16.mxu0 %v3726_v43 }
  0x70   : > { %1327 = vmatpush1.bf16.msra.mxu1 %v3496_v56 }
  0x71   : > { %1328 = vmatprep.subr.bf16.mxu1 %v3497_v57  ;;  %3287 = vmatpush3.bf16.msra.mxu0 %v3501_v60  ;;  %v1226_v60 = vsub.s32 0, %v4112_v55 }
  0x72   : > { %3288 = vmatprep.subr.bf16.mxu0 %v3726_v43 }
  0x74   : > { %1329 = vmatpush1.bf16.msra.mxu1 %v3500_v59 }
  0x75   : > { %3324 = vmatprep.subr.bf16.mxu1 %v3726_v43  ;;  %3289 = vmatpush3.bf16.msra.mxu0 %v3502_v61 }
  0x76   : > { %3294 = vmatprep.subr.bf16.mxu0 %v3726_v43 }
  0xe4   : > { %v1015_v14 = vpop.xlane.xlu0 %1014  ;;  %v1019_v15 = vpop.xlane.xlu1 %1018 }
  0xe5   : > { %v1024_v16 = vmul.f32 0.0078125, %v1015_v14  ;;  %v1026_v17 = vmul.f32 0.0078125, %v1019_v15 }
  0xe7   : > { %v4021_v18 = vsub.f32 %v1007_v6, %v1024_v16  ;;  %v4023_v19 = vsub.f32 %v1009_v7, %v1026_v17 }
  0xe8   : > { %v1017_v20 = vpop.xlane.xlu0 %1016  ;;  %v1021_v21 = vpop.xlane.xlu1 %1020 }
  0xe9   : > { %v1025_v22 = vmul.f32 0.0078125, %v1017_v20  ;;  %v1034_v23 = vmul.f32 %v4021_v18, %v4021_v18  ;;  %v1027_v24 = vmul.f32 0.0078125, %v1021_v21  ;;  %v1036_v27 = vmul.f32 %v4023_v19, %v4023_v19  ;;  %v3056_v20 = vld [vmem:[%s4527_s19] ss:$0 sm:$0xff] }
  0xeb   : > { %v4027_v25 = vsub.f32 %v1008_v8, %v1025_v22  ;;  %1039 = vadd.xlane.f32.xlu0 %v1034_v23  ;;  %v4029_v26 = vsub.f32 %v1010_v9, %v1027_v24 }
  0xec   : > { %v1023_v28 = vpop.xlane.xlu0 %1022  ;;  %v982_v29 = vpop.xlane.xlu1 %981 }
  0xed   : > { %v1028_v30 = vmul.f32 0.0078125, %v1023_v28  ;;  %v1035_v31 = vmul.f32 %v4027_v25, %v4027_v25  ;;  %v984_v32 = vmul.f32 0.0078125, %v982_v29  ;;  %v1037_v35 = vmul.f32 %v4029_v26, %v4029_v26 }
  0xef   : > { %v4035_v33 = vsub.f32 %v1011_v10, %v1028_v30  ;;  %1043 = vadd.xlane.f32.xlu0 %v1036_v27  ;;  %1041 = vadd.xlane.f32.xlu1 %v1035_v31  ;;  %v4037_v34 = vsub.f32 %v978_v11, %v984_v32  ;;  %v3057_v27 = vld [vmem:[%s4528_s29] ss:$0 sm:$0xff]  ;;  %s4536_s29 = scalar_lea.vmem %s4535_s18, %s3921_s2 }
  0xf1   : > { %v1038_v36 = vmul.f32 %v4035_v33, %v4035_v33  ;;  %v986_v37 = vmul.f32 %v4037_v34, %v4037_v34 }
  0xf3   : > { %1047 = vadd.xlane.f32.xlu0 %v1038_v36  ;;  %1045 = vadd.xlane.f32.xlu1 %v1037_v35 }
  0xf7   : > { %987 = vadd.xlane.f32.xlu1 %v986_v37 }
 0x174   : > { %v1040_v62 = vpop.xlane.xlu0 %1039 }
 0x175   : > { %v1049_v63 = vmul.f32 0.0078125, %v1040_v62  ;;  %v1219_v62 = vld [vmem:[%s3972_s16] sm:$0x3]  ;;  %s4542_s16 = sld [smem:[#allocation39_spill]] (!%p3167_p1) }
 0x177   : > { %v1054_v0 = vadd.f32 1e-05, %v1049_v63 }
 0x178   : > { %v1044_v1 = vpop.xlane.xlu0 %1043  ;;  %v1042_v2 = vpop.xlane.xlu1 %1041 }
 0x179   : > { %3591 = vrsqrt.f32 %v1054_v0  ;;  %v1051_v3 = vmul.f32 0.0078125, %v1044_v1  ;;  %v1050_v4 = vmul.f32 0.0078125, %v1042_v2  ;;  %v1227_v2 = vrot.slane %v1219_v62, %v1226_v60 }
 0x17b   : > { %v1055_v5 = vadd.f32 1e-05, %v1050_v4  ;;  %v1056_v6 = vadd.f32 1e-05, %v1051_v3 }
 0x17c   : > { %v1048_v7 = vpop.xlane.xlu0 %1047  ;;  %v1046_v8 = vpop.xlane.xlu1 %1045 }
 0x17d   : > { %v1052_v9 = vmul.f32 0.0078125, %v1046_v8  ;;  %3593 = vrsqrt.f32 %v1055_v5  ;;  %v1053_v10 = vmul.f32 0.0078125, %v1048_v7 }
 0x17e   : > { %3595 = vrsqrt.f32 %v1056_v6 }
 0x17f   : > { %v1057_v11 = vadd.f32 1e-05, %v1052_v9  ;;  %v1058_v14 = vadd.f32 1e-05, %v1053_v10 }
 0x180   : > { %v988_v12 = vpop.xlane.xlu1 %987 }
 0x181   : > { %v989_v13 = vmul.f32 0.0078125, %v988_v12  ;;  %3597 = vrsqrt.f32 %v1057_v11 }
 0x183   : > { %v990_v15 = vadd.f32 1e-05, %v989_v13 }
 0x185   : > { %3599 = vrsqrt.f32 %v990_v15 }
 0x186   : > { %v3592_v16 = vpop.eup %3591  ;;  %3601 = vrsqrt.f32 %v1058_v14 }
 0x187   : > { %v1064_v17 = vmul.f32 %v3592_v16, %v4021_v18  ;;  %v1230_v16 = vsub.s32 1, %v4112_v55 }
 0x189   : > { %v1075_v23 = vmul.f32 %v3056_v20, %v1064_v17 }
 0x18a   : > { %v3594_v21 = vpop.eup %3593 }
 0x18b   : > { %v1065_v22 = vmul.f32 %v3594_v21, %v4027_v25  ;;  %v3596_v24 = vpop.eup %3595  ;;  %v1086_v30 = vadd.f32 %v3057_v27, %v1075_v23  ;;  %v3054_v25 = vld [vmem:[%s4530_s5] ss:$0 sm:$0xff] }
 0x18c   : > { %v1066_v31 = vmul.f32 %v3596_v24, %v4023_v19  ;;  %v3058_v21 = vld [vmem:[%s4533_s22] ss:$0 sm:$0xff] }
 0x18d   : > { %v1076_v28 = vmul.f32 %v3056_v20, %v1065_v22 }
 0x18e   : > { %v3598_v29 = vpop.eup %3597  ;;  %v1077_v19 = vmul.f32 %v3056_v20, %v1066_v31 }
 0x18f   : > { %v1087_v18 = vadd.f32 %v3057_v27, %v1076_v28  ;;  %v1067_v32 = vmul.f32 %v3598_v29, %v4029_v26 }
 0x190   : > { %v1088_v45 = vadd.f32 %v3057_v27, %v1077_v19 }
 0x191   : > { %v1220_v36 = vpack.c.bf16 %v1087_v18, %v1086_v30  ;;  %v1078_v37 = vmul.f32 %v3056_v20, %v1067_v32 }
 0x192   : > { %v3600_v35 = vpop.eup %3599 }
 0x193   : > { %v3602_v38 = vpop.eup %3601  ;;  %v992_v39 = vmul.f32 %v3600_v35, %v4037_v34  ;;  %1347 = vmatmul.mubr.bf16.vlgmr.msra.gmra.mxu1 %v1220_v36  ;;  %v1089_v41 = vadd.f32 %v3057_v27, %v1078_v37 }
 0x194   : > { %1356 = vmatprep.mubr.bf16.mxu1 %v3727_v54  ;;  %v1068_v42 = vmul.f32 %v3602_v38, %v4035_v33 }
 0x195   : > { %v999_v26 = vmul.f32 %v3054_v25, %v992_v39  ;;  %v1221_v47 = vpack.c.bf16 %v1089_v41, %v1088_v45 }
 0x196   : > { %v1079_v48 = vmul.f32 %v3056_v20, %v1068_v42  ;;  %v1231_v20 = vrot.slane %v1219_v62, %v1230_v16 }
 0x197   : > { %v1006_v44 = vadd.f32 %v3055_v40, %v999_v26 }
 0x198   : > { %v1090_v34 = vadd.f32 %v3057_v27, %v1079_v48 }
 0x199   : > { %v1108_v46 = vpack.c.bf16 %v1006_v44, %v1006_v44 }
 0x19a   : > { %v1222_v49 = vpack.c.bf16 %v1090_v34, %v1090_v34 }
 0x19b   : > { %3291 = vmatmul.mubr.bf16.vlgmr.msra.gmra.mxu0 %v1108_v46  ;;  %1357 = vmatmul.mubr.bf16.gmra.mxu1 %v1221_v47 }
 0x19c   : > { %3300 = vmatprep.mubr.msk.bf16.mxu0 %vm3728_vm0, %v3726_v43  ;;  %1366 = vmatprep.mubr.bf16.mxu1 %v3727_v54 }
 0x1a3   : > { %1367 = vmatmul.mubr.bf16.gmra.mxu1 %v1222_v49 }
 0x1a4   : > { %3330 = vmatprep.mubr.msk.bf16.mxu1 %vm3728_vm0, %v3726_v43 }
 0x253   : > { %v1348_v33 = vpop.f32.mrf.mxu1 }
 0x254   : > { %v1349_v15 = vadd.f32 %v1348_v33, %v1227_v2 }
 0x255   : > { %v1350_v50 = vpop.f32.mrf.mxu1 }
 0x256   : > { %v1351_v35 = vadd.f32 %v1350_v50, %v1231_v20 }
 0x257   : > { %v1352_v52 = vpop.f32.mrf.mxu1 }
 0x258   : > { %v1353_v13 = vadd.f32 %v1352_v52, %v1227_v2 }
 0x259   : > { %v1354_v53 = vpop.f32.mrf.mxu1 }
 0x25a   : > { %v4129_v17 = vpack.c.bf16 %v1353_v13, %v1349_v15  ;;  %v1355_v31 = vadd.f32 %v1354_v53, %v1231_v20 }
 0x25b   : > { %v1197_v56 = vpop.f32.mrf.mxu0  ;;  %v1358_v57 = vpop.f32.mrf.mxu1 }
 0x25c   : > { %v1359_v11 = vadd.f32 %v1358_v57, %v1227_v2  ;;  %v1387_v23 = vsel %vm1382_vm1, %v4129_v17, 0  ;;  %v1198_v24 = vadd.f32 %v3058_v21, %v1197_v56  ;;  %v4156_v36 = vpack.c.bf16 %v1355_v31, %v1351_v35 }
 0x25d   : > { %v3292_v58 = vpop.f32.mrf.mxu0  ;;  %v1360_v59 = vpop.f32.mrf.mxu1 }
 0x25e   : > { %v4143_v28 = vpack.c.bf16 %v1198_v24, %v1198_v24  ;;  %v1361_v18 = vadd.f32 %v1360_v59, %v1231_v20 }
 0x25f   : > { %v1200_v61 = vpop.f32.mrf.mxu0  ;;  %v1362_v63 = vpop.f32.mrf.mxu1 }
 0x260   : > { %v1363_v8 = vadd.f32 %v1362_v63, %v1227_v2 }
 0x261   : > { %v3293_v0 = vpop.f32.mrf.mxu0  ;;  %v1364_v1 = vpop.f32.mrf.mxu1 }
 0x262   : > { %v4123_v12 = vpack.c.bf16 %v1363_v8, %v1359_v11  ;;  %v1365_v29 = vadd.f32 %v1364_v1, %v1231_v20 }
 0x263   : > { %v1368_v3 = vpop.f32.mrf.mxu1 }
 0x264   : > { %v1369_v4 = vadd.f32 %v1368_v3, %v1227_v2  ;;  %v1390_v14 = vsel %vm1382_vm1, %v4123_v12, 0  ;;  %v4152_v32 = vpack.c.bf16 %v1365_v29, %v1361_v18 }
 0x265   : > { %v1370_v5 = vpop.f32.mrf.mxu1 }
 0x266   : > { %v4118_v6 = vpack.c.bf16 %v1369_v4, %v1369_v4  ;;  %v1371_v22 = vadd.f32 %v1370_v5, %v1231_v20 }
 0x267   : > { %v1372_v7 = vpop.f32.mrf.mxu1 }
 0x268   : > { %v1393_v9 = vsel %vm1382_vm1, %v4118_v6, 0  ;;  %v4141_v27 = vpack.c.bf16 %v1371_v22, %v1371_v22 }
 0x269   : > { %v1373_v10 = vpop.f32.mrf.mxu1  ;;  %3295 = vmatpush3.bf16.xpose.msra.mxu0 %v1393_v9 }
 0x26a   : > { %3296 = vmatprep.subr.bf16.mxu0 %v3726_v43  ;;  %v1454_v30 = vsel %vm1452_vm2, %v4141_v27, 0 }
 0x271   : > { %3297 = vmatpush3.bf16.xpose.msra.mxu0 %v1390_v14 }
 0x272   : > { %3298 = vmatprep.subr.bf16.mxu0 %v3726_v43 }
 0x279   : > { %3299 = vmatpush3.bf16.xpose.msra.mxu0 %v1387_v23 }
 0x27a   : > { %3304 = vmatprep.subr.bf16.mxu0 %v3726_v43 }
 0x280   : > { %3301 = vmatmul.mubr.msk.bf16.vlgmr.msra.gmra.mxu0 %vm1382_vm1, %v4143_v28 }
 0x281   : > { %3305 = vmatpush3.bf16.msra.mxu0 %v1454_v30  ;;  %3310 = vmatprep.mubr.msk.bf16.mxu0 %vm3728_vm0, %v3726_v43 }
 0x282   : > { %3306 = vmatprep.subr.bf16.mxu0 %v3726_v43 }
 0x285   : > { %3307 = vmatpush3.bf16.msra.mxu0 %v4152_v32 }
 0x286   : > { %3308 = vmatprep.subr.bf16.mxu0 %v3726_v43 }
 0x289   : > { %3309 = vmatpush3.bf16.msra.mxu0 %v4156_v36 }
 0x28a   : > { %3314 = vmatprep.subr.bf16.mxu0 %v3726_v43 }
 0x340   : > { %v1429_v25 = vpop.f32.mrf.mxu0 }
 0x341   : > { %v1435_v37 = vmul.f32 0.17677669, %v1429_v25 }
 0x342   : > { %v3302_v38 = vpop.f32.mrf.mxu0 }
 0x343   : > { %v1437_v39 = vsel %vm1436_vm3, %v1435_v37, -inf }
 0x344   : > { %1438 = vmax.xlane.f32.xlu0 %v1437_v39  ;;  %v1432_v40 = vpop.f32.mrf.mxu0 }
 0x346   : > { %v3303_v19 = vpop.f32.mrf.mxu0 }
 0x35a   : > { %1507 = vrot.lane.b32.xlu0 %v4118_v6, %s3729_s0 }
 0x3cd   : > { %v1439_v26 = vpop.xlane.xlu0 %1438 }
 0x3ce   : > { %v1440_v41 = vsub.f32 %v1435_v37, %v1439_v26 }
 0x3d0   : > { %v1441_v42 = vmul.f32 1.442695, %v1440_v41 }
 0x3d1   : > { %v1508_v34 = vpop.permute.xlu0 %1507 }
 0x3d2   : > { %3603 = vpow2.f32 %v1441_v42  ;;  %v1519_v33 = vsel %vm1382_vm1, %v1508_v34, 0 }
 0x3df   : > { %v3604_v44 = vpop.eup %3603 }
 0x3e0   : > { %v1443_v45 = vsel %vm1436_vm3, %v3604_v44, 0.0 }
 0x3e1   : > { %1444 = vadd.xlane.f32.xlu1 %v1443_v45 }
 0x3f2   : > { %1505 = vrot.lane.b32.xlu1 %v4123_v12, %s3729_s0 }
 0x3f6   : > { %1503 = vrot.lane.b32.xlu1 %v4129_v17, %s3729_s0 }
 0x3fa   : > { %1498 = vrot.lane.b32.xlu1 %v4143_v28, %s3729_s0 }
 0x3fe   : > { %1579 = vrot.lane.b32.xlu1 %v4152_v32, %s3729_s0 }
 0x46a   : > { %v1445_v46 = vpop.xlane.xlu1 %1444 }
 0x46b   : > { %3605 = vrcp.f32 %v1445_v46 }
 0x46e   : > { %v1506_v50 = vpop.permute.xlu1 %1505 }
 0x46f   : > { %v1516_v51 = vsel %vm1382_vm1, %v1506_v50, 0 }
 0x472   : > { %v1504_v52 = vpop.permute.xlu1 %1503 }
 0x473   : > { %v1513_v53 = vsel %vm1382_vm1, %v1504_v52, 0 }
 0x476   : > { %v1499_v56 = vpop.permute.xlu1 %1498 }
 0x478   : > { %v3606_v47 = vpop.eup %3605 }
 0x479   : > { %v1447_v48 = vmul.f32 %v3606_v47, %v3604_v44 }
 0x47a   : > { %v1580_v11 = vpop.permute.xlu1 %1579 }
 0x47b   : > { %v1448_v49 = vpack.c.bf16 %v1447_v48, %v1447_v48 }
 0x47d   : > { %3311 = vmatmul.mubr.msk.bf16.vlgmr.msra.gmra.mxu0 %vm1436_vm3, %v1448_v49 }
 0x47e   : > { %3315 = vmatpush3.bf16.xpose.msra.mxu0 %v1519_v33  ;;  %3320 = vmatprep.mubr.msk.bf16.mxu0 %vm3728_vm0, %v3726_v43 }
 0x47f   : > { %3316 = vmatprep.subr.bf16.mxu0 %v3726_v43 }
 0x486   : > { %3317 = vmatpush3.bf16.xpose.msra.mxu0 %v1516_v51 }
 0x487   : > { %3318 = vmatprep.subr.bf16.mxu0 %v3726_v43 }
 0x48e   : > { %3319 = vmatpush3.bf16.xpose.msra.mxu0 %v1513_v53 }
 0x48f   : > { %3344 = vmatprep.subr.bf16.mxu0 %v3726_v43 }
 0x495   : > { %3321 = vmatmul.mubr.msk.bf16.vlgmr.msra.gmra.mxu0 %vm1382_vm1, %v1499_v56 }
 0x496   : > { %3350 = vmatprep.mubr.msk.bf16.mxu0 %vm3728_vm0, %v3726_v43 }
 0x53d   : > { %v1490_v57 = vpop.f32.mrf.mxu0 }
 0x53e   : > { %1496 = vst.msk [vmem:[#allocation4] sm:$0xff] %vm1382_vm1, %v1490_v57 }
 0x53f   : > { %v3312_v58 = vpop.f32.mrf.mxu0 }
 0x541   : > { %v1493_v59 = vpop.f32.mrf.mxu0 }
 0x543   : > { %v3313_v61 = vpop.f32.mrf.mxu0 }
 0x555   : > { %v1555_v62 = vpop.f32.mrf.mxu0 }
 0x556   : > { %v1561_v63 = vmul.f32 0.17677669, %v1555_v62 }
 0x557   : > { %v3322_v0 = vpop.f32.mrf.mxu0 }
 0x558   : > { %v1562_v1 = vsel %vm1436_vm3, %v1561_v63, -inf }
 0x559   : > { %1563 = vmax.xlane.f32.xlu0 %v1562_v1  ;;  %v1558_v2 = vpop.f32.mrf.mxu0 }
 0x55b   : > { %v3323_v3 = vpop.f32.mrf.mxu0 }
 0x56f   : > { %1581 = vrot.lane.b32.xlu0 %v4141_v27, %s3729_s0 }
 0x573   : > { %1577 = vrot.lane.b32.xlu0 %v4156_v36, %s3729_s0 }
 0x577   : > { %1641 = vrot.lane.b32.xlu0 %v4123_v12, %s3730_s9 }
 0x57b   : > { %1637 = vrot.lane.b32.xlu0 %v4143_v28, %s3730_s9 }
 0x57f   : > { %1714 = vrot.lane.b32.xlu0 %v4141_v27, %s3730_s9 }
 0x5e2   : > { %v1564_v4 = vpop.xlane.xlu0 %1563 }
 0x5e3   : > { %v1565_v5 = vsub.f32 %v1561_v63, %v1564_v4 }
 0x5e5   : > { %v1566_v7 = vmul.f32 1.442695, %v1565_v5 }
 0x5e6   : > { %v1582_v8 = vpop.permute.xlu0 %1581 }
 0x5e7   : > { %3607 = vpow2.f32 %v1566_v7  ;;  %v1589_v9 = vsel %vm1452_vm2, %v1582_v8, 0 }
 0x5e8   : > { %3325 = vmatpush3.bf16.msra.mxu1 %v1589_v9 }
 0x5e9   : > { %3326 = vmatprep.subr.bf16.mxu1 %v3726_v43 }
 0x5ea   : > { %v1578_v10 = vpop.permute.xlu0 %1577 }
 0x5ec   : > { %3327 = vmatpush3.bf16.msra.mxu1 %v1580_v11 }
 0x5ed   : > { %3328 = vmatprep.subr.bf16.mxu1 %v3726_v43 }
 0x5ee   : > { %v1642_v13 = vpop.permute.xlu0 %1641 }
 0x5ef   : > { %v1652_v35 = vsel %vm1382_vm1, %v1642_v13, 0 }
 0x5f0   : > { %3329 = vmatpush3.bf16.msra.mxu1 %v1578_v10 }
 0x5f1   : > { %3334 = vmatprep.subr.bf16.mxu1 %v3726_v43 }
 0x5f2   : > { %v1638_v14 = vpop.permute.xlu0 %1637 }
 0x5f4   : > { %v3608_v15 = vpop.eup %3607 }
 0x5f5   : > { %v1568_v20 = vsel %vm1436_vm3, %v3608_v15, 0.0 }
 0x5f6   : > { %1569 = vadd.xlane.f32.xlu1 %v1568_v20  ;;  %v1715_v21 = vpop.permute.xlu0 %1714 }
 0x5f7   : > { %v1722_v22 = vsel %vm1452_vm2, %v1715_v21, 0 }
 0x5f8   : > { %3345 = vmatpush3.bf16.msra.mxu0 %v1722_v22 }
 0x5f9   : > { %3346 = vmatprep.subr.bf16.mxu0 %v3726_v43 }
 0x607   : > { %1643 = vrot.lane.b32.xlu1 %v4118_v6, %s3730_s9 }
 0x60b   : > { %1639 = vrot.lane.b32.xlu1 %v4129_v17, %s3730_s9 }
 0x67f   : > { %v1570_v23 = vpop.xlane.xlu1 %1569 }
 0x680   : > { %3609 = vrcp.f32 %v1570_v23 }
 0x683   : > { %v1644_v30 = vpop.permute.xlu1 %1643 }
 0x684   : > { %v1655_v31 = vsel %vm1382_vm1, %v1644_v30, 0  ;;  %v3503_v30 = vld [vmem:[%s3977_s17 + $0x38] sm:$0xff]  }
 0x687   : > { %v1640_v25 = vpop.permute.xlu1 %1639 }
 0x688   : > { %v1649_v37 = vsel %vm1382_vm1, %v1640_v25, 0  ;;  %v3507_v25 = vld [vmem:[%s3977_s17 + $0x18] sm:$0xff]  }
 0x68d   : > { %v3610_v24 = vpop.eup %3609 }
 0x68e   : > { %v1572_v29 = vmul.f32 %v3610_v24, %v3608_v15 }
 0x690   : > { %v1573_v18 = vpack.c.bf16 %v1572_v29, %v1572_v29 }
 0x692   : > { %3331 = vmatmul.mubr.msk.bf16.vlgmr.msra.gmra.mxu1 %vm1436_vm3, %v1573_v18  ;;  %v3504_v18 = vld [vmem:[%s3977_s17 + $0x30] sm:$0xff]  }
 0x693   : > { %3335 = vmatpush3.bf16.xpose.msra.mxu1 %v1655_v31  ;;  %3340 = vmatprep.mubr.msk.bf16.mxu1 %vm3728_vm0, %v3726_v43  ;;  %v3505_v31 = vld [vmem:[%s3977_s17 + $0x28] sm:$0xff]  }
 0x694   : > { %3336 = vmatprep.subr.bf16.mxu1 %v3726_v43 }
 0x69b   : > { %3337 = vmatpush3.bf16.xpose.msra.mxu1 %v1652_v35  ;;  %v3506_v35 = vld [vmem:[%s3977_s17 + $0x20] sm:$0xff]  }
 0x69c   : > { %3338 = vmatprep.subr.bf16.mxu1 %v3726_v43 }
 0x6a3   : > { %3339 = vmatpush3.bf16.xpose.msra.mxu1 %v1649_v37  ;;  %v3508_v37 = vld [vmem:[%s3977_s17 + $0x10] sm:$0xff]  }
 0x6a4   : > { %3364 = vmatprep.subr.bf16.mxu1 %v3726_v43 }
 0x6aa   : > { %3341 = vmatmul.mubr.msk.bf16.vlgmr.msra.gmra.mxu1 %vm1382_vm1, %v1638_v14 }
 0x6ab   : > { %3370 = vmatprep.mubr.msk.bf16.mxu1 %vm3728_vm0, %v3726_v43 }
 0x752   : > { %v4219_v38 = vpop.f32.mrf.mxu1 }
 0x754   : > { %v3332_v39 = vpop.f32.mrf.mxu1 }
 0x755   : > { %v3510_v39 = vld [vmem:[%s3977_s17] sm:$0xff]  }
 0x756   : > { %v1628_v40 = vpop.f32.mrf.mxu1 }
 0x758   : > { %v3333_v19 = vpop.f32.mrf.mxu1 }
 0x76a   : > { %v1691_v26 = vpop.f32.mrf.mxu1 }
 0x76b   : > { %v1697_v41 = vmul.f32 0.17677669, %v1691_v26 }
 0x76c   : > { %v3342_v42 = vpop.f32.mrf.mxu1 }
 0x76d   : > { %v1698_v44 = vsel %vm1436_vm3, %v1697_v41, -inf }
 0x76e   : > { %1699 = vmax.xlane.f32.xlu1 %v1698_v44  ;;  %v1694_v45 = vpop.f32.mrf.mxu1 }
 0x770   : > { %v3343_v46 = vpop.f32.mrf.mxu1 }
 0x77f   : > { %1712 = vrot.lane.b32.xlu1 %v4152_v32, %s3730_s9 }
 0x783   : > { %1710 = vrot.lane.b32.xlu1 %v4156_v36, %s3730_s9 }
 0x787   : > { %1774 = vrot.lane.b32.xlu1 %v4123_v12, %s3731_s10 }
 0x78b   : > { %1770 = vrot.lane.b32.xlu1 %v4143_v28, %s3731_s10 }
 0x7f7   : > { %v1700_v47 = vpop.xlane.xlu1 %1699 }
 0x7f8   : > { %v1701_v48 = vsub.f32 %v1697_v41, %v1700_v47 }
 0x7fa   : > { %v1702_v34 = vmul.f32 1.442695, %v1701_v48 }
 0x7fb   : > { %v1713_v49 = vpop.permute.xlu1 %1712 }
 0x7fc   : > { %3611 = vpow2.f32 %v1702_v34  ;;  %3347 = vmatpush3.bf16.msra.mxu0 %v1713_v49  ;;  %v3629_v34 = vld [vmem:[#allocation2] sm:$0xff] }
 0x7fd   : > { %3348 = vmatprep.subr.bf16.mxu0 %v3726_v43 }
 0x7ff   : > { %v1711_v33 = vpop.permute.xlu1 %1710 }
 0x800   : > { %3349 = vmatpush3.bf16.msra.mxu0 %v1711_v33 }
 0x801   : > { %3354 = vmatprep.subr.bf16.mxu0 %v3726_v43 }
 0x809   : > { %v3612_v50 = vpop.eup %3611 }
 0x80a   : > { %v1704_v51 = vsel %vm1436_vm3, %v3612_v50, 0.0 }
 0x80b   : > { %1705 = vadd.xlane.f32.xlu0 %v1704_v51  ;;  %v3511_v51 = vld [vmem:[%s3996_s3 + $0xe0] ss:$16 sps:$4 sm:$0xff]  }
 0x821   : > { %1776 = vrot.lane.b32.xlu0 %v4118_v6, %s3731_s10  ;;  %v1775_v6 = vpop.permute.xlu1 %1774 }
 0x822   : > { %v1785_v58 = vsel %vm1382_vm1, %v1775_v6, 0 }
 0x825   : > { %1772 = vrot.lane.b32.xlu0 %v4129_v17, %s3731_s10  ;;  %v1771_v61 = vpop.permute.xlu1 %1770 }
 0x894   : > { %v1706_v12 = vpop.xlane.xlu0 %1705 }
 0x895   : > { %3613 = vrcp.f32 %v1706_v12  ;;  %v3514_v12 = vld [vmem:[%s3996_s3 + $0xe8] ss:$16 sps:$4 sm:$0xff]  }
 0x898   : > { %v1777_v53 = vpop.permute.xlu0 %1776 }
 0x899   : > { %v1788_v57 = vsel %vm1382_vm1, %v1777_v53, 0  ;;  %v3522_v53 = vld [vmem:[%s3996_s3 + $0xcc] ss:$16 sps:$4 sm:$0xff]  }
 0x89c   : > { %v1773_v17 = vpop.permute.xlu0 %1772 }
 0x89d   : > { %v1782_v59 = vsel %vm1382_vm1, %v1773_v17, 0 }
 0x8a2   : > { %v3614_v28 = vpop.eup %3613 }
 0x8a3   : > { %v1708_v52 = vmul.f32 %v3614_v28, %v3612_v50  ;;  %v3516_v28 = vld [vmem:[%s3996_s3 + $0xec] ss:$16 sps:$4 sm:$0xff]  }
 0x8a5   : > { %v1709_v56 = vpack.c.bf16 %v1708_v52, %v1708_v52  ;;  %v3519_v52 = vld [vmem:[%s3996_s3 + $0xc4] ss:$16 sps:$4 sm:$0xff]  }
 0x8a7   : > { %3351 = vmatmul.mubr.msk.bf16.vlgmr.msra.gmra.mxu0 %vm1436_vm3, %v1709_v56  ;;  %v3517_v56 = vld [vmem:[%s3996_s3 + $0xc0] ss:$16 sps:$4 sm:$0xff]  }
 0x8a8   : > { %3355 = vmatpush3.bf16.xpose.msra.mxu0 %v1788_v57  ;;  %3360 = vmatprep.mubr.msk.bf16.mxu0 %vm3728_vm0, %v3726_v43  ;;  %v3520_v57 = vld [vmem:[%s3996_s3 + $0xc8] ss:$16 sps:$4 sm:$0xff]  }
 0x8a9   : > { %3356 = vmatprep.subr.bf16.mxu0 %v3726_v43 }
 0x8b0   : > { %3357 = vmatpush3.bf16.xpose.msra.mxu0 %v1785_v58 }
 0x8b1   : > { %3358 = vmatprep.subr.bf16.mxu0 %v3726_v43 }
 0x8b8   : > { %3359 = vmatpush3.bf16.xpose.msra.mxu0 %v1782_v59 }
 0x8bf   : > { %3361 = vmatmul.mubr.msk.bf16.vlgmr.msra.gmra.mxu0 %vm1382_vm1, %v1771_v61  ;;  %v3525_v61 = vld [vmem:[%s3996_s3 + $0xa4] ss:$16 sps:$4 sm:$0xff]  }
 0x8c0   : > { %2356 = vmatprep.mubr.bf16.mxu0 %v3727_v54 }
 0x967   : > { %v1758_v62 = vpop.f32.mrf.mxu0 }
 0x969   : > { %v3352_v63 = vpop.f32.mrf.mxu0 }
 0x96a   : > { %v3523_v63 = vld [vmem:[%s3996_s3 + $0xa0] ss:$16 sps:$4 sm:$0xff]  }
 0x96b   : > { %v1761_v0 = vpop.f32.mrf.mxu0 }
 0x96c   : > { %v3526_v0 = vld [vmem:[%s3996_s3 + $0xa8] ss:$16 sps:$4 sm:$0xff]  }
 0x96d   : > { %v3353_v1 = vpop.f32.mrf.mxu0 }
 0x96e   : > { %v3529_v1 = vld [vmem:[%s3996_s3 + $0x80] ss:$16 sps:$4 sm:$0xff]  }
 0x97f   : > { %v1824_v2 = vpop.f32.mrf.mxu0 }
 0x980   : > { %v1830_v3 = vmul.f32 0.17677669, %v1824_v2  ;;  %v3531_v2 = vld [vmem:[%s3996_s3 + $0x84] ss:$16 sps:$4 sm:$0xff]  }
 0x981   : > { %v3362_v4 = vpop.f32.mrf.mxu0 }
 0x982   : > { %v1831_v5 = vsel %vm1436_vm3, %v1830_v3, -inf  ;;  %v3534_v4 = vld [vmem:[%s3996_s3 + $0x8c] ss:$16 sps:$4 sm:$0xff]  }
 0x983   : > { %1832 = vmax.xlane.f32.xlu0 %v1831_v5  ;;  %v1827_v7 = vpop.f32.mrf.mxu0  ;;  %v3537_v5 = vld [vmem:[%s3996_s3 + $0x64] ss:$16 sps:$4 sm:$0xff]  }
 0x984   : > { %v3540_v7 = vld [vmem:[%s3996_s3 + $0x6c] ss:$16 sps:$4 sm:$0xff]  }
 0x985   : > { %v3363_v8 = vpop.f32.mrf.mxu0 }
 0x986   : > { %v3535_v8 = vld [vmem:[%s3996_s3 + $0x60] ss:$16 sps:$4 sm:$0xff]  }
 0x999   : > { %1847 = vrot.lane.b32.xlu0 %v4141_v27, %s3731_s10 }
 0x99d   : > { %1843 = vrot.lane.b32.xlu0 %v4156_v36, %s3731_s10 }
 0x9a1   : > { %1765 = vrot.lane.b32.xlu0 %v1758_v62, %s3730_s9  ;;  %v3528_v62 = vld [vmem:[%s3996_s3 + $0xac] ss:$16 sps:$4 sm:$0xff]  }
 0xa0c   : > { %v1833_v9 = vpop.xlane.xlu0 %1832 }
 0xa0d   : > { %v1834_v10 = vsub.f32 %v1830_v3, %v1833_v9  ;;  %v3532_v3 = vld [vmem:[%s3996_s3 + $0x88] ss:$16 sps:$4 sm:$0xff]  }
 0xa0e   : > { %v3538_v9 = vld [vmem:[%s3996_s3 + $0x68] ss:$16 sps:$4 sm:$0xff]  }
 0xa0f   : > { %v1835_v11 = vmul.f32 1.442695, %v1834_v10  ;;  %v3543_v10 = vld [vmem:[%s3996_s3 + $0x44] ss:$16 sps:$4 sm:$0xff]  }
 0xa10   : > { %v1848_v13 = vpop.permute.xlu0 %1847 }
 0xa11   : > { %3615 = vpow2.f32 %v1835_v11  ;;  %v1855_v14 = vsel %vm1452_vm2, %v1848_v13, 0  ;;  %v3546_v11 = vld [vmem:[%s3996_s3 + $0x4c] ss:$16 sps:$4 sm:$0xff]   ;;  %v3541_v13 = vld [vmem:[%s3996_s3 + $0x40] ss:$16 sps:$4 sm:$0xff]  }
 0xa12   : > { %3365 = vmatpush3.bf16.msra.mxu1 %v1855_v14  ;;  %v3544_v14 = vld [vmem:[%s3996_s3 + $0x48] ss:$16 sps:$4 sm:$0xff]  }
 0xa13   : > { %3366 = vmatprep.subr.bf16.mxu1 %v3726_v43 }
 0xa14   : > { %v1844_v36 = vpop.permute.xlu0 %1843 }
 0xa18   : > { %v1766_v23 = vpop.permute.xlu0 %1765 }
 0xa1e   : > { %v3616_v15 = vpop.eup %3615 }
 0xa1f   : > { %v1837_v20 = vsel %vm1436_vm3, %v3616_v15, 0.0 }
 0xa20   : > { %1838 = vadd.xlane.f32.xlu1 %v1837_v20  ;;  %v3552_v20 = vld [vmem:[%s3996_s3 + $0x2c] ss:$16 sps:$4 sm:$0xff]  }
 0xa31   : > { %1845 = vrot.lane.b32.xlu1 %v4152_v32, %s3731_s10 }
 0xa35   : > { %1632 = vrot.lane.b32.xlu1 %v4219_v38, %s3731_s10  ;;  %v3509_v38 = vld [vmem:[%s3977_s17 + $0x8] sm:$0xff]  }
 0xaa9   : > { %v1839_v27 = vpop.xlane.xlu1 %1838 }
 0xaaa   : > { %3617 = vrcp.f32 %v1839_v27  ;;  %v3547_v27 = vld [vmem:[%s3996_s3 + $0x20] ss:$16 sps:$4 sm:$0xff]  }
 0xaad   : > { %v1846_v21 = vpop.permute.xlu1 %1845 }
 0xaae   : > { %3367 = vmatpush3.bf16.msra.mxu1 %v1846_v21  ;;  %v3555_v21 = vld [vmem:[%s3996_s3 + $0x4] ss:$16 sps:$4 sm:$0xff]  }
 0xaaf   : > { %3368 = vmatprep.subr.bf16.mxu1 %v3726_v43 }
 0xab1   : > { %v1633_v22 = vpop.permute.xlu1 %1632 }
 0xab2   : > { %1636 = vst.msk [vmem:[#allocation4] sm:$0xff] %vm1635_vm4, %v1633_v22  ;;  %3369 = vmatpush3.bf16.msra.mxu1 %v1844_v36  ;;  %v3550_v36 = vld [vmem:[%s3996_s3 + $0x28] ss:$16 sps:$4 sm:$0xff]   ;;  %v3558_v22 = vld [vmem:[%s3996_s3 + $0xc] ss:$16 sps:$4 sm:$0xff]  }
 0xab3   : > { %3374 = vmatprep.subr.bf16.mxu1 %v3726_v43  ;;  %1769 = vst.msk [vmem:[#allocation4] sm:$0xff] %vm1768_vm5, %v1766_v23  ;;  %v3553_v23 = vld [vmem:[%s3996_s3] ss:$16 sps:$4 sm:$0xff]  }
 0xab7   : > { %v3618_v32 = vpop.eup %3617 }
 0xab8   : > { %v1841_v24 = vmul.f32 %v3618_v32, %v3616_v15  ;;  %v3549_v15 = vld [vmem:[%s3996_s3 + $0x24] ss:$16 sps:$4 sm:$0xff]   ;;  %v3556_v32 = vld [vmem:[%s3996_s3 + $0x8] ss:$16 sps:$4 sm:$0xff]  }
 0xaba   : > { %v1842_v29 = vpack.c.bf16 %v1841_v24, %v1841_v24 }
 0xabc   : > { %3371 = vmatmul.mubr.msk.bf16.vlgmr.msra.gmra.mxu1 %vm1436_vm3, %v1842_v29 }
 0xabd   : > { %3390 = vmatprep.mubr.msk.bf16.mxu1 %vm3728_vm0, %v3726_v43  ;;  %3375 = vmatpush3.bf16.msra.mxu1 %v3503_v30 }
 0xabe   : > { %3376 = vmatprep.subr.bf16.mxu1 %v3726_v43 }
 0xac1   : > { %3377 = vmatpush3.bf16.msra.mxu1 %v3504_v18 }
 0xac2   : > { %3378 = vmatprep.subr.bf16.mxu1 %v3726_v43 }
 0xac5   : > { %3379 = vmatpush3.bf16.msra.mxu1 %v3505_v31  ;;  %v3100_v31 = vld [vmem:[%s4536_s29] ss:$0 sm:$0xff] }
 0xac6   : > { %3380 = vmatprep.subr.bf16.mxu1 %v3726_v43 }
 0xac9   : > { %3381 = vmatpush3.bf16.msra.mxu1 %v3506_v35 }
 0xaca   : > { %3382 = vmatprep.subr.bf16.mxu1 %v3726_v43 }
 0xacd   : > { %3383 = vmatpush3.bf16.msra.mxu1 %v3507_v25  ;;  %v3101_v25 = vld [vmem:[%s4538_s15] ss:$0 sm:$0xff] }
 0xace   : > { %3384 = vmatprep.subr.bf16.mxu1 %v3726_v43 }
 0xad1   : > { %3385 = vmatpush3.bf16.msra.mxu1 %v3508_v37 }
 0xad2   : > { %3386 = vmatprep.subr.bf16.mxu1 %v3726_v43 }
 0xad5   : > { %3387 = vmatpush3.bf16.msra.mxu1 %v3509_v38 }
 0xad6   : > { %3388 = vmatprep.subr.bf16.mxu1 %v3726_v43  ;;  %v3091_v43 = vld [vmem:[%s4534_s13] ss:$0 sm:$0xff] }
 0xad9   : > { %3389 = vmatpush3.bf16.msra.mxu1 %v3510_v39 }
 0xada   : > { %2365 = vmatprep.subr.bf16.mxu1 %v3516_v28  ;;  %v3576_v28 = vld [vmem:[%s4006_s25 + $0xd8] sm:$0xff]  }
 0xb7c   : > { %v1891_v40 = vpop.f32.mrf.mxu1 }
 0xb7d   : > { %1898 = vrot.lane.b32.xlu1 %v1891_v40, %s3729_s0  ;;  %v3559_v40 = vld [vmem:[%s4006_s25 + $0x78] sm:$0xff]  }
 0xb7e   : > { %v3372_v19 = vpop.f32.mrf.mxu1 }
 0xb7f   : > { %v3560_v19 = vld [vmem:[%s4006_s25 + $0xf8] sm:$0xff]  }
 0xb80   : > { %v1894_v26 = vpop.f32.mrf.mxu1 }
 0xb81   : > { %v3561_v26 = vld [vmem:[%s4006_s25 + $0x38] sm:$0xff]  }
 0xb82   : > { %v3373_v41 = vpop.f32.mrf.mxu1 }
 0xb83   : > { %v3562_v41 = vld [vmem:[%s4006_s25 + $0xb8] sm:$0xff]  }
 0xbef   : > { %v1899_v42 = vpop.permute.xlu1 %1898 }
 0xbf0   : > { %1902 = vst.msk [vmem:[#allocation4] sm:$0xff] %vm1901_vm6, %v1899_v42  ;;  %v3563_v42 = vld [vmem:[%s4006_s25 + $0x70] sm:$0xff]  }
 0xbf7   : > { %v1903_v44 = vld [vmem:[#allocation4] sm:$0xff] }
 0xbf8   : > { %v1921_v45 = vpack.c.bf16 %v1903_v44, %v1903_v44  ;;  %v3564_v44 = vld [vmem:[%s4006_s25 + $0xf0] sm:$0xff]  }
 0xbfa   : > { %3391 = vmatmul.mubr.bf16.vlgmr.msra.gmra.mxu1 %v1921_v45  ;;  %v3565_v45 = vld [vmem:[%s4006_s25 + $0x30] sm:$0xff]  }
 0xbfb   : > { %2397 = vmatprep.mubr.bf16.mxu1 %v3727_v54  ;;  %v3513_v54 = vld [vmem:[%s3996_s3 + $0xe4] ss:$16 sps:$4 sm:$0xff]   ;;  %2366 = vmatpush1.bf16.msra.mxu1 %v3514_v12  ;;  %v3575_v12 = vld [vmem:[%s4006_s25 + $0x58] sm:$0xff]  }
 0xbfc   : > { %2324 = vmatprep.subr.bf16.mxu0 %v3513_v54  ;;  %2367 = vmatprep.subr.bf16.mxu1 %v3522_v53  ;;  %v3574_v54 = vld [vmem:[%s4006_s25 + $0xa0] sm:$0xff]   ;;  %v3578_v53 = vld [vmem:[%s4006_s25 + $0x98] sm:$0xff]  }
 0xbfd   : > { %2325 = vmatpush1.bf16.msra.mxu0 %v3511_v51  ;;  %v3573_v51 = vld [vmem:[%s4006_s25 + $0x20] sm:$0xff]  }
 0xbfe   : > { %2326 = vmatprep.subr.bf16.mxu0 %v3519_v52  ;;  %v3577_v52 = vld [vmem:[%s4006_s25 + $0x18] sm:$0xff]  }
 0xbff   : > { %2368 = vmatpush1.bf16.msra.mxu1 %v3520_v57  ;;  %v3580_v57 = vld [vmem:[%s4006_s25 + $0xd0] sm:$0xff]  }
 0xc00   : > { %2369 = vmatprep.subr.bf16.mxu1 %v3528_v62  ;;  %v3586_v62 = vld [vmem:[%s4006_s25 + $0x88] sm:$0xff]  }
 0xc01   : > { %2327 = vmatpush1.bf16.msra.mxu0 %v3517_v56  ;;  %v3579_v56 = vld [vmem:[%s4006_s25 + $0x50] sm:$0xff]  }
 0xc02   : > { %2328 = vmatprep.subr.bf16.mxu0 %v3525_v61  ;;  %v3585_v61 = vld [vmem:[%s4006_s25 + $0x8] sm:$0xff]  }
 0xc03   : > { %2370 = vmatpush1.bf16.msra.mxu1 %v3526_v0  ;;  %v3588_v0 = vld [vmem:[%s4006_s25 + $0xc0] sm:$0xff]  }
 0xc04   : > { %2371 = vmatprep.subr.bf16.mxu1 %v3534_v4  ;;  %v2076_v4 = vld [vmem:[%s4001_s27] sm:$0xf] }
 0xc05   : > { %2329 = vmatpush1.bf16.msra.mxu0 %v3523_v63  ;;  %v3587_v63 = vld [vmem:[%s4006_s25 + $0x40] sm:$0xff]  }
 0xc06   : > { %2330 = vmatprep.subr.bf16.mxu0 %v3531_v2  ;;  %v3590_v2 = vld [vmem:[%s4006_s25 + $0x80] sm:$0xff]  }
 0xc07   : > { %2372 = vmatpush1.bf16.msra.mxu1 %v3532_v3  ;;  %v2154_v3 = vsub.s32 2, %v4112_v55 }
 0xc08   : > { %2373 = vmatprep.subr.bf16.mxu1 %v3540_v7  ;;  %v2147_v7 = vrot.slane %v2076_v4, %v1226_v60 }
 0xc09   : > { %2331 = vmatpush1.bf16.msra.mxu0 %v3529_v1  ;;  %v3589_v1 = vld [vmem:[%s4006_s25] sm:$0xff]  }
 0xc0a   : > { %2332 = vmatprep.subr.bf16.mxu0 %v3537_v5  ;;  %v2158_v5 = vsub.s32 3, %v4112_v55 }
 0xc0b   : > { %2374 = vmatpush1.bf16.msra.mxu1 %v3538_v9  ;;  %v2151_v9 = vrot.slane %v2076_v4, %v1230_v16 }
 0xc0c   : > { %2375 = vmatprep.subr.bf16.mxu1 %v3546_v11 }
 0xc0d   : > { %2333 = vmatpush1.bf16.msra.mxu0 %v3535_v8  ;;  %v2155_v8 = vrot.slane %v2076_v4, %v2154_v3 }
 0xc0e   : > { %2334 = vmatprep.subr.bf16.mxu0 %v3543_v10  ;;  %v2159_v10 = vrot.slane %v2076_v4, %v2158_v5 }
 0xc0f   : > { %2376 = vmatpush1.bf16.msra.mxu1 %v3544_v14 }
 0xc10   : > { %2377 = vmatprep.subr.bf16.mxu1 %v3552_v20 }
 0xc11   : > { %2335 = vmatpush1.bf16.msra.mxu0 %v3541_v13 }
 0xc12   : > { %2336 = vmatprep.subr.bf16.mxu0 %v3549_v15 }
 0xc13   : > { %2378 = vmatpush1.bf16.msra.mxu1 %v3550_v36 }
 0xc14   : > { %2379 = vmatprep.subr.bf16.mxu1 %v3558_v22 }
 0xc15   : > { %2337 = vmatpush1.bf16.msra.mxu0 %v3547_v27 }
 0xc16   : > { %2338 = vmatprep.subr.bf16.mxu0 %v3555_v21 }
 0xc17   : > { %2380 = vmatpush1.bf16.msra.mxu1 %v3556_v32 }
 0xc18   : > { %3252 = vmatprep.subr.bf16.mxu1 %v3560_v19 }
 0xc19   : > { %2339 = vmatpush1.bf16.msra.mxu0 %v3553_v23 }
 0xc1a   : > { %3230 = vmatprep.subr.bf16.mxu0 %v3559_v40 }
 0xcba   : > { %v2010_v46 = vpop.f32.mrf.mxu1 }
 0xcbb   : > { %v2011_v47 = vadd.f32 %v3091_v43, %v2010_v46  ;;  %v3566_v43 = vld [vmem:[%s4006_s25 + $0xb0] sm:$0xff]   ;;  %v3567_v46 = vld [vmem:[%s4006_s25 + $0x68] sm:$0xff]  }
 0xcbc   : > { %v3392_v48 = vpop.f32.mrf.mxu1 }
 0xcbd   : > { %v4287_v49 = vadd.f32 %v3629_v34, %v2011_v47  ;;  %v3568_v47 = vld [vmem:[%s4006_s25 + $0xe8] sm:$0xff]  }
 0xcbe   : > { %v2013_v33 = vpop.f32.mrf.mxu1  ;;  %v3569_v48 = vld [vmem:[%s4006_s25 + $0x28] sm:$0xff]  }
 0xcbf   : > { %2019 = vadd.xlane.f32.xlu0 %v4287_v49  ;;  %v3570_v34 = vld [vmem:[%s4006_s25 + $0xa8] sm:$0xff]   ;;  %v3571_v33 = vld [vmem:[%s4006_s25 + $0x60] sm:$0xff]  }
 0xcc0   : > { %v3393_v50 = vpop.f32.mrf.mxu1 }
 0xcc1   : > { %v3572_v50 = vld [vmem:[%s4006_s25 + $0xe0] sm:$0xff]  }
 0xd48   : > { %v2020_v6 = vpop.xlane.xlu0 %2019 }
 0xd49   : > { %v2021_v58 = vmul.f32 0.0078125, %v2020_v6  ;;  %v3581_v6 = vld [vmem:[%s4006_s25 + $0x10] sm:$0xff]  }
 0xd4b   : > { %v2022_v17 = vsub.f32 %v4287_v49, %v2021_v58  ;;  %v3582_v58 = vld [vmem:[%s4006_s25 + $0x90] sm:$0xff]  }
 0xd4d   : > { %v2023_v59 = vmul.f32 %v2022_v17, %v2022_v17 }
 0xd4f   : > { %2024 = vadd.xlane.f32.xlu1 %v2023_v59  ;;  %v3584_v59 = vld [vmem:[%s4006_s25 + $0xc8] sm:$0xff]  }
 0xdd8   : > { %v2025_v24 = vpop.xlane.xlu1 %2024 }
 0xdd9   : > { %v2026_v29 = vmul.f32 0.0078125, %v2025_v24 }
 0xddb   : > { %v2027_v30 = vadd.f32 1e-05, %v2026_v29 }
 0xddd   : > { %3619 = vrsqrt.f32 %v2027_v30 }
 0xdea   : > { %v3620_v18 = vpop.eup %3619 }
 0xdeb   : > { %v2029_v35 = vmul.f32 %v3620_v18, %v2022_v17  ;;  %v3583_v17 = vld [vmem:[%s4006_s25 + $0x48] sm:$0xff]  }
 0xded   : > { %v2036_v37 = vmul.f32 %v3100_v31, %v2029_v35 }
 0xdef   : > { %v2043_v38 = vadd.f32 %v3101_v25, %v2036_v37 }
 0xdf1   : > { %v2142_v39 = vpack.c.bf16 %v2043_v38, %v2043_v38 }
 0xdf3   : > { %2357 = vmatmul.mubr.bf16.vlgmr.msra.gmra.mxu0 %v2142_v39  ;;  %2398 = vmatmul.mubr.bf16.vlgmr.msra.gmra.mxu1 %v2142_v39 }
 0xdf4   : > { %3231 = vmatpush3.bf16.msra.mxu0 %v3561_v26  ;;  %3253 = vmatpush3.bf16.msra.mxu1 %v3562_v41 }
 0xdf5   : > { %3232 = vmatprep.subr.bf16.mxu0 %v3563_v42  ;;  %3254 = vmatprep.subr.bf16.mxu1 %v3564_v44 }
 0xdf8   : > { %3233 = vmatpush3.bf16.msra.mxu0 %v3565_v45  ;;  %3255 = vmatpush3.bf16.msra.mxu1 %v3566_v43 }
 0xdf9   : > { %3234 = vmatprep.subr.bf16.mxu0 %v3567_v46  ;;  %3256 = vmatprep.subr.bf16.mxu1 %v3568_v47 }
 0xdfc   : > { %3235 = vmatpush3.bf16.msra.mxu0 %v3569_v48  ;;  %3257 = vmatpush3.bf16.msra.mxu1 %v3570_v34 }
 0xdfd   : > { %3236 = vmatprep.subr.bf16.mxu0 %v3571_v33  ;;  %3258 = vmatprep.subr.bf16.mxu1 %v3572_v50 }
 0xe00   : > { %3237 = vmatpush3.bf16.msra.mxu0 %v3573_v51  ;;  %3259 = vmatpush3.bf16.msra.mxu1 %v3574_v54 }
 0xe01   : > { %3238 = vmatprep.subr.bf16.mxu0 %v3575_v12  ;;  %3260 = vmatprep.subr.bf16.mxu1 %v3576_v28 }
 0xe04   : > { %3239 = vmatpush3.bf16.msra.mxu0 %v3577_v52  ;;  %3261 = vmatpush3.bf16.msra.mxu1 %v3578_v53 }
 0xe05   : > { %3240 = vmatprep.subr.bf16.mxu0 %v3579_v56  ;;  %3262 = vmatprep.subr.bf16.mxu1 %v3580_v57 }
 0xe08   : > { %3241 = vmatpush3.bf16.msra.mxu0 %v3581_v6  ;;  %3263 = vmatpush3.bf16.msra.mxu1 %v3582_v58 }
 0xe09   : > { %3242 = vmatprep.subr.bf16.mxu0 %v3583_v17  ;;  %3264 = vmatprep.subr.bf16.mxu1 %v3584_v59 }
 0xe0c   : > { %3243 = vmatpush3.bf16.msra.mxu0 %v3585_v61  ;;  %3265 = vmatpush3.bf16.msra.mxu1 %v3586_v62 }
 0xe0d   : > { %3244 = vmatprep.subr.bf16.mxu0 %v3587_v63  ;;  %3266 = vmatprep.subr.bf16.mxu1 %v3588_v0 }
 0xe10   : > { %3245 = vmatpush3.bf16.msra.mxu0 %v3589_v1  ;;  %3267 = vmatpush3.bf16.msra.mxu1 %v3590_v2  ;;  %v3134_v1 = vld [vmem:[%s960_s7] ss:$0 sm:$0xff] }
 0xeb3   : > { %v2358_v11 = vpop.f32.mrf.mxu0  ;;  %v2399_v13 = vpop.f32.mrf.mxu1 }
 0xeb4   : > { %v2359_v14 = vadd.f32 %v2358_v11, %v2147_v7  ;;  %v2400_v15 = vadd.f32 %v2399_v13, %v2155_v8 }
 0xeb5   : > { %v2360_v20 = vpop.f32.mrf.mxu0  ;;  %v2401_v27 = vpop.f32.mrf.mxu1 }
 0xeb6   : > { %v2406_v36 = vmul.f32 %v2359_v14, %v2359_v14  ;;  %v2408_v21 = vmul.f32 %v2400_v15, %v2400_v15  ;;  %v2361_v22 = vadd.f32 %v2360_v20, %v2151_v9  ;;  %v2402_v23 = vadd.f32 %v2401_v27, %v2159_v10 }
 0xeb7   : > { %v2362_v32 = vpop.f32.mrf.mxu0  ;;  %v2403_v24 = vpop.f32.mrf.mxu1 }
 0xeb8   : > { %v2410_v29 = vmul.f32 %v2406_v36, %v2359_v14  ;;  %v2412_v30 = vmul.f32 %v2408_v21, %v2400_v15  ;;  %v2407_v60 = vmul.f32 %v2361_v22, %v2361_v22  ;;  %v2409_v18 = vmul.f32 %v2402_v23, %v2402_v23 }
 0xeb9   : > { %v2363_v31 = vpop.f32.mrf.mxu0  ;;  %v2404_v55 = vpop.f32.mrf.mxu1 }
 0xeba   : > { %v2414_v16 = vmul.f32 0.044715, %v2410_v29  ;;  %v2416_v35 = vmul.f32 0.044715, %v2412_v30  ;;  %v2411_v25 = vmul.f32 %v2407_v60, %v2361_v22  ;;  %v2413_v37 = vmul.f32 %v2409_v18, %v2402_v23 }
 0xebc   : > { %v2418_v38 = vadd.f32 %v2414_v16, %v2359_v14  ;;  %v2420_v39 = vadd.f32 %v2416_v35, %v2400_v15  ;;  %v2415_v40 = vmul.f32 0.044715, %v2411_v25  ;;  %v2417_v19 = vmul.f32 0.044715, %v2413_v37 }
 0xebe   : > { %v2422_v26 = vmul.f32 0.7978846, %v2418_v38  ;;  %v2424_v41 = vmul.f32 0.7978846, %v2420_v39  ;;  %v2419_v42 = vadd.f32 %v2415_v40, %v2361_v22  ;;  %v2421_v44 = vadd.f32 %v2417_v19, %v2402_v23 }
 0xec0   : > { %3621 = vtanh.f32 %v2422_v26  ;;  %v2423_v45 = vmul.f32 0.7978846, %v2419_v42  ;;  %v2425_v43 = vmul.f32 0.7978846, %v2421_v44 }
 0xec1   : > { %3623 = vtanh.f32 %v2424_v41 }
 0xec2   : > { %3625 = vtanh.f32 %v2423_v45 }
 0xec3   : > { %3627 = vtanh.f32 %v2425_v43 }
 0xecd   : > { %v3622_v46 = vpop.eup %3621 }
 0xece   : > { %v3624_v47 = vpop.eup %3623  ;;  %v2430_v48 = vadd.f32 1.0, %v3622_v46 }
 0xecf   : > { %v3626_v34 = vpop.eup %3625  ;;  %v2432_v33 = vadd.f32 1.0, %v3624_v47 }
 0xed0   : > { %v3628_v50 = vpop.eup %3627  ;;  %v2431_v51 = vadd.f32 1.0, %v3626_v34  ;;  %v2434_v54 = vmul.f32 0.5, %v2430_v48 }
 0xed1   : > { %v2433_v12 = vadd.f32 1.0, %v3628_v50  ;;  %v2436_v28 = vmul.f32 0.5, %v2432_v33 }
 0xed2   : > { %v2435_v52 = vmul.f32 0.5, %v2431_v51  ;;  %v2438_v56 = vmul.f32 %v2434_v54, %v2359_v14 }
 0xed3   : > { %v2437_v53 = vmul.f32 0.5, %v2433_v12  ;;  %v2440_v6 = vmul.f32 %v2436_v28, %v2400_v15 }
 0xed4   : > { %v2439_v57 = vmul.f32 %v2435_v52, %v2361_v22  ;;  %v2442_v61 = vpack.c.bf16 %v2438_v56, %v2438_v56 }
 0xed5   : > { %v2441_v58 = vmul.f32 %v2437_v53, %v2402_v23  ;;  %v2444_v62 = vpack.c.bf16 %v2440_v6, %v2440_v6 }
 0xed6   : > { %v2443_v17 = vpack.c.bf16 %v2439_v57, %v2439_v57 }
 0xed7   : > { %v2445_v59 = vpack.c.bf16 %v2441_v58, %v2441_v58 }
 0xed8   : > { %2676 = vmatprep.mubr.bf16.mxu0 %v2443_v17 }
 0xed9   : > { %2716 = vmatprep.mubr.bf16.mxu1 %v2445_v59  ;;  %2677 = vmatmul.mubr.bf16.vlgmr.msra.gmra.mxu0 %v2442_v61 }
 0xeda   : > { %2717 = vmatmul.mubr.bf16.vlgmr.msra.gmra.mxu1 %v2444_v62 }
 0xf99   : > { %v3246_v63 = vpop.f32.mrf.mxu0 }
 0xf9a   : > { %v3268_v0 = vpop.f32.mrf.mxu1 }
 0xf9b   : > { %v3247_v2 = vpop.f32.mrf.mxu0 }
 0xf9c   : > { %v3248_v3 = vadd.f32 %v3247_v2, %v3246_v63  ;;  %v3269_v4 = vpop.f32.mrf.mxu1 }
 0xf9d   : > { %v3249_v5 = vpop.f32.mrf.mxu0  ;;  %v3270_v8 = vadd.f32 %v3269_v4, %v3268_v0 }
 0xf9e   : > { %v2679_v7 = vadd.f32 %v3248_v3, %v3134_v1  ;;  %v3271_v9 = vpop.f32.mrf.mxu1 }
 0xf9f   : > { %v3250_v10 = vpop.f32.mrf.mxu0 }
 0xfa0   : > { %v2719_v11 = vadd.f32 %v3270_v8, %v2679_v7  ;;  %v3272_v13 = vpop.f32.mrf.mxu1  ;;  %2729 = sbr.rel (%p3167_p1) target bundleno = 4312 (0x10d8), region = 112 }
 0xfa2   : > { %v2724_v14 = vadd.f32 %v2719_v11, %v4287_v49 }
 0xfa4   : > { %2725 = vst [vmem:[#allocation2] sm:$0xff] %v2724_v14 }
 0xfa5   : > { %2732 = vadd.xlane.f32.xlu0 %v2724_v14  ;;  %v3168_v49 = vld [vmem:[%s4541_s20] ss:$0 sm:$0xff] }
 0xfa6   : > { %v3169_v29 = vld [vmem:[%s4542_s16] ss:$0 sm:$0xff] }
0x102e   : > { %v2733_v15 = vpop.xlane.xlu0 %2732 }
0x102f   : > { %v2734_v20 = vmul.f32 0.0078125, %v2733_v15 }
0x1031   : > { %v2735_v27 = vsub.f32 %v2724_v14, %v2734_v20 }
0x1033   : > { %v2736_v36 = vmul.f32 %v2735_v27, %v2735_v27 }
0x1035   : > { %2737 = vadd.xlane.f32.xlu0 %v2736_v36 }
0x10be   : > { %v2738_v21 = vpop.xlane.xlu0 %2737 }
0x10bf   : > { %v2739_v22 = vmul.f32 0.0078125, %v2738_v21 }
0x10c1   : > { %v2740_v23 = vadd.f32 1e-05, %v2739_v22 }
0x10c3   : > { %3630 = vrsqrt.f32 %v2740_v23 }
0x10d0   : > { %v3631_v32 = vpop.eup %3630 }
0x10d1   : > { %v2742_v24 = vmul.f32 %v3631_v32, %v2735_v27 }
0x10d3   : > { %v2749_v30 = vmul.f32 %v3168_v49, %v2742_v24 }
0x10d5   : > { %v2756_v60 = vadd.f32 %v3169_v29, %v2749_v30 }
0x10d7   : > { %2757 = vst [vmem:[%s887_s14] sm:$0xff] %v2756_v60 }
0x10d8 PF: > { %s4543_s4 = sld [smem:[#allocation12_spill]]  ;;  %s2772_s19 = sshll.u32 %s887_s14, 4  ;;  %s2773_s19 = int_to_ptr.vmem [resolvable:$true] %s2772_s19 }
0x10d9   : > { %s4544_s22 = sld [smem:[#allocation9_spill]]  ;;  %s3632_s29 = scalar_lea.vmem %s2773_s19, 128 }
0x10da   : > { %s4546_s11 = sld [smem:[#allocation40_spill]]  ;;  %p3633_p2 = scmp.ne.s32.totalorder %s2773_s19, %s3632_s29 }
0x10db   : > { %s3732_s3 = smov [#allocation5]  }
0x10dc   : > { %p3634_p4 = pnand %p3633_p2, %p3892_p3  ;;  %s3636_s21 = sshll.u32 %s3732_s3, 4  ;;  %s3637_s21 = int_to_ptr.vmem [resolvable:$false] %s3636_s21 }
0x10dd   : > { %s3638_s26 = scalar_lea.vmem %s3637_s21, 256  ;;  %p3639_p6 = scmp.lt.s32.totalorder %s2773_s19, %s3637_s21 }
0x10de   : > { %s3171_s9 = sshll.u32 %s4543_s4, 7  ;;  %p3635_p5 = pneg %p3634_p4 }
0x10df   : > { %s4547_s30 = sand.u32 1, %s4544_s22   ;;  %p3640_p7 = scmp.lt.s32.totalorder %s3638_s26, %s3632_s29 }
0x10e0   : > { %s2770_s13 = scalar_lea.hbm %s4546_s11, %s3171_s9  ;;  %s2759_s18 = scalar_lea.sflag [#allocation6], %s4547_s30 }
0x10e1   : > { %p3641_p8 = por %p3640_p7, %p3639_p6 }
0x10e3   : > { %p3642_p10 = pnand %p3641_p8, %p3635_p5 }
0x10e5   : > { %3645 = shalt.err (!%p3642_p10)
}
0x10e6   : > { %s3646_s15 = scalar_lea.hbm %s2770_s13, 128  ;;  %s3650_s27 = scalar_lea.hbm %s4546_s11, 256 }
0x10e7   : > { %p3647_p11 = scmp.ne.s32.totalorder %s2770_s13, %s3646_s15  ;;  %p3651_p0 = scmp.lt.s32.totalorder %s2770_s13, %s4546_s11 }
0x10e8   : > { %p3652_p1 = scmp.lt.s32.totalorder %s3650_s27, %s3646_s15 }
0x10e9   : > { %p3648_p12 = pnand %p3647_p11, %p3892_p3 }
0x10ea   : > { %p3653_p2 = por %p3652_p1, %p3651_p0 }
0x10eb   : > { %p3649_p13 = pneg %p3648_p12 }
0x10ed   : > { %p3654_p4 = pnand %p3653_p2, %p3649_p13 }
0x10ef   : > { %3657 = shalt.err (!%p3654_p4)
}
0x10f0   : > { %3394 = dma.vmem_to_hbm [thread:$0]  (%p3892_p3), %s2773_s19, 128, %s2770_s13, %s2759_s18  }
0x10f1 PF: > { %s4548_s23 = sld [smem:[#allocation15_spill]] }
0x10f2   : > { %s4549_s7 = sld [smem:[#allocation8_spill]] }
0x10f7   : > { %p3400_p5 = scmp.ge.s32.totalorder %s4548_s23, 2 }
0x10f8   : > { %s2784_s20 = sand.u32 1, %s4549_s7  }
0x10f9   : > { %p3397_p6 = pnand %p3400_p5, %p3902_p9  ;;  %s2785_s24 = scalar_lea.sflag [#allocation6], %s2784_s20 }
0x10fb   : > { %p3398_p7 = pneg %p3397_p6 }
0x10fd   : > { %3691 = dma.done.wait (%p3398_p7), %s2785_s24, 128  }
0x10fe   : > { %3693 = vsyncadd (%p3398_p7), %s2785_s24, 4294967168  ;;  %s34_s0 = sadd.s32 1, %s4548_s23   ;;  %s4551_s2 = sld [smem:[#allocation9_spill]] }
0x10ff   : > { %p31_p8 = scmp.ge.s32.totalorder %s34_s0, 6   ;;  %s4552_s25 = sld [smem:[#allocation10_spill]] }
0x1100   : > { %s4553_s26 = sld [smem:[#allocation20_spill]] }
0x1101   : > { %s4554_s27 = sld [smem:[#allocation13_spill]]  ;;  %33 = sbr.rel (!%p31_p8) target bundleno = 25 (0x19), region = 201 }
0x1102   : > { %s4555_s3 = sld [smem:[#allocation14_spill]] }
0x1103   : > { %s4556_s28 = sld [smem:[#allocation16_spill]] }
0x1104   : > { %s4557_s29 = sld [smem:[#allocation18_spill]] }
0x1106   :  { %2790 = vsyncpa [#allocation6], 1 }
0x1107   :  { %2792 = vsyncpa [#allocation6 + $0x1], 1 }

</bundles_post_ra>
